<compile_context>
chip_gen: v7x
topology: tpu7x:2x2x1
jax: 0.10.0
libtpu: 0.0.40
codegen_flags: <defaults>
</compile_context>

<pallas_src>
import math
import jax
import jax.numpy as jnp
from jax.experimental import pallas as pl
from jax.experimental.pallas import tpu as pltpu

# ---- model hyperparameters (small, consistent with the module's __init__ signature) ----
VOCAB = 100
D_MODEL = 32
NHEAD = 4
HEAD_DIM = D_MODEL // NHEAD
NUM_LAYERS = 2
MAX_LEN = 512
DIM_FF = 2048          # PyTorch nn.TransformerDecoderLayer default dim_feedforward
N_CLASSES = 26         # fc_out
OUT_PAD = 128          # lane-dense padded classifier width
LN_EPS = 1e-5          # PyTorch default layer_norm_eps

BATCH = 2
SEQ = 8                # tgt sequence length
MEM_SEQ = 16           # memory (encoder output) sequence length


# ------------------------------- Pallas kernel -------------------------------
def _layer_norm(x, w, b):
    mu = jnp.mean(x, axis=-1, keepdims=True)
    xc = x - mu
    var = jnp.mean(xc * xc, axis=-1, keepdims=True)
    inv = jax.lax.rsqrt(var + LN_EPS)
    return xc * inv * w + b


def decoder_kernel(x_ref, mem_ref,
                   sa_wqkv_ref, sa_bqkv_ref, sa_wo_ref, sa_bo_ref, ln1w_ref, ln1b_ref,
                   ca_wq_ref, ca_bq_ref, ca_wkv_ref, ca_bkv_ref, ca_wo_ref, ca_bo_ref,
                   ln2w_ref, ln2b_ref,
                   ff_w1_ref, ff_b1_ref, ff_w2_ref, ff_b2_ref, ln3w_ref, ln3b_ref,
                   fc_w_ref, fc_b_ref,
                   o_ref,
                   x_scr):
    B, S, SM = BATCH, SEQ, MEM_SEQ
    layer = pl.program_id(0)

    # First grid step: load the embedded+PE activations into the carried VMEM scratch.
    @pl.when(layer == 0)
    def _():
        x_scr[...] = x_ref[...]

    x = x_scr[...]                                   # (B*S, D) f32 carried across layers
    mem_bf = mem_ref[...].astype(jnp.bfloat16)       # (B*SM, D)

    # causal "keep" mask (True = attend): position i may see keys j <= i
    row = jax.lax.broadcasted_iota(jnp.int32, (S, S), 0)
    col = jax.lax.broadcasted_iota(jnp.int32, (S, S), 1)
    keep = col <= row                                # (S, S)

    scale = 1.0 / math.sqrt(HEAD_DIM)

    def split_heads(t2d, s_len):
        # (B*s_len, D) -> (NHEAD*B, s_len, HEAD_DIM); per-head lane slices stacked on a new
        # leading axis, then a leading/sublane-only reshape.
        parts = [t2d[:, h * HEAD_DIM:(h + 1) * HEAD_DIM] for h in range(NHEAD)]
        th = jnp.stack(parts, axis=0)                # (H, B*s_len, Dh)
        return th.reshape(NHEAD * B, s_len, HEAD_DIM)

    def mha(q2d, k2d, v2d, s_q, s_k, mask, wo_bf, bo):
        # Batched score / context matmuls over all (head, batch) pairs, then one batched
        # per-head output projection + head-sum (no lane-concat merge).
        qh = split_heads(q2d, s_q).astype(jnp.bfloat16)
        kh = split_heads(k2d, s_k).astype(jnp.bfloat16)
        vh = split_heads(v2d, s_k).astype(jnp.bfloat16)
        s = jnp.einsum('nqd,nkd->nqk', qh, kh,
                       preferred_element_type=jnp.float32) * scale     # (H*B, s_q, s_k) f32
        if mask is not None:
            s = jnp.where(mask, s, -1e30)
        m = jnp.max(s, axis=-1, keepdims=True)
        e = jnp.exp(s - m)
        denom = jnp.sum(e, axis=-1, keepdims=True)
        p = (e * pl.reciprocal(denom, approx=True)).astype(jnp.bfloat16)
        ctx = jnp.einsum('nqk,nkd->nqd', p, vh,
                         preferred_element_type=jnp.float32)            # (H*B, s_q, Dh) f32
        # (H*B, s_q, Dh) -> (H, B*s_q, Dh); rows of each head slice are ordered [b, s].
        ctx3 = ctx.reshape(NHEAD, B * s_q, HEAD_DIM).astype(jnp.bfloat16)
        # wo_bf: (H, Dh, D).  Per-head projection, then sum over the 4-long head axis.
        part = jnp.einsum('hmd,hdo->hmo', ctx3, wo_bf,
                          preferred_element_type=jnp.float32)           # (H, B*s_q, D)
        return jnp.sum(part, axis=0) + bo                               # (B*s_q, D)

    # --- causal self-attention ---
    xb = x.astype(jnp.bfloat16)
    qkv = jnp.dot(xb, sa_wqkv_ref[...],
                  preferred_element_type=jnp.float32) + sa_bqkv_ref[...]   # (B*S, 3D)
    q = qkv[:, 0:D_MODEL]
    k = qkv[:, D_MODEL:2 * D_MODEL]
    v = qkv[:, 2 * D_MODEL:3 * D_MODEL]
    attn = mha(q, k, v, S, S, keep, sa_wo_ref[...], sa_bo_ref[...])
    x = _layer_norm(x + attn, ln1w_ref[...], ln1b_ref[...])               # post-norm

    # --- cross-attention over memory ---
    xb = x.astype(jnp.bfloat16)
    qc = jnp.dot(xb, ca_wq_ref[...],
                 preferred_element_type=jnp.float32) + ca_bq_ref[...]      # (B*S, D)
    kvc = jnp.dot(mem_bf, ca_wkv_ref[...],
                  preferred_element_type=jnp.float32) + ca_bkv_ref[...]    # (B*SM, 2D)
    kc = kvc[:, 0:D_MODEL]
    vc = kvc[:, D_MODEL:2 * D_MODEL]
    attn = mha(qc, kc, vc, S, SM, None, ca_wo_ref[...], ca_bo_ref[...])
    x = _layer_norm(x + attn, ln2w_ref[...], ln2b_ref[...])

    # --- feed forward (relu) ---
    xb = x.astype(jnp.bfloat16)
    h = jnp.dot(xb, ff_w1_ref[...],
                preferred_element_type=jnp.float32) + ff_b1_ref[...]       # (B*S, FF)
    h = jnp.maximum(h, 0.0)
    ff = jnp.dot(h.astype(jnp.bfloat16), ff_w2_ref[...],
                 preferred_element_type=jnp.float32) + ff_b2_ref[...]
    x = _layer_norm(x + ff, ln3w_ref[...], ln3b_ref[...])

    x_scr[...] = x                                   # carry to next layer

    # --- final classifier head (fc_out), lane-dense 128-wide padded output ---
    @pl.when(layer == pl.num_programs(0) - 1)
    def _():
        o_ref[...] = jnp.dot(x.astype(jnp.bfloat16), fc_w_ref[...],
                             preferred_element_type=jnp.float32) + fc_b_ref[...]


def _const_index_map(nd):
    return lambda l: (0,) * nd


def _layer_index_map(nd_tail):
    return lambda l: (l,) + (0,) * nd_tail


def decoder_pallas(x2d, mem2d, flat_w):
    """x2d: (B*S, D) f32; mem2d: (B*S_mem, D) f32; flat_w: tuple of weight arrays.
    flat_w[:-2] are layer-stacked (leading NUM_LAYERS axis); flat_w[-2:] are the fc head."""
    n_rows = x2d.shape[0]

    def full_spec(a):
        return pl.BlockSpec(a.shape, _const_index_map(a.ndim))

    def layer_spec(a):
        tail = a.shape[1:]
        return pl.BlockSpec((None,) + tail, _layer_index_map(len(tail)))

    in_specs = ([full_spec(x2d), full_spec(mem2d)]
                + [layer_spec(w) for w in flat_w[:-2]]
                + [full_spec(w) for w in flat_w[-2:]])

    return pl.pallas_call(
        decoder_kernel,
        out_shape=jax.ShapeDtypeStruct((n_rows, OUT_PAD), jnp.float32),
        grid_spec=pltpu.PrefetchScalarGridSpec(
            num_scalar_prefetch=0,
            grid=(NUM_LAYERS,),
            in_specs=in_specs,
            out_specs=pl.BlockSpec((n_rows, OUT_PAD), lambda l: (0, 0)),
            scratch_shapes=[pltpu.VMEM((n_rows, D_MODEL), jnp.float32)]),
        compiler_params=pltpu.CompilerParams(dimension_semantics=("arbitrary",)),
    )(x2d, mem2d, *flat_w)


# ------------------------------- parameters / glue -------------------------------
def sinusoidal_pe(max_len, d_model):
    position = jnp.arange(max_len, dtype=jnp.float32)[:, None]
    div_term = jnp.exp(jnp.arange(0, d_model, 2, dtype=jnp.float32)
                       * (-math.log(10000.0) / d_model))
    pe = jnp.zeros((max_len, d_model), jnp.float32)
    pe = pe.at[:, 0::2].set(jnp.sin(position * div_term))
    pe = pe.at[:, 1::2].set(jnp.cos(position * div_term))
    return pe


def make_params(key):
    keys = jax.random.split(key, 2 + NUM_LAYERS)
    embed = jax.random.normal(keys[0], (VOCAB, D_MODEL), jnp.float32)
    fck = jax.random.split(keys[1], 2)
    fc_w = jax.random.normal(fck[0], (N_CLASSES, D_MODEL), jnp.float32) / math.sqrt(D_MODEL)
    fc_b = jax.random.normal(fck[1], (N_CLASSES,), jnp.float32) * 0.01
    layers = []
    for l in range(NUM_LAYERS):
        k = jax.random.split(keys[2 + l], 12)
        lp = dict(
            sa_w=jax.random.normal(k[0], (3 * D_MODEL, D_MODEL), jnp.float32) / math.sqrt(D_MODEL),
            sa_b=jax.random.normal(k[1], (3 * D_MODEL,), jnp.float32) * 0.01,
            sa_wo=jax.random.normal(k[2], (D_MODEL, D_MODEL), jnp.float32) / math.sqrt(D_MODEL),
            sa_bo=jax.random.normal(k[3], (D_MODEL,), jnp.float32) * 0.01,
            ca_w=jax.random.normal(k[4], (3 * D_MODEL, D_MODEL), jnp.float32) / math.sqrt(D_MODEL),
            ca_b=jax.random.normal(k[5], (3 * D_MODEL,), jnp.float32) * 0.01,
            ca_wo=jax.random.normal(k[6], (D_MODEL, D_MODEL), jnp.float32) / math.sqrt(D_MODEL),
            ca_bo=jax.random.normal(k[7], (D_MODEL,), jnp.float32) * 0.01,
            w1=jax.random.normal(k[8], (DIM_FF, D_MODEL), jnp.float32) / math.sqrt(D_MODEL),
            b1=jax.random.normal(k[9], (DIM_FF,), jnp.float32) * 0.01,
            w2=jax.random.normal(k[10], (D_MODEL, DIM_FF), jnp.float32) / math.sqrt(DIM_FF),
            b2=jax.random.normal(k[11], (D_MODEL,), jnp.float32) * 0.01,
            ln1w=jnp.ones((D_MODEL,), jnp.float32), ln1b=jnp.zeros((D_MODEL,), jnp.float32),
            ln2w=jnp.ones((D_MODEL,), jnp.float32), ln2b=jnp.zeros((D_MODEL,), jnp.float32),
            ln3w=jnp.ones((D_MODEL,), jnp.float32), ln3b=jnp.zeros((D_MODEL,), jnp.float32),
        )
        layers.append(lp)
    return embed, layers, fc_w, fc_b


def prep_params(layers, fc_w, fc_b):
    """One-time weight prep (hoisted out of the forward path):
       transpose to (in, out), stack layers on a leading axis, store matmul weights as bf16,
       split out-projections per head (H, Dh, D), pad the fc head to 128 lanes."""
    D = D_MODEL
    bf = jnp.bfloat16

    def stack(fn):
        return jnp.stack([fn(lp) for lp in layers], axis=0)

    def per_head_wo(wo):
        # torch out_proj weight (D_out, D_in): y = ctx @ wo.T ; ctx columns ordered [head, dh]
        return wo.T.reshape(NHEAD, HEAD_DIM, D)      # (H, Dh, D)

    fc_w_pad = jnp.zeros((D, OUT_PAD), jnp.float32).at[:, :N_CLASSES].set(fc_w.T)
    fc_b_pad = jnp.zeros((1, OUT_PAD), jnp.float32).at[:, :N_CLASSES].set(fc_b.reshape(1, -1))

    return (
        stack(lambda lp: lp['sa_w'].T).astype(bf),            # (L, D, 3D)
        stack(lambda lp: lp['sa_b'].reshape(1, -1)),           # (L, 1, 3D)
        stack(lambda lp: per_head_wo(lp['sa_wo'])).astype(bf),  # (L, H, Dh, D)
        stack(lambda lp: lp['sa_bo'].reshape(1, -1)),
        stack(lambda lp: lp['ln1w'].reshape(1, -1)),
        stack(lambda lp: lp['ln1b'].reshape(1, -1)),
        stack(lambda lp: lp['ca_w'][:D].T).astype(bf),         # (L, D, D)   query proj
        stack(lambda lp: lp['ca_b'][:D].reshape(1, -1)),
        stack(lambda lp: lp['ca_w'][D:].T).astype(bf),         # (L, D, 2D)  key/value proj
        stack(lambda lp: lp['ca_b'][D:].reshape(1, -1)),
        stack(lambda lp: per_head_wo(lp['ca_wo'])).astype(bf),  # (L, H, Dh, D)
        stack(lambda lp: lp['ca_bo'].reshape(1, -1)),
        stack(lambda lp: lp['ln2w'].reshape(1, -1)),
        stack(lambda lp: lp['ln2b'].reshape(1, -1)),
        stack(lambda lp: lp['w1'].T).astype(bf),               # (L, D, FF)
        stack(lambda lp: lp['b1'].reshape(1, -1)),
        stack(lambda lp: lp['w2'].T).astype(bf),               # (L, FF, D)
        stack(lambda lp: lp['b2'].reshape(1, -1)),
        stack(lambda lp: lp['ln3w'].reshape(1, -1)),
        stack(lambda lp: lp['ln3b'].reshape(1, -1)),
        fc_w_pad.astype(bf),                                   # (D, 128)
        fc_b_pad,                                              # (1, 128)
    )


@jax.jit
def transformer_decoder_forward(tgt, memory, embed, pe, flat_w):
    # TODO(synk): tgt_key_padding_mask / memory_key_padding_mask are not supported (None here).
    tok = jnp.take(embed, tgt, axis=0)                       # embedding gather (plain-JAX glue)
    x = tok + pe[None, :tgt.shape[1], :]                     # add sinusoidal PE
    B, S, D = x.shape
    x2d = x.reshape(B * S, D)
    mem2d = memory.reshape(B * memory.shape[1], D)
    out2d = decoder_pallas(x2d, mem2d, flat_w)               # single fused Pallas call
    return out2d[:, :N_CLASSES].reshape(B, S, N_CLASSES)     # drop lane padding


# ------------------------------- pure-JAX reference (sanity check) -------------------------------
def _ref_ln(x, w, b):
    mu = jnp.mean(x, axis=-1, keepdims=True)
    var = jnp.mean((x - mu) ** 2, axis=-1, keepdims=True)
    return (x - mu) * jax.lax.rsqrt(var + LN_EPS) * w + b


def ref_attention(q_x, kv_x, w_in, b_in, w_out, b_out, blocked_mask):
    B, Sq, D = q_x.shape
    Sk = kv_x.shape[1]
    wq, wk, wv = w_in[:D], w_in[D:2 * D], w_in[2 * D:]
    bq, bk, bv = b_in[:D], b_in[D:2 * D], b_in[2 * D:]
    q = q_x @ wq.T + bq
    k = kv_x @ wk.T + bk
    v = kv_x @ wv.T + bv

    def split(t, s):
        return t.reshape(B, s, NHEAD, HEAD_DIM).transpose(0, 2, 1, 3)

    qh, kh, vh = split(q, Sq), split(k, Sk), split(v, Sk)
    s = jnp.einsum('bhqd,bhkd->bhqk', qh, kh) / math.sqrt(HEAD_DIM)
    if blocked_mask is not None:
        s = jnp.where(blocked_mask, -jnp.inf, s)             # True = masked (PyTorch semantics)
    p = jax.nn.softmax(s, axis=-1)
    ctx = jnp.einsum('bhqk,bhkd->bhqd', p, vh).transpose(0, 2, 1, 3).reshape(B, Sq, D)
    return ctx @ w_out.T + b_out


def ref_forward(tgt, memory, embed, pe, layers, fc_w, fc_b):
    x = jnp.take(embed, tgt, axis=0) + pe[None, :tgt.shape[1], :]
    S = tgt.shape[1]
    blocked = jnp.triu(jnp.ones((S, S), dtype=bool), k=1)[None, None]
    for lp in layers:
        x = _ref_ln(x + ref_attention(x, x, lp['sa_w'], lp['sa_b'],
                                      lp['sa_wo'], lp['sa_bo'], blocked),
                    lp['ln1w'], lp['ln1b'])
        x = _ref_ln(x + ref_attention(x, memory, lp['ca_w'], lp['ca_b'],
                                      lp['ca_wo'], lp['ca_bo'], None),
                    lp['ln2w'], lp['ln2b'])
        ff = jax.nn.relu(x @ lp['w1'].T + lp['b1']) @ lp['w2'].T + lp['b2']
        x = _ref_ln(x + ff, lp['ln3w'], lp['ln3b'])
    return x @ fc_w.T + fc_b


# ------------------------------- main -------------------------------
if __name__ == "__main__":
    key = jax.random.PRNGKey(0)
    pkey, dkey, mkey = jax.random.split(key, 3)

    embed, layers, fc_w, fc_b = make_params(pkey)
    pe = sinusoidal_pe(MAX_LEN, D_MODEL)
    tgt = jax.random.randint(dkey, (BATCH, SEQ), 0, VOCAB, dtype=jnp.int32)
    memory = jax.random.normal(mkey, (BATCH, MEM_SEQ, D_MODEL), jnp.float32)

    flat_w = prep_params(layers, fc_w, fc_b)                 # weight prep done once

    out = jax.block_until_ready(transformer_decoder_forward(tgt, memory, embed, pe, flat_w))

    assert out.shape == (BATCH, SEQ, N_CLASSES), out.shape
    assert bool(jnp.all(jnp.isfinite(out)))

    ref = jax.block_until_ready(ref_forward(tgt, memory, embed, pe, layers, fc_w, fc_b))
    # Tolerance accounts for bf16 weight storage / bf16 MXU operands (f32 accumulation).
    assert bool(jnp.allclose(out, ref, atol=5e-2, rtol=5e-2)), \
        float(jnp.max(jnp.abs(out - ref)))

    print("KERNEL_OK")
</pallas_src>

<mosaic_0001>
module attributes {stable_mosaic.version = 11 : i64} {
  func.func @decoder_kernel(%arg0: i32, %arg1: memref<16x32xf32, #tpu.memory_space<vmem>>, %arg2: memref<32x32xf32, #tpu.memory_space<vmem>>, %arg3: memref<1x32x96xbf16, #tpu.memory_space<vmem>>, %arg4: memref<1x1x96xf32, #tpu.memory_space<vmem>>, %arg5: memref<1x4x8x32xbf16, #tpu.memory_space<vmem>>, %arg6: memref<1x1x32xf32, #tpu.memory_space<vmem>>, %arg7: memref<1x1x32xf32, #tpu.memory_space<vmem>>, %arg8: memref<1x1x32xf32, #tpu.memory_space<vmem>>, %arg9: memref<1x32x32xbf16, #tpu.memory_space<vmem>>, %arg10: memref<1x1x32xf32, #tpu.memory_space<vmem>>, %arg11: memref<1x32x64xbf16, #tpu.memory_space<vmem>>, %arg12: memref<1x1x64xf32, #tpu.memory_space<vmem>>, %arg13: memref<1x4x8x32xbf16, #tpu.memory_space<vmem>>, %arg14: memref<1x1x32xf32, #tpu.memory_space<vmem>>, %arg15: memref<1x1x32xf32, #tpu.memory_space<vmem>>, %arg16: memref<1x1x32xf32, #tpu.memory_space<vmem>>, %arg17: memref<1x32x2048xbf16, #tpu.memory_space<vmem>>, %arg18: memref<1x1x2048xf32, #tpu.memory_space<vmem>>, %arg19: memref<1x2048x32xbf16, #tpu.memory_space<vmem>>, %arg20: memref<1x1x32xf32, #tpu.memory_space<vmem>>, %arg21: memref<1x1x32xf32, #tpu.memory_space<vmem>>, %arg22: memref<1x1x32xf32, #tpu.memory_space<vmem>>, %arg23: memref<32x128xbf16, #tpu.memory_space<vmem>>, %arg24: memref<1x128xf32, #tpu.memory_space<vmem>>, %arg25: memref<16x128xf32, #tpu.memory_space<vmem>>, %arg26: memref<16x32xf32, #tpu.memory_space<vmem>>) attributes {dimension_semantics = [#tpu.dimension_semantics<arbitrary>], iteration_bounds = array<i64: 2>, scalar_prefetch = 0 : i64, scratch_operands = 1 : i64, tpu.core_type = #tpu.core_type<tc>, window_params = [{pipeline_mode = #tpu.pipeline_mode<synchronous>, transform_indices = @transform_0, window_bounds = array<i64: 16, 32>}, {pipeline_mode = #tpu.pipeline_mode<synchronous>, transform_indices = @transform_1, window_bounds = array<i64: 32, 32>}, {transform_indices = @transform_2, window_bounds = array<i64: 1, 32, 96>}, {transform_indices = @transform_3, window_bounds = array<i64: 1, 1, 96>}, {transform_indices = @transform_4, window_bounds = array<i64: 1, 4, 8, 32>}, {transform_indices = @transform_5, window_bounds = array<i64: 1, 1, 32>}, {transform_indices = @transform_6, window_bounds = array<i64: 1, 1, 32>}, {transform_indices = @transform_7, window_bounds = array<i64: 1, 1, 32>}, {transform_indices = @transform_8, window_bounds = array<i64: 1, 32, 32>}, {transform_indices = @transform_9, window_bounds = array<i64: 1, 1, 32>}, {transform_indices = @transform_10, window_bounds = array<i64: 1, 32, 64>}, {transform_indices = @transform_11, window_bounds = array<i64: 1, 1, 64>}, {transform_indices = @transform_12, window_bounds = array<i64: 1, 4, 8, 32>}, {transform_indices = @transform_13, window_bounds = array<i64: 1, 1, 32>}, {transform_indices = @transform_14, window_bounds = array<i64: 1, 1, 32>}, {transform_indices = @transform_15, window_bounds = array<i64: 1, 1, 32>}, {transform_indices = @transform_16, window_bounds = array<i64: 1, 32, 2048>}, {transform_indices = @transform_17, window_bounds = array<i64: 1, 1, 2048>}, {transform_indices = @transform_18, window_bounds = array<i64: 1, 2048, 32>}, {transform_indices = @transform_19, window_bounds = array<i64: 1, 1, 32>}, {transform_indices = @transform_20, window_bounds = array<i64: 1, 1, 32>}, {transform_indices = @transform_21, window_bounds = array<i64: 1, 1, 32>}, {pipeline_mode = #tpu.pipeline_mode<synchronous>, transform_indices = @transform_22, window_bounds = array<i64: 32, 128>}, {pipeline_mode = #tpu.pipeline_mode<synchronous>, transform_indices = @transform_23, window_bounds = array<i64: 1, 128>}, {pipeline_mode = #tpu.pipeline_mode<synchronous>, transform_indices = @transform_24, window_bounds = array<i64: 16, 128>}]} {
    %c0_i32 = arith.constant 0 : i32
    %0 = arith.cmpi eq, %arg0, %c0_i32 : i32
    %1 = arith.extui %0 : i1 to i32
    %c0_i32_0 = arith.constant 0 : i32
    %2 = arith.cmpi ne, %1, %c0_i32_0 : i32
    scf.if %2 {
      %c0_104 = arith.constant 0 : index
      %c0_105 = arith.constant 0 : index
      %254 = vector.load %arg1[%c0_104, %c0_105] : memref<16x32xf32, #tpu.memory_space<vmem>>, vector<16x32xf32>
      %c0_106 = arith.constant 0 : index
      %c0_107 = arith.constant 0 : index
      %255 = vector.load %arg26[%c0_106, %c0_107] : memref<16x32xf32, #tpu.memory_space<vmem>>, vector<16x32xf32>
      tpu.vector_store %arg26[%c0_106, %c0_107], %254 {strides = array<i32>} : memref<16x32xf32, #tpu.memory_space<vmem>>, vector<16x32xf32>,
    } else {
    }
    %c0 = arith.constant 0 : index
    %c0_1 = arith.constant 0 : index
    %3 = vector.load %arg26[%c0, %c0_1] : memref<16x32xf32, #tpu.memory_space<vmem>>, vector<16x32xf32>
    %c0_2 = arith.constant 0 : index
    %c0_3 = arith.constant 0 : index
    %4 = vector.load %arg2[%c0_2, %c0_3] : memref<32x32xf32, #tpu.memory_space<vmem>>, vector<32x32xf32>
    %5 = arith.truncf %4 : vector<32x32xf32> to vector<32x32xbf16>
    %6 = tpu.iota {dimensions = array<i32: 0>} : vector<8x8xi32>
    %7 = tpu.iota {dimensions = array<i32: 1>} : vector<8x8xi32>
    %8 = arith.cmpi sle, %7, %6 : vector<8x8xi32>
    %9 = arith.truncf %3 : vector<16x32xf32> to vector<16x32xbf16>
    %c0_4 = arith.constant 0 : index
    %c0_5 = arith.constant 0 : index
    %c0_6 = arith.constant 0 : index
    %10 = vector.load %arg3[%c0_4, %c0_5, %c0_6] : memref<1x32x96xbf16, #tpu.memory_space<vmem>>, vector<1x32x96xbf16>
    %11 = vector.shape_cast %10 : vector<1x32x96xbf16> to vector<32x96xbf16>
    %cst = arith.constant dense<0.000000e+00> : vector<16x96xf32>
    %12 = tpu.matmul %9, %11, %cst {dimension_numbers = #tpu.dot_dimension_numbers<[1], [0], [0], [1], [0, 0, 1, 1], [], []>} : vector<16x32xbf16>, vector<32x96xbf16>, vector<16x96xf32> -> vector<16x96xf32>
    %c0_7 = arith.constant 0 : index
    %c0_8 = arith.constant 0 : index
    %c0_9 = arith.constant 0 : index
    %13 = vector.load %arg4[%c0_7, %c0_8, %c0_9] : memref<1x1x96xf32, #tpu.memory_space<vmem>>, vector<1x1x96xf32>
    %14 = vector.shape_cast %13 : vector<1x1x96xf32> to vector<1x96xf32>
    %15 = vector.broadcast %14 : vector<1x96xf32> to vector<16x96xf32>
    %16 = arith.addf %12, %15 : vector<16x96xf32>
    %17 = vector.extract_strided_slice %16 {offsets = [0, 0], sizes = [16, 32], strides = [1, 1]} : vector<16x96xf32> to vector<16x32xf32>
    %18 = vector.extract_strided_slice %16 {offsets = [0, 32], sizes = [16, 32], strides = [1, 1]} : vector<16x96xf32> to vector<16x32xf32>
    %19 = vector.extract_strided_slice %16 {offsets = [0, 64], sizes = [16, 32], strides = [1, 1]} : vector<16x96xf32> to vector<16x32xf32>
    %c0_10 = arith.constant 0 : index
    %c0_11 = arith.constant 0 : index
    %c0_12 = arith.constant 0 : index
    %c0_13 = arith.constant 0 : index
    %20 = vector.load %arg5[%c0_10, %c0_11, %c0_12, %c0_13] : memref<1x4x8x32xbf16, #tpu.memory_space<vmem>>, vector<1x4x8x32xbf16>
    %21 = vector.shape_cast %20 : vector<1x4x8x32xbf16> to vector<4x8x32xbf16>
    %c0_14 = arith.constant 0 : index
    %c0_15 = arith.constant 0 : index
    %c0_16 = arith.constant 0 : index
    %22 = vector.load %arg6[%c0_14, %c0_15, %c0_16] : memref<1x1x32xf32, #tpu.memory_space<vmem>>, vector<1x1x32xf32>
    %23 = vector.shape_cast %22 : vector<1x1x32xf32> to vector<1x32xf32>
    %24 = vector.extract_strided_slice %17 {offsets = [0, 0], sizes = [16, 8], strides = [1, 1]} : vector<16x32xf32> to vector<16x8xf32>
    %25 = vector.extract_strided_slice %17 {offsets = [0, 8], sizes = [16, 8], strides = [1, 1]} : vector<16x32xf32> to vector<16x8xf32>
    %26 = vector.extract_strided_slice %17 {offsets = [0, 16], sizes = [16, 8], strides = [1, 1]} : vector<16x32xf32> to vector<16x8xf32>
    %27 = vector.extract_strided_slice %17 {offsets = [0, 24], sizes = [16, 8], strides = [1, 1]} : vector<16x32xf32> to vector<16x8xf32>
    %28 = vector.shape_cast %24 : vector<16x8xf32> to vector<1x16x8xf32>
    %29 = vector.shape_cast %25 : vector<16x8xf32> to vector<1x16x8xf32>
    %30 = vector.shape_cast %26 : vector<16x8xf32> to vector<1x16x8xf32>
    %31 = vector.shape_cast %27 : vector<16x8xf32> to vector<1x16x8xf32>
    %32 = tpu.concatenate %28, %29, %30, %31 in 0 : vector<1x16x8xf32>, vector<1x16x8xf32>, vector<1x16x8xf32>, vector<1x16x8xf32> -> vector<4x16x8xf32>
    %33 = vector.shape_cast %32 : vector<4x16x8xf32> to vector<8x8x8xf32>
    %34 = arith.truncf %33 : vector<8x8x8xf32> to vector<8x8x8xbf16>
    %35 = vector.extract_strided_slice %18 {offsets = [0, 0], sizes = [16, 8], strides = [1, 1]} : vector<16x32xf32> to vector<16x8xf32>
    %36 = vector.extract_strided_slice %18 {offsets = [0, 8], sizes = [16, 8], strides = [1, 1]} : vector<16x32xf32> to vector<16x8xf32>
    %37 = vector.extract_strided_slice %18 {offsets = [0, 16], sizes = [16, 8], strides = [1, 1]} : vector<16x32xf32> to vector<16x8xf32>
    %38 = vector.extract_strided_slice %18 {offsets = [0, 24], sizes = [16, 8], strides = [1, 1]} : vector<16x32xf32> to vector<16x8xf32>
    %39 = vector.shape_cast %35 : vector<16x8xf32> to vector<1x16x8xf32>
    %40 = vector.shape_cast %36 : vector<16x8xf32> to vector<1x16x8xf32>
    %41 = vector.shape_cast %37 : vector<16x8xf32> to vector<1x16x8xf32>
    %42 = vector.shape_cast %38 : vector<16x8xf32> to vector<1x16x8xf32>
    %43 = tpu.concatenate %39, %40, %41, %42 in 0 : vector<1x16x8xf32>, vector<1x16x8xf32>, vector<1x16x8xf32>, vector<1x16x8xf32> -> vector<4x16x8xf32>
    %44 = vector.shape_cast %43 : vector<4x16x8xf32> to vector<8x8x8xf32>
    %45 = arith.truncf %44 : vector<8x8x8xf32> to vector<8x8x8xbf16>
    %46 = vector.extract_strided_slice %19 {offsets = [0, 0], sizes = [16, 8], strides = [1, 1]} : vector<16x32xf32> to vector<16x8xf32>
    %47 = vector.extract_strided_slice %19 {offsets = [0, 8], sizes = [16, 8], strides = [1, 1]} : vector<16x32xf32> to vector<16x8xf32>
    %48 = vector.extract_strided_slice %19 {offsets = [0, 16], sizes = [16, 8], strides = [1, 1]} : vector<16x32xf32> to vector<16x8xf32>
    %49 = vector.extract_strided_slice %19 {offsets = [0, 24], sizes = [16, 8], strides = [1, 1]} : vector<16x32xf32> to vector<16x8xf32>
    %50 = vector.shape_cast %46 : vector<16x8xf32> to vector<1x16x8xf32>
    %51 = vector.shape_cast %47 : vector<16x8xf32> to vector<1x16x8xf32>
    %52 = vector.shape_cast %48 : vector<16x8xf32> to vector<1x16x8xf32>
    %53 = vector.shape_cast %49 : vector<16x8xf32> to vector<1x16x8xf32>
    %54 = tpu.concatenate %50, %51, %52, %53 in 0 : vector<1x16x8xf32>, vector<1x16x8xf32>, vector<1x16x8xf32>, vector<1x16x8xf32> -> vector<4x16x8xf32>
    %55 = vector.shape_cast %54 : vector<4x16x8xf32> to vector<8x8x8xf32>
    %56 = arith.truncf %55 : vector<8x8x8xf32> to vector<8x8x8xbf16>
    "tpu.trace_start"() <{level = 10 : i32, message = "nqd,nkd->nqk"}> : () -> ()
    %cst_17 = arith.constant dense<0.000000e+00> : vector<8x8x8xf32>
    %57 = tpu.matmul %34, %45, %cst_17 {dimension_numbers = #tpu.dot_dimension_numbers<[2], [2], [1], [1], [0, 0, 0, 1, 1, 1], [0], [0]>} : vector<8x8x8xbf16>, vector<8x8x8xbf16>, vector<8x8x8xf32> -> vector<8x8x8xf32>
    "tpu.trace_stop"() : () -> ()
    %cst_18 = arith.constant 0.353553385 : f32
    %58 = vector.broadcast %cst_18 : f32 to vector<8x8x8xf32>
    %59 = arith.mulf %57, %58 : vector<8x8x8xf32>
    %cst_19 = arith.constant -1.000000e+30 : f32
    %60 = vector.shape_cast %8 : vector<8x8xi1> to vector<1x8x8xi1>
    %61 = vector.broadcast %60 : vector<1x8x8xi1> to vector<8x8x8xi1>
    %62 = vector.broadcast %cst_19 : f32 to vector<8x8x8xf32>
    %63 = arith.select %61, %59, %62 : vector<8x8x8xi1>, vector<8x8x8xf32>
    %cst_20 = arith.constant dense<0xFF800000> : vector<8x8xf32>
    %64 = vector.multi_reduction <maximumf>, %63, %cst_20 [2] : vector<8x8x8xf32> to vector<8x8xf32>
    %65 = vector.shape_cast %64 : vector<8x8xf32> to vector<8x8x1xf32>
    %66 = vector.broadcast %65 : vector<8x8x1xf32> to vector<8x8x8xf32>
    %67 = arith.subf %63, %66 : vector<8x8x8xf32>
    %68 = math.exp %67 : vector<8x8x8xf32>
    %cst_21 = arith.constant dense<0.000000e+00> : vector<8x8xf32>
    %69 = vector.multi_reduction <add>, %68, %cst_21 [2] : vector<8x8x8xf32> to vector<8x8xf32>
    %70 = vector.shape_cast %69 : vector<8x8xf32> to vector<8x8x1xf32>
    %71 = tpu.reciprocal %70 {approx = true} : vector<8x8x1xf32> -> vector<8x8x1xf32>
    %72 = vector.broadcast %71 : vector<8x8x1xf32> to vector<8x8x8xf32>
    %73 = arith.mulf %68, %72 : vector<8x8x8xf32>
    %74 = arith.truncf %73 : vector<8x8x8xf32> to vector<8x8x8xbf16>
    "tpu.trace_start"() <{level = 10 : i32, message = "nqk,nkd->nqd"}> : () -> ()
    %cst_22 = arith.constant dense<0.000000e+00> : vector<8x8x8xf32>
    %75 = tpu.matmul %74, %56, %cst_22 {dimension_numbers = #tpu.dot_dimension_numbers<[2], [1], [1], [2], [0, 0, 0, 1, 1, 2], [0], [0]>} : vector<8x8x8xbf16>, vector<8x8x8xbf16>, vector<8x8x8xf32> -> vector<8x8x8xf32>
    "tpu.trace_stop"() : () -> ()
    %76 = vector.shape_cast %75 : vector<8x8x8xf32> to vector<4x16x8xf32>
    %77 = arith.truncf %76 : vector<4x16x8xf32> to vector<4x16x8xbf16>
    "tpu.trace_start"() <{level = 10 : i32, message = "hmd,hdo->hmo"}> : () -> ()
    %cst_23 = arith.constant dense<0.000000e+00> : vector<4x16x32xf32>
    %78 = tpu.matmul %77, %21, %cst_23 {dimension_numbers = #tpu.dot_dimension_numbers<[2], [1], [1], [2], [0, 0, 0, 1, 1, 2], [0], [0]>} : vector<4x16x8xbf16>, vector<4x8x32xbf16>, vector<4x16x32xf32> -> vector<4x16x32xf32>
    "tpu.trace_stop"() : () -> ()
    %cst_24 = arith.constant dense<0.000000e+00> : vector<16x32xf32>
    %79 = vector.multi_reduction <add>, %78, %cst_24 [0] : vector<4x16x32xf32> to vector<16x32xf32>
    %80 = vector.broadcast %23 : vector<1x32xf32> to vector<16x32xf32>
    %81 = arith.addf %79, %80 : vector<16x32xf32>
    %82 = arith.addf %3, %81 : vector<16x32xf32>
    %c0_25 = arith.constant 0 : index
    %c0_26 = arith.constant 0 : index
    %c0_27 = arith.constant 0 : index
    %83 = vector.load %arg7[%c0_25, %c0_26, %c0_27] : memref<1x1x32xf32, #tpu.memory_space<vmem>>, vector<1x1x32xf32>
    %84 = vector.shape_cast %83 : vector<1x1x32xf32> to vector<1x32xf32>
    %c0_28 = arith.constant 0 : index
    %c0_29 = arith.constant 0 : index
    %c0_30 = arith.constant 0 : index
    %85 = vector.load %arg8[%c0_28, %c0_29, %c0_30] : memref<1x1x32xf32, #tpu.memory_space<vmem>>, vector<1x1x32xf32>
    %86 = vector.shape_cast %85 : vector<1x1x32xf32> to vector<1x32xf32>
    %cst_31 = arith.constant dense<0.000000e+00> : vector<16xf32>
    %87 = vector.multi_reduction <add>, %82, %cst_31 [1] : vector<16x32xf32> to vector<16xf32>
    %88 = vector.shape_cast %87 : vector<16xf32> to vector<16x1xf32>
    %cst_32 = arith.constant 3.200000e+01 : f32
    %89 = vector.broadcast %cst_32 : f32 to vector<16x1xf32>
    %90 = arith.divf %88, %89 : vector<16x1xf32>
    %91 = vector.broadcast %90 : vector<16x1xf32> to vector<16x32xf32>
    %92 = arith.subf %82, %91 : vector<16x32xf32>
    %93 = arith.mulf %92, %92 : vector<16x32xf32>
    %cst_33 = arith.constant dense<0.000000e+00> : vector<16xf32>
    %94 = vector.multi_reduction <add>, %93, %cst_33 [1] : vector<16x32xf32> to vector<16xf32>
    %95 = vector.shape_cast %94 : vector<16xf32> to vector<16x1xf32>
    %cst_34 = arith.constant 3.200000e+01 : f32
    %96 = vector.broadcast %cst_34 : f32 to vector<16x1xf32>
    %97 = arith.divf %95, %96 : vector<16x1xf32>
    %cst_35 = arith.constant 9.99999974E-6 : f32
    %98 = vector.broadcast %cst_35 : f32 to vector<16x1xf32>
    %99 = arith.addf %97, %98 : vector<16x1xf32>
    %100 = math.rsqrt %99 : vector<16x1xf32>
    %101 = vector.broadcast %100 : vector<16x1xf32> to vector<16x32xf32>
    %102 = arith.mulf %92, %101 : vector<16x32xf32>
    %103 = vector.broadcast %84 : vector<1x32xf32> to vector<16x32xf32>
    %104 = arith.mulf %102, %103 : vector<16x32xf32>
    %105 = vector.broadcast %86 : vector<1x32xf32> to vector<16x32xf32>
    %106 = arith.addf %104, %105 : vector<16x32xf32>
    %107 = arith.truncf %106 : vector<16x32xf32> to vector<16x32xbf16>
    %c0_36 = arith.constant 0 : index
    %c0_37 = arith.constant 0 : index
    %c0_38 = arith.constant 0 : index
    %108 = vector.load %arg9[%c0_36, %c0_37, %c0_38] : memref<1x32x32xbf16, #tpu.memory_space<vmem>>, vector<1x32x32xbf16>
    %109 = vector.shape_cast %108 : vector<1x32x32xbf16> to vector<32x32xbf16>
    %cst_39 = arith.constant dense<0.000000e+00> : vector<16x32xf32>
    %110 = tpu.matmul %107, %109, %cst_39 {dimension_numbers = #tpu.dot_dimension_numbers<[1], [0], [0], [1], [0, 0, 1, 1], [], []>} : vector<16x32xbf16>, vector<32x32xbf16>, vector<16x32xf32> -> vector<16x32xf32>
    %c0_40 = arith.constant 0 : index
    %c0_41 = arith.constant 0 : index
    %c0_42 = arith.constant 0 : index
    %111 = vector.load %arg10[%c0_40, %c0_41, %c0_42] : memref<1x1x32xf32, #tpu.memory_space<vmem>>, vector<1x1x32xf32>
    %112 = vector.shape_cast %111 : vector<1x1x32xf32> to vector<1x32xf32>
    %113 = vector.broadcast %112 : vector<1x32xf32> to vector<16x32xf32>
    %114 = arith.addf %110, %113 : vector<16x32xf32>
    %c0_43 = arith.constant 0 : index
    %c0_44 = arith.constant 0 : index
    %c0_45 = arith.constant 0 : index
    %115 = vector.load %arg11[%c0_43, %c0_44, %c0_45] : memref<1x32x64xbf16, #tpu.memory_space<vmem>>, vector<1x32x64xbf16>
    %116 = vector.shape_cast %115 : vector<1x32x64xbf16> to vector<32x64xbf16>
    %cst_46 = arith.constant dense<0.000000e+00> : vector<32x64xf32>
    %117 = tpu.matmul %5, %116, %cst_46 {dimension_numbers = #tpu.dot_dimension_numbers<[1], [0], [0], [1], [0, 0, 1, 1], [], []>} : vector<32x32xbf16>, vector<32x64xbf16>, vector<32x64xf32> -> vector<32x64xf32>
    %c0_47 = arith.constant 0 : index
    %c0_48 = arith.constant 0 : index
    %c0_49 = arith.constant 0 : index
    %118 = vector.load %arg12[%c0_47, %c0_48, %c0_49] : memref<1x1x64xf32, #tpu.memory_space<vmem>>, vector<1x1x64xf32>
    %119 = vector.shape_cast %118 : vector<1x1x64xf32> to vector<1x64xf32>
    %120 = vector.broadcast %119 : vector<1x64xf32> to vector<32x64xf32>
    %121 = arith.addf %117, %120 : vector<32x64xf32>
    %122 = vector.extract_strided_slice %121 {offsets = [0, 0], sizes = [32, 32], strides = [1, 1]} : vector<32x64xf32> to vector<32x32xf32>
    %123 = vector.extract_strided_slice %121 {offsets = [0, 32], sizes = [32, 32], strides = [1, 1]} : vector<32x64xf32> to vector<32x32xf32>
    %c0_50 = arith.constant 0 : index
    %c0_51 = arith.constant 0 : index
    %c0_52 = arith.constant 0 : index
    %c0_53 = arith.constant 0 : index
    %124 = vector.load %arg13[%c0_50, %c0_51, %c0_52, %c0_53] : memref<1x4x8x32xbf16, #tpu.memory_space<vmem>>, vector<1x4x8x32xbf16>
    %125 = vector.shape_cast %124 : vector<1x4x8x32xbf16> to vector<4x8x32xbf16>
    %c0_54 = arith.constant 0 : index
    %c0_55 = arith.constant 0 : index
    %c0_56 = arith.constant 0 : index
    %126 = vector.load %arg14[%c0_54, %c0_55, %c0_56] : memref<1x1x32xf32, #tpu.memory_space<vmem>>, vector<1x1x32xf32>
    %127 = vector.shape_cast %126 : vector<1x1x32xf32> to vector<1x32xf32>
    %128 = vector.extract_strided_slice %114 {offsets = [0, 0], sizes = [16, 8], strides = [1, 1]} : vector<16x32xf32> to vector<16x8xf32>
    %129 = vector.extract_strided_slice %114 {offsets = [0, 8], sizes = [16, 8], strides = [1, 1]} : vector<16x32xf32> to vector<16x8xf32>
    %130 = vector.extract_strided_slice %114 {offsets = [0, 16], sizes = [16, 8], strides = [1, 1]} : vector<16x32xf32> to vector<16x8xf32>
    %131 = vector.extract_strided_slice %114 {offsets = [0, 24], sizes = [16, 8], strides = [1, 1]} : vector<16x32xf32> to vector<16x8xf32>
    %132 = vector.shape_cast %128 : vector<16x8xf32> to vector<1x16x8xf32>
    %133 = vector.shape_cast %129 : vector<16x8xf32> to vector<1x16x8xf32>
    %134 = vector.shape_cast %130 : vector<16x8xf32> to vector<1x16x8xf32>
    %135 = vector.shape_cast %131 : vector<16x8xf32> to vector<1x16x8xf32>
    %136 = tpu.concatenate %132, %133, %134, %135 in 0 : vector<1x16x8xf32>, vector<1x16x8xf32>, vector<1x16x8xf32>, vector<1x16x8xf32> -> vector<4x16x8xf32>
    %137 = vector.shape_cast %136 : vector<4x16x8xf32> to vector<8x8x8xf32>
    %138 = arith.truncf %137 : vector<8x8x8xf32> to vector<8x8x8xbf16>
    %139 = vector.extract_strided_slice %122 {offsets = [0, 0], sizes = [32, 8], strides = [1, 1]} : vector<32x32xf32> to vector<32x8xf32>
    %140 = vector.extract_strided_slice %122 {offsets = [0, 8], sizes = [32, 8], strides = [1, 1]} : vector<32x32xf32> to vector<32x8xf32>
    %141 = vector.extract_strided_slice %122 {offsets = [0, 16], sizes = [32, 8], strides = [1, 1]} : vector<32x32xf32> to vector<32x8xf32>
    %142 = vector.extract_strided_slice %122 {offsets = [0, 24], sizes = [32, 8], strides = [1, 1]} : vector<32x32xf32> to vector<32x8xf32>
    %143 = vector.shape_cast %139 : vector<32x8xf32> to vector<1x32x8xf32>
    %144 = vector.shape_cast %140 : vector<32x8xf32> to vector<1x32x8xf32>
    %145 = vector.shape_cast %141 : vector<32x8xf32> to vector<1x32x8xf32>
    %146 = vector.shape_cast %142 : vector<32x8xf32> to vector<1x32x8xf32>
    %147 = tpu.concatenate %143, %144, %145, %146 in 0 : vector<1x32x8xf32>, vector<1x32x8xf32>, vector<1x32x8xf32>, vector<1x32x8xf32> -> vector<4x32x8xf32>
    %148 = vector.shape_cast %147 : vector<4x32x8xf32> to vector<8x16x8xf32>
    %149 = arith.truncf %148 : vector<8x16x8xf32> to vector<8x16x8xbf16>
    %150 = vector.extract_strided_slice %123 {offsets = [0, 0], sizes = [32, 8], strides = [1, 1]} : vector<32x32xf32> to vector<32x8xf32>
    %151 = vector.extract_strided_slice %123 {offsets = [0, 8], sizes = [32, 8], strides = [1, 1]} : vector<32x32xf32> to vector<32x8xf32>
    %152 = vector.extract_strided_slice %123 {offsets = [0, 16], sizes = [32, 8], strides = [1, 1]} : vector<32x32xf32> to vector<32x8xf32>
    %153 = vector.extract_strided_slice %123 {offsets = [0, 24], sizes = [32, 8], strides = [1, 1]} : vector<32x32xf32> to vector<32x8xf32>
    %154 = vector.shape_cast %150 : vector<32x8xf32> to vector<1x32x8xf32>
    %155 = vector.shape_cast %151 : vector<32x8xf32> to vector<1x32x8xf32>
    %156 = vector.shape_cast %152 : vector<32x8xf32> to vector<1x32x8xf32>
    %157 = vector.shape_cast %153 : vector<32x8xf32> to vector<1x32x8xf32>
    %158 = tpu.concatenate %154, %155, %156, %157 in 0 : vector<1x32x8xf32>, vector<1x32x8xf32>, vector<1x32x8xf32>, vector<1x32x8xf32> -> vector<4x32x8xf32>
    %159 = vector.shape_cast %158 : vector<4x32x8xf32> to vector<8x16x8xf32>
    %160 = arith.truncf %159 : vector<8x16x8xf32> to vector<8x16x8xbf16>
    "tpu.trace_start"() <{level = 10 : i32, message = "nqd,nkd->nqk"}> : () -> ()
    %cst_57 = arith.constant dense<0.000000e+00> : vector<8x8x16xf32>
    %161 = tpu.matmul %138, %149, %cst_57 {dimension_numbers = #tpu.dot_dimension_numbers<[2], [2], [1], [1], [0, 0, 0, 1, 1, 1], [0], [0]>} : vector<8x8x8xbf16>, vector<8x16x8xbf16>, vector<8x8x16xf32> -> vector<8x8x16xf32>
    "tpu.trace_stop"() : () -> ()
    %cst_58 = arith.constant 0.353553385 : f32
    %162 = vector.broadcast %cst_58 : f32 to vector<8x8x16xf32>
    %163 = arith.mulf %161, %162 : vector<8x8x16xf32>
    %cst_59 = arith.constant dense<0xFF800000> : vector<8x8xf32>
    %164 = vector.multi_reduction <maximumf>, %163, %cst_59 [2] : vector<8x8x16xf32> to vector<8x8xf32>
    %165 = vector.shape_cast %164 : vector<8x8xf32> to vector<8x8x1xf32>
    %166 = vector.broadcast %165 : vector<8x8x1xf32> to vector<8x8x16xf32>
    %167 = arith.subf %163, %166 : vector<8x8x16xf32>
    %168 = math.exp %167 : vector<8x8x16xf32>
    %cst_60 = arith.constant dense<0.000000e+00> : vector<8x8xf32>
    %169 = vector.multi_reduction <add>, %168, %cst_60 [2] : vector<8x8x16xf32> to vector<8x8xf32>
    %170 = vector.shape_cast %169 : vector<8x8xf32> to vector<8x8x1xf32>
    %171 = tpu.reciprocal %170 {approx = true} : vector<8x8x1xf32> -> vector<8x8x1xf32>
    %172 = vector.broadcast %171 : vector<8x8x1xf32> to vector<8x8x16xf32>
    %173 = arith.mulf %168, %172 : vector<8x8x16xf32>
    %174 = arith.truncf %173 : vector<8x8x16xf32> to vector<8x8x16xbf16>
    "tpu.trace_start"() <{level = 10 : i32, message = "nqk,nkd->nqd"}> : () -> ()
    %cst_61 = arith.constant dense<0.000000e+00> : vector<8x8x8xf32>
    %175 = tpu.matmul %174, %160, %cst_61 {dimension_numbers = #tpu.dot_dimension_numbers<[2], [1], [1], [2], [0, 0, 0, 1, 1, 2], [0], [0]>} : vector<8x8x16xbf16>, vector<8x16x8xbf16>, vector<8x8x8xf32> -> vector<8x8x8xf32>
    "tpu.trace_stop"() : () -> ()
    %176 = vector.shape_cast %175 : vector<8x8x8xf32> to vector<4x16x8xf32>
    %177 = arith.truncf %176 : vector<4x16x8xf32> to vector<4x16x8xbf16>
    "tpu.trace_start"() <{level = 10 : i32, message = "hmd,hdo->hmo"}> : () -> ()
    %cst_62 = arith.constant dense<0.000000e+00> : vector<4x16x32xf32>
    %178 = tpu.matmul %177, %125, %cst_62 {dimension_numbers = #tpu.dot_dimension_numbers<[2], [1], [1], [2], [0, 0, 0, 1, 1, 2], [0], [0]>} : vector<4x16x8xbf16>, vector<4x8x32xbf16>, vector<4x16x32xf32> -> vector<4x16x32xf32>
    "tpu.trace_stop"() : () -> ()
    %cst_63 = arith.constant dense<0.000000e+00> : vector<16x32xf32>
    %179 = vector.multi_reduction <add>, %178, %cst_63 [0] : vector<4x16x32xf32> to vector<16x32xf32>
    %180 = vector.broadcast %127 : vector<1x32xf32> to vector<16x32xf32>
    %181 = arith.addf %179, %180 : vector<16x32xf32>
    %182 = arith.addf %106, %181 : vector<16x32xf32>
    %c0_64 = arith.constant 0 : index
    %c0_65 = arith.constant 0 : index
    %c0_66 = arith.constant 0 : index
    %183 = vector.load %arg15[%c0_64, %c0_65, %c0_66] : memref<1x1x32xf32, #tpu.memory_space<vmem>>, vector<1x1x32xf32>
    %184 = vector.shape_cast %183 : vector<1x1x32xf32> to vector<1x32xf32>
    %c0_67 = arith.constant 0 : index
    %c0_68 = arith.constant 0 : index
    %c0_69 = arith.constant 0 : index
    %185 = vector.load %arg16[%c0_67, %c0_68, %c0_69] : memref<1x1x32xf32, #tpu.memory_space<vmem>>, vector<1x1x32xf32>
    %186 = vector.shape_cast %185 : vector<1x1x32xf32> to vector<1x32xf32>
    %cst_70 = arith.constant dense<0.000000e+00> : vector<16xf32>
    %187 = vector.multi_reduction <add>, %182, %cst_70 [1] : vector<16x32xf32> to vector<16xf32>
    %188 = vector.shape_cast %187 : vector<16xf32> to vector<16x1xf32>
    %cst_71 = arith.constant 3.200000e+01 : f32
    %189 = vector.broadcast %cst_71 : f32 to vector<16x1xf32>
    %190 = arith.divf %188, %189 : vector<16x1xf32>
    %191 = vector.broadcast %190 : vector<16x1xf32> to vector<16x32xf32>
    %192 = arith.subf %182, %191 : vector<16x32xf32>
    %193 = arith.mulf %192, %192 : vector<16x32xf32>
    %cst_72 = arith.constant dense<0.000000e+00> : vector<16xf32>
    %194 = vector.multi_reduction <add>, %193, %cst_72 [1] : vector<16x32xf32> to vector<16xf32>
    %195 = vector.shape_cast %194 : vector<16xf32> to vector<16x1xf32>
    %cst_73 = arith.constant 3.200000e+01 : f32
    %196 = vector.broadcast %cst_73 : f32 to vector<16x1xf32>
    %197 = arith.divf %195, %196 : vector<16x1xf32>
    %cst_74 = arith.constant 9.99999974E-6 : f32
    %198 = vector.broadcast %cst_74 : f32 to vector<16x1xf32>
    %199 = arith.addf %197, %198 : vector<16x1xf32>
    %200 = math.rsqrt %199 : vector<16x1xf32>
    %201 = vector.broadcast %200 : vector<16x1xf32> to vector<16x32xf32>
    %202 = arith.mulf %192, %201 : vector<16x32xf32>
    %203 = vector.broadcast %184 : vector<1x32xf32> to vector<16x32xf32>
    %204 = arith.mulf %202, %203 : vector<16x32xf32>
    %205 = vector.broadcast %186 : vector<1x32xf32> to vector<16x32xf32>
    %206 = arith.addf %204, %205 : vector<16x32xf32>
    %207 = arith.truncf %206 : vector<16x32xf32> to vector<16x32xbf16>
    %c0_75 = arith.constant 0 : index
    %c0_76 = arith.constant 0 : index
    %c0_77 = arith.constant 0 : index
    %208 = vector.load %arg17[%c0_75, %c0_76, %c0_77] : memref<1x32x2048xbf16, #tpu.memory_space<vmem>>, vector<1x32x2048xbf16>
    %209 = vector.shape_cast %208 : vector<1x32x2048xbf16> to vector<32x2048xbf16>
    %cst_78 = arith.constant dense<0.000000e+00> : vector<16x2048xf32>
    %210 = tpu.matmul %207, %209, %cst_78 {dimension_numbers = #tpu.dot_dimension_numbers<[1], [0], [0], [1], [0, 0, 1, 1], [], []>} : vector<16x32xbf16>, vector<32x2048xbf16>, vector<16x2048xf32> -> vector<16x2048xf32>
    %c0_79 = arith.constant 0 : index
    %c0_80 = arith.constant 0 : index
    %c0_81 = arith.constant 0 : index
    %211 = vector.load %arg18[%c0_79, %c0_80, %c0_81] : memref<1x1x2048xf32, #tpu.memory_space<vmem>>, vector<1x1x2048xf32>
    %212 = vector.shape_cast %211 : vector<1x1x2048xf32> to vector<1x2048xf32>
    %213 = vector.broadcast %212 : vector<1x2048xf32> to vector<16x2048xf32>
    %214 = arith.addf %210, %213 : vector<16x2048xf32>
    %cst_82 = arith.constant 0.000000e+00 : f32
    %215 = vector.broadcast %cst_82 : f32 to vector<16x2048xf32>
    %216 = arith.maximumf %214, %215 : vector<16x2048xf32>
    %217 = arith.truncf %216 : vector<16x2048xf32> to vector<16x2048xbf16>
    %c0_83 = arith.constant 0 : index
    %c0_84 = arith.constant 0 : index
    %c0_85 = arith.constant 0 : index
    %218 = vector.load %arg19[%c0_83, %c0_84, %c0_85] : memref<1x2048x32xbf16, #tpu.memory_space<vmem>>, vector<1x2048x32xbf16>
    %219 = vector.shape_cast %218 : vector<1x2048x32xbf16> to vector<2048x32xbf16>
    %cst_86 = arith.constant dense<0.000000e+00> : vector<16x32xf32>
    %220 = tpu.matmul %217, %219, %cst_86 {dimension_numbers = #tpu.dot_dimension_numbers<[1], [0], [0], [1], [0, 0, 1, 1], [], []>} : vector<16x2048xbf16>, vector<2048x32xbf16>, vector<16x32xf32> -> vector<16x32xf32>
    %c0_87 = arith.constant 0 : index
    %c0_88 = arith.constant 0 : index
    %c0_89 = arith.constant 0 : index
    %221 = vector.load %arg20[%c0_87, %c0_88, %c0_89] : memref<1x1x32xf32, #tpu.memory_space<vmem>>, vector<1x1x32xf32>
    %222 = vector.shape_cast %221 : vector<1x1x32xf32> to vector<1x32xf32>
    %223 = vector.broadcast %222 : vector<1x32xf32> to vector<16x32xf32>
    %224 = arith.addf %220, %223 : vector<16x32xf32>
    %225 = arith.addf %206, %224 : vector<16x32xf32>
    %c0_90 = arith.constant 0 : index
    %c0_91 = arith.constant 0 : index
    %c0_92 = arith.constant 0 : index
    %226 = vector.load %arg21[%c0_90, %c0_91, %c0_92] : memref<1x1x32xf32, #tpu.memory_space<vmem>>, vector<1x1x32xf32>
    %227 = vector.shape_cast %226 : vector<1x1x32xf32> to vector<1x32xf32>
    %c0_93 = arith.constant 0 : index
    %c0_94 = arith.constant 0 : index
    %c0_95 = arith.constant 0 : index
    %228 = vector.load %arg22[%c0_93, %c0_94, %c0_95] : memref<1x1x32xf32, #tpu.memory_space<vmem>>, vector<1x1x32xf32>
    %229 = vector.shape_cast %228 : vector<1x1x32xf32> to vector<1x32xf32>
    %cst_96 = arith.constant dense<0.000000e+00> : vector<16xf32>
    %230 = vector.multi_reduction <add>, %225, %cst_96 [1] : vector<16x32xf32> to vector<16xf32>
    %231 = vector.shape_cast %230 : vector<16xf32> to vector<16x1xf32>
    %cst_97 = arith.constant 3.200000e+01 : f32
    %232 = vector.broadcast %cst_97 : f32 to vector<16x1xf32>
    %233 = arith.divf %231, %232 : vector<16x1xf32>
    %234 = vector.broadcast %233 : vector<16x1xf32> to vector<16x32xf32>
    %235 = arith.subf %225, %234 : vector<16x32xf32>
    %236 = arith.mulf %235, %235 : vector<16x32xf32>
    %cst_98 = arith.constant dense<0.000000e+00> : vector<16xf32>
    %237 = vector.multi_reduction <add>, %236, %cst_98 [1] : vector<16x32xf32> to vector<16xf32>
    %238 = vector.shape_cast %237 : vector<16xf32> to vector<16x1xf32>
    %cst_99 = arith.constant 3.200000e+01 : f32
    %239 = vector.broadcast %cst_99 : f32 to vector<16x1xf32>
    %240 = arith.divf %238, %239 : vector<16x1xf32>
    %cst_100 = arith.constant 9.99999974E-6 : f32
    %241 = vector.broadcast %cst_100 : f32 to vector<16x1xf32>
    %242 = arith.addf %240, %241 : vector<16x1xf32>
    %243 = math.rsqrt %242 : vector<16x1xf32>
    %244 = vector.broadcast %243 : vector<16x1xf32> to vector<16x32xf32>
    %245 = arith.mulf %235, %244 : vector<16x32xf32>
    %246 = vector.broadcast %227 : vector<1x32xf32> to vector<16x32xf32>
    %247 = arith.mulf %245, %246 : vector<16x32xf32>
    %248 = vector.broadcast %229 : vector<1x32xf32> to vector<16x32xf32>
    %249 = arith.addf %247, %248 : vector<16x32xf32>
    %c0_101 = arith.constant 0 : index
    %c0_102 = arith.constant 0 : index
    %250 = vector.load %arg26[%c0_101, %c0_102] : memref<16x32xf32, #tpu.memory_space<vmem>>, vector<16x32xf32>
    tpu.vector_store %arg26[%c0_101, %c0_102], %249 {strides = array<i32>} : memref<16x32xf32, #tpu.memory_space<vmem>>, vector<16x32xf32>,
    %c1_i32 = arith.constant 1 : i32
    %251 = arith.cmpi eq, %arg0, %c1_i32 : i32
    %252 = arith.extui %251 : i1 to i32
    %c0_i32_103 = arith.constant 0 : i32
    %253 = arith.cmpi ne, %252, %c0_i32_103 : i32
    scf.if %253 {
      %254 = arith.truncf %249 : vector<16x32xf32> to vector<16x32xbf16>
      %c0_104 = arith.constant 0 : index
      %c0_105 = arith.constant 0 : index
      %255 = vector.load %arg23[%c0_104, %c0_105] : memref<32x128xbf16, #tpu.memory_space<vmem>>, vector<32x128xbf16>
      %cst_106 = arith.constant dense<0.000000e+00> : vector<16x128xf32>
      %256 = tpu.matmul %254, %255, %cst_106 {dimension_numbers = #tpu.dot_dimension_numbers<[1], [0], [0], [1], [0, 0, 1, 1], [], []>} : vector<16x32xbf16>, vector<32x128xbf16>, vector<16x128xf32> -> vector<16x128xf32>
      %c0_107 = arith.constant 0 : index
      %c0_108 = arith.constant 0 : index
      %257 = vector.load %arg24[%c0_107, %c0_108] : memref<1x128xf32, #tpu.memory_space<vmem>>, vector<1x128xf32>
      %258 = vector.broadcast %257 : vector<1x128xf32> to vector<16x128xf32>
      %259 = arith.addf %256, %258 : vector<16x128xf32>
      %c0_109 = arith.constant 0 : index
      %c0_110 = arith.constant 0 : index
      %260 = vector.load %arg25[%c0_109, %c0_110] : memref<16x128xf32, #tpu.memory_space<vmem>>, vector<16x128xf32>
      tpu.vector_store %arg25[%c0_109, %c0_110], %259 {strides = array<i32>} : memref<16x128xf32, #tpu.memory_space<vmem>>, vector<16x128xf32>,
    } else {
    }
    return
  }
  func.func @transform_0(%arg0: i32) -> (i32, i32) {
    %c0_i32 = arith.constant 0 : i32
    %c0_i32_0 = arith.constant 0 : i32
    %c0_i32_1 = arith.constant 0 : i32
    return %c0_i32, %c0_i32_0 : i32, i32
  }
  func.func @transform_1(%arg0: i32) -> (i32, i32) {
    %c0_i32 = arith.constant 0 : i32
    %c0_i32_0 = arith.constant 0 : i32
    %c0_i32_1 = arith.constant 0 : i32
    return %c0_i32, %c0_i32_0 : i32, i32
  }
  func.func @transform_2(%arg0: i32) -> (i32, i32, i32) {
    %c0_i32 = arith.constant 0 : i32
    %c0_i32_0 = arith.constant 0 : i32
    %c0_i32_1 = arith.constant 0 : i32
    return %arg0, %c0_i32, %c0_i32_0 : i32, i32, i32
  }
  func.func @transform_3(%arg0: i32) -> (i32, i32, i32) {
    %c0_i32 = arith.constant 0 : i32
    %c0_i32_0 = arith.constant 0 : i32
    %c0_i32_1 = arith.constant 0 : i32
    return %arg0, %c0_i32, %c0_i32_0 : i32, i32, i32
  }
  func.func @transform_4(%arg0: i32) -> (i32, i32, i32, i32) {
    %c0_i32 = arith.constant 0 : i32
    %c0_i32_0 = arith.constant 0 : i32
    %c0_i32_1 = arith.constant 0 : i32
    %c0_i32_2 = arith.constant 0 : i32
    return %arg0, %c0_i32, %c0_i32_0, %c0_i32_1 : i32, i32, i32, i32
  }
  func.func @transform_5(%arg0: i32) -> (i32, i32, i32) {
    %c0_i32 = arith.constant 0 : i32
    %c0_i32_0 = arith.constant 0 : i32
    %c0_i32_1 = arith.constant 0 : i32
    return %arg0, %c0_i32, %c0_i32_0 : i32, i32, i32
  }
  func.func @transform_6(%arg0: i32) -> (i32, i32, i32) {
    %c0_i32 = arith.constant 0 : i32
    %c0_i32_0 = arith.constant 0 : i32
    %c0_i32_1 = arith.constant 0 : i32
    return %arg0, %c0_i32, %c0_i32_0 : i32, i32, i32
  }
  func.func @transform_7(%arg0: i32) -> (i32, i32, i32) {
    %c0_i32 = arith.constant 0 : i32
    %c0_i32_0 = arith.constant 0 : i32
    %c0_i32_1 = arith.constant 0 : i32
    return %arg0, %c0_i32, %c0_i32_0 : i32, i32, i32
  }
  func.func @transform_8(%arg0: i32) -> (i32, i32, i32) {
    %c0_i32 = arith.constant 0 : i32
    %c0_i32_0 = arith.constant 0 : i32
    %c0_i32_1 = arith.constant 0 : i32
    return %arg0, %c0_i32, %c0_i32_0 : i32, i32, i32
  }
  func.func @transform_9(%arg0: i32) -> (i32, i32, i32) {
    %c0_i32 = arith.constant 0 : i32
    %c0_i32_0 = arith.constant 0 : i32
    %c0_i32_1 = arith.constant 0 : i32
    return %arg0, %c0_i32, %c0_i32_0 : i32, i32, i32
  }
  func.func @transform_10(%arg0: i32) -> (i32, i32, i32) {
    %c0_i32 = arith.constant 0 : i32
    %c0_i32_0 = arith.constant 0 : i32
    %c0_i32_1 = arith.constant 0 : i32
    return %arg0, %c0_i32, %c0_i32_0 : i32, i32, i32
  }
  func.func @transform_11(%arg0: i32) -> (i32, i32, i32) {
    %c0_i32 = arith.constant 0 : i32
    %c0_i32_0 = arith.constant 0 : i32
    %c0_i32_1 = arith.constant 0 : i32
    return %arg0, %c0_i32, %c0_i32_0 : i32, i32, i32
  }
  func.func @transform_12(%arg0: i32) -> (i32, i32, i32, i32) {
    %c0_i32 = arith.constant 0 : i32
    %c0_i32_0 = arith.constant 0 : i32
    %c0_i32_1 = arith.constant 0 : i32
    %c0_i32_2 = arith.constant 0 : i32
    return %arg0, %c0_i32, %c0_i32_0, %c0_i32_1 : i32, i32, i32, i32
  }
  func.func @transform_13(%arg0: i32) -> (i32, i32, i32) {
    %c0_i32 = arith.constant 0 : i32
    %c0_i32_0 = arith.constant 0 : i32
    %c0_i32_1 = arith.constant 0 : i32
    return %arg0, %c0_i32, %c0_i32_0 : i32, i32, i32
  }
  func.func @transform_14(%arg0: i32) -> (i32, i32, i32) {
    %c0_i32 = arith.constant 0 : i32
    %c0_i32_0 = arith.constant 0 : i32
    %c0_i32_1 = arith.constant 0 : i32
    return %arg0, %c0_i32, %c0_i32_0 : i32, i32, i32
  }
  func.func @transform_15(%arg0: i32) -> (i32, i32, i32) {
    %c0_i32 = arith.constant 0 : i32
    %c0_i32_0 = arith.constant 0 : i32
    %c0_i32_1 = arith.constant 0 : i32
    return %arg0, %c0_i32, %c0_i32_0 : i32, i32, i32
  }
  func.func @transform_16(%arg0: i32) -> (i32, i32, i32) {
    %c0_i32 = arith.constant 0 : i32
    %c0_i32_0 = arith.constant 0 : i32
    %c0_i32_1 = arith.constant 0 : i32
    return %arg0, %c0_i32, %c0_i32_0 : i32, i32, i32
  }
  func.func @transform_17(%arg0: i32) -> (i32, i32, i32) {
    %c0_i32 = arith.constant 0 : i32
    %c0_i32_0 = arith.constant 0 : i32
    %c0_i32_1 = arith.constant 0 : i32
    return %arg0, %c0_i32, %c0_i32_0 : i32, i32, i32
  }
  func.func @transform_18(%arg0: i32) -> (i32, i32, i32) {
    %c0_i32 = arith.constant 0 : i32
    %c0_i32_0 = arith.constant 0 : i32
    %c0_i32_1 = arith.constant 0 : i32
    return %arg0, %c0_i32, %c0_i32_0 : i32, i32, i32
  }
  func.func @transform_19(%arg0: i32) -> (i32, i32, i32) {
    %c0_i32 = arith.constant 0 : i32
    %c0_i32_0 = arith.constant 0 : i32
    %c0_i32_1 = arith.constant 0 : i32
    return %arg0, %c0_i32, %c0_i32_0 : i32, i32, i32
  }
  func.func @transform_20(%arg0: i32) -> (i32, i32, i32) {
    %c0_i32 = arith.constant 0 : i32
    %c0_i32_0 = arith.constant 0 : i32
    %c0_i32_1 = arith.constant 0 : i32
    return %arg0, %c0_i32, %c0_i32_0 : i32, i32, i32
  }
  func.func @transform_21(%arg0: i32) -> (i32, i32, i32) {
    %c0_i32 = arith.constant 0 : i32
    %c0_i32_0 = arith.constant 0 : i32
    %c0_i32_1 = arith.constant 0 : i32
    return %arg0, %c0_i32, %c0_i32_0 : i32, i32, i32
  }
  func.func @transform_22(%arg0: i32) -> (i32, i32) {
    %c0_i32 = arith.constant 0 : i32
    %c0_i32_0 = arith.constant 0 : i32
    %c0_i32_1 = arith.constant 0 : i32
    return %c0_i32, %c0_i32_0 : i32, i32
  }
  func.func @transform_23(%arg0: i32) -> (i32, i32) {
    %c0_i32 = arith.constant 0 : i32
    %c0_i32_0 = arith.constant 0 : i32
    %c0_i32_1 = arith.constant 0 : i32
    return %c0_i32, %c0_i32_0 : i32, i32
  }
  func.func @transform_24(%arg0: i32) -> (i32, i32) {
    %c0_i32 = arith.constant 0 : i32
    %c0_i32_0 = arith.constant 0 : i32
    %c0_i32_1 = arith.constant 0 : i32
    return %c0_i32, %c0_i32_0 : i32, i32
  }
}

</mosaic_0001>

<bundles_post_ra>
// kernel: transformer_decoder_forward.1
= control target key start
LH: loop header
LB: loop body
LE: loop exit
PB: predicated region body
PF: predicated region fallthrough
CT: control target
= control target key end

     0   :  { %s8192_s0 = inlined_call_operand.vmem [shape: f32[16,32], index: 0, kind: input, shape index: {}]   ;;  %s8193_s1 = inlined_call_operand.vmem [shape: f32[32,32], index: 1, kind: input, shape index: {}]   ;;  %s8194_s2 = inlined_call_operand.vmem [shape: bf16[2,32,96], index: 2, kind: input, shape index: {}]   ;;  %s8195_s3 = inlined_call_operand.vmem [shape: f32[2,1,96], index: 3, kind: input, shape index: {}]   ;;  %s8196_s4 = inlined_call_operand.vmem [shape: bf16[2,4,8,32], index: 4, kind: input, shape index: {}]   ;;  %s8197_s5 = inlined_call_operand.vmem [shape: f32[2,1,32], index: 5, kind: input, shape index: {}]   ;;  %s8198_s6 = inlined_call_operand.vmem [shape: f32[2,1,32], index: 6, kind: input, shape index: {}]   ;;  %s8199_s7 = inlined_call_operand.vmem [shape: f32[2,1,32], index: 7, kind: input, shape index: {}]   ;;  %s8200_s8 = inlined_call_operand.vmem [shape: bf16[2,32,32], index: 8, kind: input, shape index: {}]   ;;  %s8201_s9 = inlined_call_operand.vmem [shape: f32[2,1,32], index: 9, kind: input, shape index: {}]   ;;  %s8202_s10 = inlined_call_operand.vmem [shape: bf16[2,32,64], index: 10, kind: input, shape index: {}]   ;;  %s8203_s11 = inlined_call_operand.vmem [shape: f32[2,1,64], index: 11, kind: input, shape index: {}]   ;;  %s8204_s12 = inlined_call_operand.vmem [shape: bf16[2,4,8,32], index: 12, kind: input, shape index: {}]   ;;  %s8205_s13 = inlined_call_operand.vmem [shape: f32[2,1,32], index: 13, kind: input, shape index: {}]   ;;  %s8206_s14 = inlined_call_operand.vmem [shape: f32[2,1,32], index: 14, kind: input, shape index: {}]   ;;  %s8207_s15 = inlined_call_operand.vmem [shape: f32[2,1,32], index: 15, kind: input, shape index: {}]   ;;  %s8208_s16 = inlined_call_operand.vmem [shape: bf16[2,32,2048], index: 16, kind: input, shape index: {}]   ;;  %s8209_s17 = inlined_call_operand.vmem [shape: f32[2,1,2048], index: 17, kind: input, shape index: {}]   ;;  %s8210_s18 = inlined_call_operand.vmem [shape: bf16[2,2048,32], index: 18, kind: input, shape index: {}]   ;;  %s8211_s19 = inlined_call_operand.vmem [shape: f32[2,1,32], index: 19, kind: input, shape index: {}]   ;;  %s8212_s20 = inlined_call_operand.vmem [shape: f32[2,1,32], index: 20, kind: input, shape index: {}]   ;;  %s8213_s21 = inlined_call_operand.vmem [shape: f32[2,1,32], index: 21, kind: input, shape index: {}]   ;;  %s8214_s22 = inlined_call_operand.vmem [shape: bf16[32,128], index: 22, kind: input, shape index: {}]   ;;  %s8215_s23 = inlined_call_operand.vmem [shape: f32[1,128], index: 23, kind: input, shape index: {}]   ;;  %s8216_s24 = inlined_call_operand.vmem [shape: f32[16,128], index: 24, kind: output, shape index: {}]  }
   0x1   :  { %8225 = sst [smem:[#allocation7_spill]] %s8192_s0 }
   0x2   :  { %8226 = sst [smem:[#allocation8_spill]] %s8193_s1 }
   0x3   :  { %8227 = sst [smem:[#allocation9_spill]] %s8194_s2 }
   0x4   :  { %8228 = sst [smem:[#allocation10_spill]] %s8195_s3 }
   0x5   :  { %8229 = sst [smem:[#allocation11_spill]] %s8196_s4 }
   0x6   :  { %8230 = sst [smem:[#allocation12_spill]] %s8197_s5  ;;  %s7255_s5 = smov 0  }
   0x7   :  { %8231 = sst [smem:[#allocation13_spill]] %s8198_s6 }
   0x8   :  { %8232 = sst [smem:[#allocation14_spill]] %s8199_s7 }
   0x9   :  { %8233 = sst [smem:[#allocation15_spill]] %s8200_s8 }
   0xa   :  { %8234 = sst [smem:[#allocation16_spill]] %s8202_s10 }
   0xb   :  { %8235 = sst [smem:[#allocation17_spill]] %s8204_s12 }
   0xc   :  { %8236 = sst [smem:[#allocation18_spill]] %s8208_s16 }
   0xd   :  { %8237 = sst [smem:[#allocation19_spill]] %s8209_s17 }
   0xe   :  { %8238 = sst [smem:[#allocation20_spill]] %s8212_s20 }
   0xf   :  { %8239 = sst [smem:[#allocation21_spill]] %s8213_s21 }
  0x10   :  { %8240 = sst [smem:[#allocation22_spill]] %s8214_s22 }
  0x11   :  { %8241 = sst [smem:[#allocation23_spill]] %s8215_s23 }
  0x12   :  { %8242 = sst [smem:[#allocation24_spill]] %s8216_s24 }
  0x13 LB: > { %8243 = sst [smem:[#allocation3_spill]] %s7118_s5  ;;  %s7261_s26 = sadd.s32 4294967295, %s7118_s5   ;;  %s7118_s5 = sphi %s7255_s5, %s34_s5  }
  0x14   : > { %8244 = sst [smem:[#allocation4_spill]] %s7261_s26  ;;  %p6018_p0 = scmp.ge.s32.totalorder %s7118_s5, 1 }
  0x15   : > { %p822_p1 = scmp.lt.s32.totalorder %s7118_s5, 3 }
  0x17   : > { %p823_p2 = pnand %p6018_p0, %p822_p1 }
  0x19   : > { %826 = sbr.rel (%p823_p2) target bundleno = 4633 (0x1219), region = 116 }
  0x20   : > { %p953_p3 = scmp.lt.s32.totalorder %s7261_s26, 1  ;;  %s8246_s3 = sld [smem:[#allocation9_spill]] }
  0x21   : > { %s8248_s1 = sld [smem:[#allocation11_spill]]  ;;  %s8253_s8 = sld [smem:[#allocation15_spill]] }
  0x22   : > { %s7267_s27 = scalar_select %p953_p3, %s7261_s26, 1 }
  0x23   : > { %s8254_s10 = sld [smem:[#allocation16_spill]]  ;;  %s8255_s12 = sld [smem:[#allocation17_spill]] }
  0x24   : > { %s6272_s28 = sshll.u32 %s7267_s27, 4  ;;  %s6277_s26 = sshll.u32 %s7267_s27, 8 }
  0x25   : > { %s8256_s16 = sld [smem:[#allocation18_spill]]  ;;  %s8257_s17 = sld [smem:[#allocation19_spill]] }
  0x26   : > { %s7277_s25 = scalar_lea.vmem %s8246_s3, %s6272_s28  ;;  %s6278_s3 = sshll.u32 %s7267_s27, 10 }
  0x27   : > { %8247 = sst [smem:[#allocation5_spill]] %s7277_s25  ;;  %s7282_s5 = scalar_lea.vmem %s8248_s1, %s6272_s28 }
  0x28   : > { %8249 = sst [smem:[#allocation6_spill]] %s7282_s5  ;;  %s7299_s4 = scalar_lea.vmem %s8253_s8, %s6272_s28 }
  0x29   : > { %s7308_s20 = scalar_lea.vmem %s8254_s10, %s6272_s28  ;;  %s7317_s25 = scalar_lea.vmem %s8255_s12, %s6272_s28 }
  0x2a   : > { %s1021_s5 = scalar_lea.vmem %s8211_s19, %s7267_s27  ;;  %s7350_s22 = scalar_lea.vmem %s8210_s18, %s6278_s3 }
  0x2b   : > { %s7335_s0 = scalar_lea.vmem %s8256_s16, %s6277_s26  ;;  %s7340_s10 = scalar_lea.vmem %s8257_s17, %s6272_s28 }
  0x2c   : > { %s8258_s21 = sld [smem:[#allocation20_spill]]  ;;  %s8259_s16 = sld [smem:[#allocation21_spill]] }
  0x2d   : > { %s8260_s28 = sld [smem:[#allocation4_spill]] }
  0x32   : > { %s1024_s26 = scalar_lea.vmem %s8258_s21, %s7267_s27  ;;  %s1027_s29 = scalar_lea.vmem %s8259_s16, %s7267_s27 }
  0x33   : > { %p6034_p4 = scmp.ne.s32.totalorder %s8260_s28, 0 }
  0x34   : > { %s8261_s30 = sld [smem:[#allocation7_spill]] (!%p6034_p4)  ;;  %vm1035_vm0 = vcmask (!%p6034_p4), 261120  }
  0x35   : > { %1032 = sbr.rel (%p6034_p4) target bundleno = 60 (0x3c), region = 120 }
  0x3a   : > { %v1033_v0 = vld [vmem:[%s8261_s30] sm:$0xff] (!%p6034_p4)  ;;  %v1034_v1 = vld [vmem:[%s8261_s30 + $0x8] sm:$0xff] (!%p6034_p4) }
  0x3b   : > { %1036 = vst.msk [vmem:[#allocation2] sm:$0xff] (!%p6034_p4), %vm1035_vm0, %v1033_v0  ;;  %1037 = vst.msk [vmem:[#allocation2 + $0x8] sm:$0xff] (!%p6034_p4), %vm1035_vm0, %v1034_v1 }
  0x3c PF: > { %s8262_s2 = sld [smem:[#allocation5_spill]]  ;;  %v7120_v3 = vmov 0.0   ;;  %vm7121_vm1 = vmmov 0   ;;  %vm1075_vm2 = vcmask 261120   ;;  %s7122_s1 = smov 104   ;;  %vm1156_vm3 = vcmask 64512  }
  0x3d   : > { %6548 = vmatprep.subr.bf16.mxu0 %v7120_v3  ;;  %6556 = vmatprep.subr.bf16.mxu1 %v7120_v3  ;;  %s8263_s17 = sld [smem:[#allocation10_spill]]  ;;  %s7123_s24 = smov 120   ;;  %vm1665_vm4 = vcmask 1043456   ;;  %v1046_v53 = vlaneseq  ;;  %vm2909_vm6 = vcmask 130048  }
  0x3e   : > { %6552 = vmatprep.mubr.msk.bf16.mxu0 %vm7121_vm1, %v7120_v3  ;;  %6558 = vmatprep.mubr.msk.bf16.mxu1 %vm7121_vm1, %v7120_v3  ;;  %s7124_s21 = smov 96   ;;  %s7125_s6 = smov 112  }
  0x3f   : > { %s7126_s28 = smov 64   ;;  %v7466_v54 = vshrl.u32 %v1046_v53, 7  ;;  %v1049_v55 = vand.u32 127, %v1046_v53  ;;  %s8267_s7 = sld [smem:[#allocation6_spill]] }
  0x40   : > { %s8273_s8 = sld [smem:[#allocation14_spill]] }
  0x41   : > { %vm7469_vm5 = vcmp.le.s32.totalorder %v1049_v55, %v7466_v54 }
  0x42   : > { %v6898_v2 = vld [vmem:[%s8262_s2] sm:$0xff]   ;;  %v6899_v4 = vld [vmem:[%s8262_s2 + $0x8] sm:$0xff]   ;;  %s8268_s2 = sld [smem:[#allocation12_spill]] }
  0x43   : > { %6549 = vmatpush3.bf16.msra.mxu0 %v6898_v2  ;;  %v1038_v5 = vld [vmem:[#allocation2] sm:$0xff]  ;;  %v1039_v6 = vld [vmem:[#allocation2 + $0x8] sm:$0xff]  ;;  %s8264_s3 = scalar_lea.vmem %s8263_s17, %s7267_s27  ;;  %s8271_s17 = sld [smem:[#allocation13_spill]] }
  0x44   : > { %6550 = vmatprep.subr.bf16.mxu0 %v7120_v3  ;;  %v1051_v7 = vpack.c.bf16 %v1039_v6, %v1038_v5  ;;  %v6035_v8 = vld [vmem:[%s8264_s3] ss:$0 sm:$0xff]  ;;  %s8270_s3 = sld [smem:[#allocation8_spill]] }
  0x46   : > { %s8274_s23 = scalar_lea.vmem %s8273_s8, %s7267_s27 }
  0x47   : > { %6551 = vmatpush3.bf16.msra.mxu0 %v6899_v4 }
  0x48   : > { %6562 = vmatprep.subr.bf16.mxu0 %v7120_v3  ;;  %s8269_s12 = scalar_lea.vmem %s8268_s2, %s7267_s27 }
  0x4a   : > { %6553 = vmatmul.mubr.msk.bf16.vlgmr.msra.gmra.mrb[0].mxu0 %vm1075_vm2, %v1051_v7 }
  0x4b   : > { %6564 = vmatprep.mubr.msk.bf16.mxu0 %vm7121_vm1, %v7120_v3 }
 0x11d   : > { %v1113_v9 = vpop.f32.mrb[0].mxu0 }
 0x11e   : > { %v6554_v10 = vpop.f32.mrb[1].mxu0  ;;  %v1114_v12 = vadd.f32 %v6035_v8, %v1113_v9 }
 0x11f   : > { %v1116_v11 = vpop.f32.mrb[2].mxu0 }
 0x120   : > { %v1117_v13 = vadd.f32 %v6035_v8, %v1116_v11  ;;  %v6555_v14 = vpop.f32.mrb[3].mxu0  ;;  %v1145_v16 = vpack.c.bf16 %v1114_v12, %v1114_v12 }
 0x122   : > { %v6848_v15 = vpack.i.bf16 %v1117_v13, %v1114_v12  ;;  %v1146_v17 = vpack.c.bf16 %v1117_v13, %v1117_v13 }
 0x124   : > { %6849 = vrot.lane.b32.xlu1 %v6848_v15, %s7122_s1  ;;  %6839 = vrot.lane.b32.xlu0 %v6848_v15, %s7123_s24 }
 0x128   : > { %1154 = vrot.lane.b32.xlu1 %v1145_v16, %s7124_s21  ;;  %6844 = vrot.lane.b32.xlu0 %v6848_v15, %s7125_s6 }
 0x12c   : > { %1204 = vrot.lane.b32.xlu0 %v1146_v17, %s7124_s21 }
 0x196   : > { %v6850_v18 = vpop.permute.xlu1 %6849  ;;  %v6840_v19 = vpop.permute.xlu0 %6839 }
 0x197   : > { %v6842_v20 = vunpack.i.h.bf16 %v6840_v19  ;;  %v6841_v21 = vunpack.i.l.bf16 %v6840_v19  ;;  %v6851_v29 = vunpack.i.l.bf16 %v6850_v18  ;;  %v6852_v32 = vunpack.i.h.bf16 %v6850_v18 }
 0x199   : > { %v7390_v22 = vpack.c.bf16 %v6842_v20, %v6842_v20  ;;  %v7392_v23 = vpack.c.bf16 %v6841_v21, %v6841_v21  ;;  %v7409_v35 = vpack.c.bf16 %v6851_v29, %v6851_v29  ;;  %v7412_v36 = vpack.c.bf16 %v6852_v32, %v6852_v32 }
 0x19a   : > { %v1155_v24 = vpop.permute.xlu1 %1154  ;;  %v6845_v25 = vpop.permute.xlu0 %6844 }
 0x19b   : > { %v6847_v26 = vunpack.i.h.bf16 %v6845_v25  ;;  %v6846_v27 = vunpack.i.l.bf16 %v6845_v25  ;;  %1253 = vrot.lane.b32.xlu1 %v7392_v23, %s7124_s21  ;;  %1302 = vrot.lane.b32.xlu0 %v7390_v22, %s7124_s21  ;;  %v1161_v28 = vsel %vm1156_vm3, %v1155_v24, 0 }
 0x19c   : > { %6557 = vmatpush3.bf16.xpose.msra.mxu1 %v1161_v28 }
 0x19d   : > { %v7399_v30 = vpack.c.bf16 %v6847_v26, %v6847_v26  ;;  %v7401_v31 = vpack.c.bf16 %v6846_v27, %v6846_v27  ;;  %6568 = vmatprep.subr.bf16.mxu1 %v7120_v3 }
 0x19e   : > { %v1205_v33 = vpop.permute.xlu0 %1204 }
 0x19f   : > { %v1210_v34 = vsel %vm1156_vm3, %v1205_v33, 0  ;;  %1351 = vrot.lane.b32.xlu1 %v7401_v31, %s7124_s21  ;;  %1400 = vrot.lane.b32.xlu0 %v7399_v30, %s7124_s21 }
 0x1a0   : > { %6563 = vmatpush3.bf16.xpose.msra.mxu0 %v1210_v34 }
 0x1a1   : > { %6574 = vmatprep.subr.bf16.mxu0 %v7120_v3 }
 0x1a3   : > { %6559 = vmatmul.mubr.msk.bf16.vlgmr.msra.gmra.mrb[0].mxu1 %vm1156_vm3, %v1145_v16  ;;  %1449 = vrot.lane.b32.xlu1 %v7409_v35, %s7124_s21 }
 0x1a4   : > { %1498 = vrot.lane.b32.xlu0 %v7412_v36, %s7124_s21  ;;  %6570 = vmatprep.mubr.msk.bf16.mxu1 %vm7121_vm1, %v7120_v3 }
 0x1a7   : > { %1709 = vrot.lane.b32.xlu1 %v1146_v17, %s7126_s28  ;;  %6565 = vmatmul.mubr.msk.bf16.vlgmr.msra.gmra.mrb[4].mxu0 %vm1156_vm3, %v1146_v17 }
 0x1a8   : > { %1660 = vrot.lane.b32.xlu0 %v1145_v16, %s7126_s28  ;;  %6576 = vmatprep.mubr.msk.bf16.mxu0 %vm7121_vm1, %v7120_v3 }
 0x20d   : > { %v1254_v37 = vpop.permute.xlu1 %1253  ;;  %v1303_v38 = vpop.permute.xlu0 %1302 }
 0x20e   : > { %v1259_v39 = vsel %vm1156_vm3, %v1254_v37, 0  ;;  %v1308_v40 = vsel %vm1156_vm3, %v1303_v38, 0 }
 0x20f   : > { %6569 = vmatpush3.bf16.xpose.msra.mxu1 %v1259_v39  ;;  %6575 = vmatpush3.bf16.xpose.msra.mxu0 %v1308_v40 }
 0x210   : > { %6580 = vmatprep.subr.bf16.mxu1 %v7120_v3  ;;  %6586 = vmatprep.subr.bf16.mxu0 %v7120_v3 }
 0x211   : > { %v1352_v41 = vpop.permute.xlu1 %1351  ;;  %v1401_v42 = vpop.permute.xlu0 %1400 }
 0x212   : > { %v1357_v43 = vsel %vm1156_vm3, %v1352_v41, 0  ;;  %v1406_v44 = vsel %vm1156_vm3, %v1401_v42, 0 }
 0x215   : > { %v1450_v45 = vpop.permute.xlu1 %1449 }
 0x216   : > { %6571 = vmatmul.mubr.msk.bf16.vlgmr.msra.gmra.mrb[4].mxu1 %vm1156_vm3, %v7392_v23  ;;  %6577 = vmatmul.mubr.msk.bf16.vlgmr.msra.gmra.mrb[8].mxu0 %vm1156_vm3, %v7390_v22  ;;  %v1499_v46 = vpop.permute.xlu0 %1498  ;;  %v1455_v47 = vsel %vm1156_vm3, %v1450_v45, 0 }
 0x217   : > { %6581 = vmatpush3.bf16.xpose.msra.mxu1 %v1357_v43  ;;  %6587 = vmatpush3.bf16.xpose.msra.mxu0 %v1406_v44  ;;  %v1504_v48 = vsel %vm1156_vm3, %v1499_v46, 0 }
 0x218   : > { %6582 = vmatprep.mubr.msk.bf16.mxu1 %vm7121_vm1, %v7120_v3  ;;  %6588 = vmatprep.mubr.msk.bf16.mxu0 %vm7121_vm1, %v7120_v3 }
 0x219   : > { %6592 = vmatprep.subr.bf16.mxu1 %v7120_v3  ;;  %6598 = vmatprep.subr.bf16.mxu0 %v7120_v3  ;;  %v1710_v49 = vpop.permute.xlu1 %1709 }
 0x21a   : > { %v1661_v50 = vpop.permute.xlu0 %1660  ;;  %v1715_v51 = vsel %vm1665_vm4, %v1710_v49, 0 }
 0x21b   : > { %v1667_v52 = vsel %vm1665_vm4, %v1661_v50, 0 }
 0x21e   : > { %6583 = vmatmul.mubr.msk.bf16.vlgmr.msra.gmra.mrb[8].mxu1 %vm1156_vm3, %v7401_v31  ;;  %6589 = vmatmul.mubr.msk.bf16.vlgmr.msra.gmra.mrb[12].mxu0 %vm1156_vm3, %v7399_v30 }
 0x21f   : > { %6593 = vmatpush3.bf16.xpose.msra.mxu1 %v1455_v47  ;;  %6599 = vmatpush3.bf16.xpose.msra.mxu0 %v1504_v48 }
 0x220   : > { %6594 = vmatprep.mubr.msk.bf16.mxu1 %vm7121_vm1, %v7120_v3  ;;  %6600 = vmatprep.mubr.msk.bf16.mxu0 %vm7121_vm1, %v7120_v3 }
 0x221   : > { %6604 = vmatprep.subr.bf16.mxu1 %v7120_v3  ;;  %6610 = vmatprep.subr.bf16.mxu0 %v7120_v3 }
 0x226   : > { %6595 = vmatmul.mubr.msk.bf16.vlgmr.msra.gmra.mrb[12].mxu1 %vm1156_vm3, %v7409_v35  ;;  %6601 = vmatmul.mubr.msk.bf16.vlgmr.msra.gmra.mrb[16].mxu0 %vm1156_vm3, %v7412_v36 }
 0x227   : > { %6605 = vmatpush3.bf16.msra.mxu1 %v1667_v52  ;;  %6611 = vmatpush3.bf16.msra.mxu0 %v1715_v51 }
 0x228   : > { %6606 = vmatprep.mubr.msk.bf16.mxu1 %vm7121_vm1, %v7120_v3  ;;  %6612 = vmatprep.mubr.msk.bf16.mxu0 %vm7121_vm1, %v7120_v3 }
 0x229   : > { %6616 = vmatprep.subr.bf16.mxu1 %v7120_v3  ;;  %6622 = vmatprep.subr.bf16.mxu0 %v7120_v3 }
 0x276   : > { %v1197_v56 = vpop.f32.mrb[0].mxu1 }
 0x277   : > { %v1546_v58 = vmul.f32 0.35355338, %v1197_v56  ;;  %v6560_v59 = vpop.f32.mrb[1].mxu1 }
 0x278   : > { %v1200_v60 = vpop.f32.mrb[2].mxu1 }
 0x279   : > { %v6561_v61 = vpop.f32.mrb[3].mxu1  ;;  %v7475_v62 = vsel %vm7469_vm5, %v1546_v58, -1e+30 }
 0x27a   : > { %v1246_v63 = vpop.f32.mrb[4].mxu0  ;;  %v1564_v0 = vsel %vm1156_vm3, %v7475_v62, -inf }
 0x27b   : > { %v1547_v1 = vmul.f32 0.35355338, %v1246_v63  ;;  %1565 = vmax.xlane.f32.xlu1 %v1564_v0  ;;  %v6566_v2 = vpop.f32.mrb[5].mxu0 }
 0x27c   : > { %v1249_v4 = vpop.f32.mrb[6].mxu0 }
 0x27d   : > { %v6567_v5 = vpop.f32.mrb[7].mxu0  ;;  %v1557_v6 = vsel %vm7469_vm5, %v1547_v1, -1e+30 }
 0x27e   : > { %v1567_v7 = vsel %vm1156_vm3, %v1557_v6, -inf }
 0x27f   : > { %1568 = vmax.xlane.f32.xlu0 %v1567_v7 }
 0x2e9   : > { %v1295_v8 = vpop.f32.mrb[4].mxu1  ;;  %v1344_v9 = vpop.f32.mrb[8].mxu0 }
 0x2ea   : > { %v1548_v10 = vmul.f32 0.35355338, %v1295_v8  ;;  %v1549_v11 = vmul.f32 0.35355338, %v1344_v9  ;;  %v6572_v12 = vpop.f32.mrb[5].mxu1  ;;  %v6578_v13 = vpop.f32.mrb[9].mxu0 }
 0x2eb   : > { %v1298_v14 = vpop.f32.mrb[6].mxu1  ;;  %v1347_v15 = vpop.f32.mrb[10].mxu0 }
 0x2ec   : > { %v6573_v16 = vpop.f32.mrb[7].mxu1  ;;  %v6579_v17 = vpop.f32.mrb[11].mxu0  ;;  %v1558_v18 = vsel %vm7469_vm5, %v1548_v10, -1e+30  ;;  %v1559_v19 = vsel %vm7469_vm5, %v1549_v11, -1e+30 }
 0x2ed   : > { %v1570_v20 = vsel %vm1156_vm3, %v1558_v18, -inf  ;;  %v1573_v21 = vsel %vm1156_vm3, %v1559_v19, -inf }
 0x2ee   : > { %1571 = vmax.xlane.f32.xlu0 %v1570_v20  ;;  %1574 = vmax.xlane.f32.xlu1 %v1573_v21 }
 0x2f1   : > { %v1393_v24 = vpop.f32.mrb[8].mxu1  ;;  %v1442_v25 = vpop.f32.mrb[12].mxu0 }
 0x2f2   : > { %v1550_v26 = vmul.f32 0.35355338, %v1393_v24  ;;  %v1551_v27 = vmul.f32 0.35355338, %v1442_v25  ;;  %v6584_v28 = vpop.f32.mrb[9].mxu1  ;;  %v6590_v29 = vpop.f32.mrb[13].mxu0 }
 0x2f3   : > { %v1396_v32 = vpop.f32.mrb[10].mxu1  ;;  %v1445_v33 = vpop.f32.mrb[14].mxu0 }
 0x2f4   : > { %v6585_v34 = vpop.f32.mrb[11].mxu1  ;;  %v6591_v37 = vpop.f32.mrb[15].mxu0  ;;  %v7490_v38 = vsel %vm7469_vm5, %v1550_v26, -1e+30  ;;  %v1561_v39 = vsel %vm7469_vm5, %v1551_v27, -1e+30 }
 0x2f5   : > { %v1576_v40 = vsel %vm1156_vm3, %v7490_v38, -inf  ;;  %v1579_v41 = vsel %vm1156_vm3, %v1561_v39, -inf }
 0x2f6   : > { %1577 = vmax.xlane.f32.xlu0 %v1576_v40  ;;  %1580 = vmax.xlane.f32.xlu1 %v1579_v41 }
 0x2f9   : > { %v1491_v42 = vpop.f32.mrb[12].mxu1  ;;  %v1540_v43 = vpop.f32.mrb[16].mxu0 }
 0x2fa   : > { %v1552_v44 = vmul.f32 0.35355338, %v1491_v42  ;;  %v1553_v45 = vmul.f32 0.35355338, %v1540_v43  ;;  %v6596_v46 = vpop.f32.mrb[13].mxu1  ;;  %v6602_v47 = vpop.f32.mrb[17].mxu0 }
 0x2fb   : > { %v1494_v48 = vpop.f32.mrb[14].mxu1  ;;  %v1543_v49 = vpop.f32.mrb[18].mxu0 }
 0x2fc   : > { %v6597_v50 = vpop.f32.mrb[15].mxu1  ;;  %v6603_v51 = vpop.f32.mrb[19].mxu0  ;;  %v1562_v52 = vsel %vm7469_vm5, %v1552_v44, -1e+30  ;;  %v1563_v53 = vsel %vm7469_vm5, %v1553_v45, -1e+30 }
 0x2fd   : > { %v1582_v55 = vsel %vm1156_vm3, %v1562_v52, -inf  ;;  %v1585_v56 = vsel %vm1156_vm3, %v1563_v53, -inf }
 0x2fe   : > { %1583 = vmax.xlane.f32.xlu0 %v1582_v55  ;;  %1586 = vmax.xlane.f32.xlu1 %v1585_v56 }
 0x308   : > { %v1566_v58 = vpop.xlane.xlu1 %1565 }
 0x309   : > { %v1588_v60 = vsub.f32 %v7475_v62, %v1566_v58 }
 0x30b   : > { %v1596_v63 = vmul.f32 1.442695, %v1588_v60 }
 0x30c   : > { %v1569_v59 = vpop.xlane.xlu0 %1568 }
 0x30d   : > { %v1589_v61 = vsub.f32 %v1557_v6, %v1569_v59  ;;  %7032 = vpow2.f32 %v1596_v63 }
 0x30f   : > { %1757 = vrot.lane.b32.xlu1 %v7392_v23, %s7126_s28  ;;  %v1598_v57 = vmul.f32 1.442695, %v1589_v61 }
 0x311   : > { %7034 = vpow2.f32 %v1598_v57 }
 0x314   : > { %1805 = vrot.lane.b32.xlu0 %v7390_v22, %s7126_s28 }
 0x317   : > { %v7033_v0 = vpop.eup %7032 }
 0x318   : > { %v1612_v2 = vsel %vm1156_vm3, %v7033_v0, 0.0 }
 0x31b   : > { %v7035_v1 = vpop.eup %7034 }
 0x31c   : > { %v1615_v4 = vsel %vm1156_vm3, %v7035_v1, 0.0 }
 0x333   : > { %1613 = vadd.xlane.f32.xlu0 %v1612_v2  ;;  %1616 = vadd.xlane.f32.xlu1 %v1615_v4 }
 0x344   : > { %1853 = vrot.lane.b32.xlu1 %v7401_v31, %s7126_s28 }
 0x37b   : > { %v1572_v22 = vpop.xlane.xlu0 %1571  ;;  %v1575_v23 = vpop.xlane.xlu1 %1574 }
 0x37c   : > { %v1590_v5 = vsub.f32 %v1558_v18, %v1572_v22  ;;  %v1591_v62 = vsub.f32 %v1559_v19, %v1575_v23 }
 0x37e   : > { %v1600_v6 = vmul.f32 1.442695, %v1590_v5  ;;  %v1602_v7 = vmul.f32 1.442695, %v1591_v62 }
 0x380   : > { %7036 = vpow2.f32 %v1600_v6 }
 0x381   : > { %7038 = vpow2.f32 %v1602_v7 }
 0x383   : > { %v1581_v8 = vpop.xlane.xlu1 %1580  ;;  %v1578_v21 = vpop.xlane.xlu0 %1577 }
 0x384   : > { %v1593_v9 = vsub.f32 %v1561_v39, %v1581_v8  ;;  %v1592_v24 = vsub.f32 %v7490_v38, %v1578_v21 }
 0x386   : > { %v1606_v10 = vmul.f32 1.442695, %v1593_v9  ;;  %v1604_v26 = vmul.f32 1.442695, %v1592_v24 }
 0x388   : > { %7040 = vpow2.f32 %v1606_v10 }
 0x38a   : > { %v7512_v11 = vpop.eup %7036 }
 0x38b   : > { %v7514_v12 = vpop.eup %7038  ;;  %v1587_v13 = vpop.xlane.xlu1 %1586  ;;  %v1618_v31 = vsel %vm1156_vm3, %v7512_v11, 0.0 }
 0x38c   : > { %v1595_v14 = vsub.f32 %v1563_v53, %v1587_v13  ;;  %1619 = vadd.xlane.f32.xlu0 %v1618_v31  ;;  %v1621_v15 = vsel %vm1156_vm3, %v7514_v12, 0.0  ;;  %v1584_v25 = vpop.xlane.xlu0 %1583  ;;  %v1120_v13 = vld [vmem:[%s8267_s7] sm:$0xf] }
 0x38d   : > { %1622 = vadd.xlane.f32.xlu1 %v1621_v15  ;;  %v1594_v27 = vsub.f32 %v1562_v52, %v1584_v25  ;;  %v1121_v15 = vld [vmem:[%s8267_s7 + $0x4] sm:$0xf] }
 0x38e   : > { %v1610_v16 = vmul.f32 1.442695, %v1595_v14  ;;  %v2053_v14 = vsel %vm1665_vm4, %v1120_v13, 0 }
 0x38f   : > { %v1608_v28 = vmul.f32 1.442695, %v1594_v27  ;;  %v1758_v32 = vpop.permute.xlu1 %1757 }
 0x390   : > { %7042 = vpow2.f32 %v1610_v16  ;;  %v1806_v29 = vpop.permute.xlu0 %1805  ;;  %v1763_v45 = vsel %vm1665_vm4, %v1758_v32, 0  ;;  %v2100_v16 = vsel %vm1665_vm4, %v1121_v15, 0  ;;  %v1123_v32 = vld [vmem:[%s8267_s7 + $0xc] sm:$0xf] }
 0x391   : > { %7044 = vpow2.f32 %v1604_v26  ;;  %v1811_v46 = vsel %vm1665_vm4, %v1806_v29, 0 }
 0x392   : > { %v7520_v17 = vpop.eup %7040  ;;  %7046 = vpow2.f32 %v1608_v28  ;;  %v1122_v28 = vld [vmem:[%s8267_s7 + $0x8] sm:$0xf] }
 0x393   : > { %v1627_v18 = vsel %vm1156_vm3, %v7520_v17, 0.0  ;;  %v2147_v29 = vsel %vm1665_vm4, %v1122_v28, 0 }
 0x394   : > { %1628 = vadd.xlane.f32.xlu1 %v1627_v18 }
 0x39a   : > { %v7524_v19 = vpop.eup %7042 }
 0x39b   : > { %v1633_v20 = vsel %vm1156_vm3, %v7524_v19, 0.0  ;;  %v7533_v33 = vpop.eup %7044 }
 0x39c   : > { %1634 = vadd.xlane.f32.xlu1 %v1633_v20  ;;  %v7537_v39 = vpop.eup %7046 }
 0x3a2   : > { %1901 = vrot.lane.b32.xlu0 %v7399_v30, %s7126_s28  ;;  %v1624_v30 = vsel %vm1156_vm3, %v7533_v33, 0.0 }
 0x3ad   : > { %1949 = vrot.lane.b32.xlu1 %v7409_v35, %s7126_s28  ;;  %v1630_v35 = vsel %vm1156_vm3, %v7537_v39, 0.0 }
 0x3c0   : > { %v1614_v34 = vpop.xlane.xlu0 %1613  ;;  %v1617_v37 = vpop.xlane.xlu1 %1616 }
 0x3c1   : > { %7048 = vrcp.f32 %v1614_v34  ;;  %1625 = vadd.xlane.f32.xlu0 %v1624_v30 }
 0x3c2   : > { %7050 = vrcp.f32 %v1617_v37 }
 0x3c4   : > { %v1854_v47 = vpop.permute.xlu1 %1853 }
 0x3c5   : > { %1631 = vadd.xlane.f32.xlu0 %v1630_v35  ;;  %v1859_v60 = vsel %vm1665_vm4, %v1854_v47, 0 }
 0x3cb   : > { %v7049_v38 = vpop.eup %7048 }
 0x3cc   : > { %v7051_v40 = vpop.eup %7050  ;;  %v1644_v41 = vmul.f32 %v7049_v38, %v7033_v0  ;;  %v2194_v38 = vsel %vm1665_vm4, %v1123_v32, 0  ;;  %v7108_v32 = vld [vmem:[#allocation2] sm:$0xff] }
 0x3cd   : > { %v1645_v42 = vmul.f32 %v7051_v40, %v7035_v1 }
 0x3ce   : > { %v1652_v43 = vpack.c.bf16 %v1644_v41, %v1644_v41 }
 0x3cf   : > { %v1653_v44 = vpack.c.bf16 %v1645_v42, %v1645_v42 }
 0x3d0   : > { %6607 = vmatmul.mubr.msk.bf16.vlgmr.msra.gmra.mrb[16].mxu1 %vm1156_vm3, %v1652_v43 }
 0x3d1   : > { %6613 = vmatmul.mubr.msk.bf16.vlgmr.msra.gmra.mrb[20].mxu0 %vm1156_vm3, %v1653_v44  ;;  %6617 = vmatpush3.bf16.msra.mxu1 %v1763_v45 }
 0x3d2   : > { %6623 = vmatpush3.bf16.msra.mxu0 %v1811_v46  ;;  %6618 = vmatprep.mubr.msk.bf16.mxu1 %vm7121_vm1, %v7120_v3 }
 0x3d3   : > { %6624 = vmatprep.mubr.msk.bf16.mxu0 %vm7121_vm1, %v7120_v3  ;;  %6628 = vmatprep.subr.bf16.mxu1 %v7120_v3 }
 0x3d4   : > { %6634 = vmatprep.subr.bf16.mxu0 %v7120_v3 }
 0x3db   : > { %1997 = vrot.lane.b32.xlu0 %v7412_v36, %s7126_s28  ;;  %s8278_s28 = scalar_lea.vmem %s8206_s14, %s7267_s27 }
 0x419   : > { %v1620_v48 = vpop.xlane.xlu0 %1619 }
 0x41a   : > { %7052 = vrcp.f32 %v1620_v48  ;;  %v1623_v49 = vpop.xlane.xlu1 %1622 }
 0x41b   : > { %7054 = vrcp.f32 %v1623_v49 }
 0x41d   : > { %v1902_v56 = vpop.permute.xlu0 %1901 }
 0x41e   : > { %v1907_v36 = vsel %vm1665_vm4, %v1902_v56, 0 }
 0x421   : > { %v1629_v50 = vpop.xlane.xlu1 %1628 }
 0x422   : > { %7056 = vrcp.f32 %v1629_v50 }
 0x424   : > { %v7053_v51 = vpop.eup %7052 }
 0x425   : > { %v7055_v52 = vpop.eup %7054  ;;  %v1646_v53 = vmul.f32 %v7053_v51, %v7512_v11 }
 0x426   : > { %v1647_v55 = vmul.f32 %v7055_v52, %v7514_v12 }
 0x427   : > { %v1654_v58 = vpack.c.bf16 %v1646_v53, %v1646_v53 }
 0x428   : > { %v1655_v59 = vpack.c.bf16 %v1647_v55, %v1647_v55 }
 0x429   : > { %6619 = vmatmul.mubr.msk.bf16.vlgmr.msra.gmra.mrb[20].mxu1 %vm1156_vm3, %v1654_v58  ;;  %v1635_v0 = vpop.xlane.xlu1 %1634 }
 0x42a   : > { %6625 = vmatmul.mubr.msk.bf16.vlgmr.msra.gmra.mrb[24].mxu0 %vm1156_vm3, %v1655_v59  ;;  %6629 = vmatpush3.bf16.msra.mxu1 %v1859_v60  ;;  %7058 = vrcp.f32 %v1635_v0 }
 0x42b   : > { %6635 = vmatpush3.bf16.msra.mxu0 %v1907_v36  ;;  %6636 = vmatprep.mubr.msk.bf16.mxu0 %vm7121_vm1, %v7120_v3 }
 0x42c   : > { %6646 = vmatprep.subr.bf16.mxu0 %v7120_v3  ;;  %6630 = vmatprep.mubr.msk.bf16.mxu1 %vm7121_vm1, %v7120_v3  ;;  %v7057_v61 = vpop.eup %7056 }
 0x42d   : > { %6640 = vmatprep.subr.bf16.mxu1 %v7120_v3  ;;  %v1649_v63 = vmul.f32 %v7057_v61, %v7520_v17  ;;  %v1950_v8 = vpop.permute.xlu1 %1949 }
 0x42e   : > { %v1955_v11 = vsel %vm1665_vm4, %v1950_v8, 0 }
 0x42f   : > { %v1657_v57 = vpack.c.bf16 %v1649_v63, %v1649_v63 }
 0x432   : > { %6637 = vmatmul.mubr.msk.bf16.vlgmr.msra.gmra.mrb[28].mxu0 %vm1156_vm3, %v1657_v57 }
 0x433   : > { %6648 = vmatprep.mubr.msk.bf16.mxu0 %vm7121_vm1, %v7120_v3 }
 0x434   : > { %v7059_v2 = vpop.eup %7058 }
 0x435   : > { %v1651_v22 = vmul.f32 %v7059_v2, %v7524_v19 }
 0x437   : > { %v1659_v6 = vpack.c.bf16 %v1651_v22, %v1651_v22 }
 0x44e   : > { %v1626_v1 = vpop.xlane.xlu0 %1625 }
 0x44f   : > { %7060 = vrcp.f32 %v1626_v1 }
 0x452   : > { %v1632_v4 = vpop.xlane.xlu0 %1631 }
 0x453   : > { %7062 = vrcp.f32 %v1632_v4 }
 0x456   : > { %v1998_v23 = vpop.permute.xlu0 %1997 }
 0x457   : > { %v2003_v5 = vsel %vm1665_vm4, %v1998_v23, 0 }
 0x458   : > { %6647 = vmatpush3.bf16.msra.mxu0 %v2003_v5 }
 0x459   : > { %v7061_v62 = vpop.eup %7060  ;;  %6658 = vmatprep.subr.bf16.mxu0 %v7120_v3 }
 0x45a   : > { %v1648_v7 = vmul.f32 %v7061_v62, %v7533_v33 }
 0x45b   : > { %6649 = vmatmul.mubr.msk.bf16.vlgmr.msra.gmra.mrb[32].mxu0 %vm1156_vm3, %v1659_v6 }
 0x45c   : > { %v1656_v9 = vpack.c.bf16 %v1648_v7, %v1648_v7  ;;  %6660 = vmatprep.mubr.msk.bf16.mxu0 %vm7121_vm1, %v7120_v3  ;;  %6659 = vmatpush3.bf16.msra.mxu0 %v2100_v16 }
 0x45d   : > { %v7063_v10 = vpop.eup %7062  ;;  %6670 = vmatprep.subr.bf16.mxu0 %v7120_v3 }
 0x45e   : > { %6631 = vmatmul.mubr.msk.bf16.vlgmr.msra.gmra.mrb[24].mxu1 %vm1156_vm3, %v1656_v9  ;;  %v1650_v12 = vmul.f32 %v7063_v10, %v7537_v39 }
 0x45f   : > { %6641 = vmatpush3.bf16.msra.mxu1 %v1955_v11  ;;  %6642 = vmatprep.mubr.msk.bf16.mxu1 %vm7121_vm1, %v7120_v3 }
 0x460   : > { %6652 = vmatprep.subr.bf16.mxu1 %v7120_v3  ;;  %v1658_v31 = vpack.c.bf16 %v1650_v12, %v1650_v12 }
 0x466   : > { %6643 = vmatmul.mubr.msk.bf16.vlgmr.msra.gmra.mrb[28].mxu1 %vm1156_vm3, %v1658_v31 }
 0x467   : > { %6653 = vmatpush3.bf16.msra.mxu1 %v2053_v14  ;;  %6654 = vmatprep.mubr.msk.bf16.mxu1 %vm7121_vm1, %v7120_v3 }
 0x468   : > { %6664 = vmatprep.subr.bf16.mxu1 %v7120_v3 }
 0x4a3   : > { %v1703_v17 = vpop.f32.mrb[16].mxu1 }
 0x4a4   : > { %v1751_v18 = vpop.f32.mrb[20].mxu0  ;;  %v6608_v19 = vpop.f32.mrb[17].mxu1 }
 0x4a5   : > { %v2045_v20 = vpack.c.bf16 %v1751_v18, %v1703_v17  ;;  %v6614_v21 = vpop.f32.mrb[21].mxu0  ;;  %v1706_v24 = vpop.f32.mrb[18].mxu1  ;;  %v6059_v18 = vld [vmem:[%s8269_s12] ss:$0 sm:$0xff] }
 0x4a6   : > { %v1754_v25 = vpop.f32.mrb[22].mxu0  ;;  %v6609_v26 = vpop.f32.mrb[19].mxu1 }
 0x4a7   : > { %v6615_v27 = vpop.f32.mrb[23].mxu0  ;;  %6655 = vmatmul.mubr.msk.bf16.vlgmr.msra.gmra.mrb[32].mxu1 %vm1156_vm3, %v2045_v20 }
 0x4a8   : > { %6666 = vmatprep.mubr.msk.bf16.mxu1 %vm7121_vm1, %v7120_v3  ;;  %6665 = vmatpush3.bf16.msra.mxu1 %v2147_v29 }
 0x4a9   : > { %6676 = vmatprep.subr.bf16.mxu1 %v7120_v3 }
 0x4fc   : > { %v1799_v33 = vpop.f32.mrb[20].mxu1 }
 0x4fd   : > { %v1847_v34 = vpop.f32.mrb[24].mxu0  ;;  %v6620_v37 = vpop.f32.mrb[21].mxu1 }
 0x4fe   : > { %v2046_v30 = vpack.c.bf16 %v1847_v34, %v1799_v33  ;;  %v6626_v39 = vpop.f32.mrb[25].mxu0  ;;  %v1802_v35 = vpop.f32.mrb[22].mxu1  ;;  %v7109_v37 = vld [vmem:[#allocation2 + $0x8] sm:$0xff] }
 0x4ff   : > { %v1850_v40 = vpop.f32.mrb[26].mxu0  ;;  %v6621_v41 = vpop.f32.mrb[23].mxu1 }
 0x500   : > { %v6627_v42 = vpop.f32.mrb[27].mxu0  ;;  %6661 = vmatmul.mubr.msk.bf16.vlgmr.msra.gmra.mrb[36].mxu0 %vm1156_vm3, %v2046_v30 }
 0x501   : > { %6671 = vmatpush3.bf16.msra.mxu0 %v2194_v38  ;;  %6672 = vmatprep.mubr.msk.bf16.mxu0 %vm7121_vm1, %v7120_v3 }
 0x505   : > { %v1943_v43 = vpop.f32.mrb[28].mxu0 }
 0x506   : > { %v6638_v44 = vpop.f32.mrb[29].mxu0 }
 0x507   : > { %v1946_v45 = vpop.f32.mrb[30].mxu0 }
 0x508   : > { %v6639_v46 = vpop.f32.mrb[31].mxu0 }
 0x52e   : > { %v2039_v47 = vpop.f32.mrb[32].mxu0 }
 0x52f   : > { %v6650_v48 = vpop.f32.mrb[33].mxu0 }
 0x530   : > { %v2042_v49 = vpop.f32.mrb[34].mxu0  ;;  %v6900_v48 = vld [vmem:[%s7308_s20] sm:$0xff]  }
 0x531   : > { %v1895_v50 = vpop.f32.mrb[24].mxu1  ;;  %v6651_v51 = vpop.f32.mrb[35].mxu0  ;;  %6684 = vmatprep.subr.bf16.mxu0 %v6900_v48  ;;  %v6901_v49 = vld [vmem:[%s7308_s20 + $0x8] sm:$0xff]   ;;  %s8275_s20 = scalar_lea.vmem %s8203_s11, %s7267_s27 }
 0x532   : > { %v2047_v52 = vpack.c.bf16 %v1943_v43, %v1895_v50  ;;  %v6632_v53 = vpop.f32.mrb[25].mxu1  ;;  %v1040_v50 = vld [vmem:[%s8270_s3] sm:$0xff]  ;;  %v1041_v51 = vld [vmem:[%s8270_s3 + $0x8] sm:$0xff] }
 0x533   : > { %v1898_v55 = vpop.f32.mrb[26].mxu1  ;;  %v1042_v53 = vld [vmem:[%s8270_s3 + $0x10] sm:$0xff] }
 0x534   : > { %v6633_v56 = vpop.f32.mrb[27].mxu1  ;;  %6667 = vmatmul.mubr.msk.bf16.vlgmr.msra.gmra.mrb[36].mxu1 %vm1156_vm3, %v2047_v52  ;;  %v1044_v52 = vpack.c.bf16 %v1041_v51, %v1040_v50  ;;  %v1043_v55 = vld [vmem:[%s8270_s3 + $0x18] sm:$0xff] }
 0x535   : > { %6680 = vmatprep.mubr.msk.bf16.mxu1 %vm7121_vm1, %v7120_v3  ;;  %v1045_v56 = vpack.c.bf16 %v1043_v55, %v1042_v53 }
 0x539   : > { %v1991_v58 = vpop.f32.mrb[28].mxu1 }
 0x53a   : > { %v2048_v59 = vpack.c.bf16 %v2039_v47, %v1991_v58  ;;  %v6644_v60 = vpop.f32.mrb[29].mxu1  ;;  %v6902_v58 = vld [vmem:[%s7299_s4] sm:$0xff]  }
 0x53b   : > { %v1994_v36 = vpop.f32.mrb[30].mxu1  ;;  %6677 = vmatpush3.bf16.msra.mxu1 %v6902_v58 }
 0x53c   : > { %v6645_v61 = vpop.f32.mrb[31].mxu1  ;;  %6673 = vmatmul.mubr.msk.bf16.vlgmr.msra.gmra.mrb[40].mxu0 %vm1156_vm3, %v2048_v59  ;;  %v6903_v59 = vld [vmem:[%s7299_s4 + $0x8] sm:$0xff]   ;;  %6678 = vmatprep.subr.bf16.mxu1 %v7120_v3  ;;  %s8272_s4 = scalar_lea.vmem %s8271_s17, %s7267_s27  ;;  %s8282_s17 = sld [smem:[#allocation4_spill]] }
 0x53d   : > { %6685 = vmatpush3.bf16.msra.mxu0 %v6900_v48  ;;  %6688 = vmatprep.mubr.msk.bf16.mxu0 %vm1075_vm2, %v1044_v52 }
 0x53e   : > { %6686 = vmatprep.subr.bf16.mxu0 %v6901_v49 }
 0x53f   : > { %6679 = vmatpush3.bf16.msra.mxu1 %v6903_v59 }
 0x540   : > { %6692 = vmatprep.subr.bf16.mxu1 %v7120_v3 }
 0x541   : > { %6687 = vmatpush3.bf16.msra.mxu0 %v6901_v49 }
 0x542   : > { %6698 = vmatprep.subr.bf16.mxu0 %v7120_v3  ;;  %p6265_p5 = scmp.ne.s32.totalorder %s8282_s17, 1 }
 0x543   : > { %vm7129_vm7 = vmmov (!%p6265_p5), 0   ;;  %s8285_s7 = sld [smem:[#allocation24_spill]] (!%p6265_p5) }
 0x544   : > { %6689 = vmatmul.mubr.msk.bf16.vlgmr.msra.gmra.mrb[44].mxu0 %vm1075_vm2, %v1045_v56 }
 0x545   : > { %6700 = vmatprep.mubr.msk.bf16.mxu0 %vm7121_vm1, %v7120_v3 }
 0x57a   : > { %v2089_v63 = vpop.f32.mrb[32].mxu1 }
 0x57b   : > { %v6656_v57 = vpop.f32.mrb[33].mxu1  ;;  %v2237_v4 = vsel %vm1075_vm2, %v2089_v63, 0.0 }
 0x57c   : > { %v2092_v0 = vpop.f32.mrb[34].mxu1 }
 0x57d   : > { %v6657_v1 = vpop.f32.mrb[35].mxu1  ;;  %v2244_v6 = vsel %vm1075_vm2, %v2092_v0, 0.0 }
 0x5d3   : > { %v2136_v2 = vpop.f32.mrb[36].mxu0 }
 0x5d4   : > { %v2238_v22 = vsel %vm1075_vm2, %v2136_v2, 0.0  ;;  %v6662_v23 = vpop.f32.mrb[37].mxu0  ;;  %v6060_v2 = vld [vmem:[%s8272_s4] ss:$0 sm:$0xff]  ;;  %s8276_s4 = scalar_lea.vmem %s8201_s9, %s7267_s27 }
 0x5d5   : > { %v2239_v5 = vadd.f32 %v2238_v22, %v2237_v4  ;;  %v2139_v62 = vpop.f32.mrb[38].mxu0 }
 0x5d6   : > { %v2245_v7 = vsel %vm1075_vm2, %v2139_v62, 0.0  ;;  %v6663_v8 = vpop.f32.mrb[39].mxu0  ;;  %v6061_v62 = vld [vmem:[%s8274_s23] ss:$0 sm:$0xff]  ;;  %s8279_s23 = scalar_lea.vmem %s8207_s15, %s7267_s27 }
 0x5d7   : > { %v2246_v9 = vadd.f32 %v2245_v7, %v2244_v6 }
 0x607   : > { %v2183_v10 = vpop.f32.mrb[36].mxu1 }
 0x608   : > { %v2240_v11 = vsel %vm1075_vm2, %v2183_v10, 0.0  ;;  %v6668_v12 = vpop.f32.mrb[37].mxu1  ;;  %v6066_v10 = vld [vmem:[%s8275_s20] ss:$0 sm:$0xff] }
 0x609   : > { %v2241_v13 = vadd.f32 %v2240_v11, %v2239_v5  ;;  %v2186_v31 = vpop.f32.mrb[38].mxu1 }
 0x60a   : > { %v2247_v14 = vsel %vm1075_vm2, %v2186_v31, 0.0  ;;  %v6669_v15 = vpop.f32.mrb[39].mxu1 }
 0x60b   : > { %v2248_v16 = vadd.f32 %v2247_v14, %v2246_v9 }
 0x60f   : > { %v2230_v17 = vpop.f32.mrb[40].mxu0 }
 0x610   : > { %v2242_v19 = vsel %vm1075_vm2, %v2230_v17, 0.0  ;;  %v6674_v20 = vpop.f32.mrb[41].mxu0 }
 0x611   : > { %v2243_v21 = vadd.f32 %v2242_v19, %v2241_v13  ;;  %v2233_v24 = vpop.f32.mrb[42].mxu0 }
 0x612   : > { %v2249_v25 = vsel %vm1075_vm2, %v2233_v24, 0.0  ;;  %v6675_v26 = vpop.f32.mrb[43].mxu0 }
 0x613   : > { %v2257_v27 = vadd.f32 %v6059_v18, %v2243_v21  ;;  %v2250_v28 = vadd.f32 %v2249_v25, %v2248_v16 }
 0x615   : > { %v2258_v29 = vadd.f32 %v6059_v18, %v2250_v28  ;;  %v2259_v33 = vadd.f32 %v7108_v32, %v2257_v27 }
 0x617   : > { %v2263_v34 = vsel %vm1075_vm2, %v2259_v33, 0.0  ;;  %v2260_v30 = vadd.f32 %v7109_v37, %v2258_v29  ;;  %v6690_v11 = vpop.f32.mrb[44].mxu0 }
 0x618   : > { %2264 = vadd.xlane.f32.xlu1 %v2263_v34  ;;  %v2446_v12 = vadd.f32 %v6690_v11, %v6066_v10  ;;  %v2437_v13 = vpop.f32.mrb[45].mxu0  ;;  %v6062_v34 = vld [vmem:[%s8276_s4] ss:$0 sm:$0xff] }
 0x619   : > { %v2266_v39 = vsel %vm1075_vm2, %v2260_v30, 0.0  ;;  %v2438_v31 = vadd.f32 %v6066_v10, %v2437_v13  ;;  %v6691_v14 = vpop.f32.mrb[46].mxu0 }
 0x61a   : > { %2267 = vadd.xlane.f32.xlu0 %v2266_v39  ;;  %v2449_v15 = vadd.f32 %v6691_v14, %v6066_v10  ;;  %v2440_v16 = vpop.f32.mrb[47].mxu0 }
 0x61b   : > { %v2441_v17 = vadd.f32 %v6066_v10, %v2440_v16 }
 0x61c   : > { %v6858_v18 = vpack.i.bf16 %v2449_v15, %v2446_v12  ;;  %v7670_v19 = vpack.c.bf16 %v2449_v15, %v2446_v12 }
 0x61d   : > { %v6853_v20 = vpack.i.bf16 %v2441_v17, %v2438_v31  ;;  %v2525_v21 = vpack.c.bf16 %v2441_v17, %v2438_v31 }
 0x61e   : > { %v2583_v24 = vsel %vm1156_vm3, %v7670_v19, 0 }
 0x61f   : > { %v2537_v25 = vsel %vm1156_vm3, %v2525_v21, 0  ;;  %6699 = vmatpush3.bf16.xpose.msra.mxu0 %v2583_v24 }
 0x620   : > { %6710 = vmatprep.subr.bf16.mxu0 %v7120_v3 }
 0x6a5   : > { %v2265_v35 = vpop.xlane.xlu1 %2264 }
 0x6a6   : > { %v2270_v38 = vmul.f32 0.03125, %v2265_v35 }
 0x6a7   : > { %v2268_v40 = vpop.xlane.xlu0 %2267 }
 0x6a8   : > { %v2272_v41 = vsub.f32 %v2259_v33, %v2270_v38  ;;  %v2271_v42 = vmul.f32 0.03125, %v2268_v40 }
 0x6aa   : > { %v2273_v43 = vsub.f32 %v2260_v30, %v2271_v42  ;;  %v2274_v44 = vmul.f32 %v2272_v41, %v2272_v41 }
 0x6ac   : > { %v2276_v45 = vsel %vm1075_vm2, %v2274_v44, 0.0  ;;  %v2275_v46 = vmul.f32 %v2273_v43, %v2273_v43 }
 0x6ad   : > { %2277 = vadd.xlane.f32.xlu0 %v2276_v45 }
 0x6ae   : > { %v2279_v47 = vsel %vm1075_vm2, %v2275_v46, 0.0 }
 0x6af   : > { %2280 = vadd.xlane.f32.xlu1 %v2279_v47 }
 0x6c0   : > { %6859 = vrot.lane.b32.xlu1 %v6858_v18, %s7123_s24 }
 0x6c3   : > { %6854 = vrot.lane.b32.xlu0 %v6853_v20, %s7123_s24 }
 0x6c7   : > { %6864 = vrot.lane.b32.xlu0 %v6853_v20, %s7125_s6 }
 0x73a   : > { %v2278_v60 = vpop.xlane.xlu0 %2277 }
 0x73b   : > { %v2282_v36 = vmul.f32 0.03125, %v2278_v60 }
 0x73c   : > { %v2281_v61 = vpop.xlane.xlu1 %2280 }
 0x73d   : > { %v2284_v63 = vadd.f32 1e-05, %v2282_v36  ;;  %v2283_v57 = vmul.f32 0.03125, %v2281_v61 }
 0x73e   : > { %v6855_v27 = vpop.permute.xlu0 %6854 }
 0x73f   : > { %7064 = vrsqrt.f32 %v2284_v63  ;;  %v2285_v0 = vadd.f32 1e-05, %v2283_v57  ;;  %v6857_v28 = vunpack.i.h.bf16 %v6855_v27  ;;  %v6856_v29 = vunpack.i.l.bf16 %v6855_v27 }
 0x740   : > { %v6860_v26 = vpop.permute.xlu1 %6859 }
 0x741   : > { %7066 = vrsqrt.f32 %v2285_v0  ;;  %v6862_v32 = vunpack.i.h.bf16 %v6860_v26  ;;  %v6861_v33 = vunpack.i.l.bf16 %v6860_v26  ;;  %v7685_v37 = vpack.c.bf16 %v6857_v28, %v6856_v29 }
 0x742   : > { %v6865_v48 = vpop.permute.xlu0 %6864 }
 0x743   : > { %v7687_v39 = vpack.c.bf16 %v6862_v32, %v6861_v33  ;;  %v2629_v44 = vsel %vm1156_vm3, %v7685_v37, 0  ;;  %v6867_v49 = vunpack.i.h.bf16 %v6865_v48  ;;  %v6866_v50 = vunpack.i.l.bf16 %v6865_v48 }
 0x745   : > { %v2675_v45 = vsel %vm1156_vm3, %v7687_v39, 0  ;;  %v7708_v52 = vpack.c.bf16 %v6867_v49, %v6866_v50 }
 0x747   : > { %v2721_v57 = vsel %vm1156_vm3, %v7708_v52, 0 }
 0x749   : > { %v7065_v1 = vpop.eup %7064 }
 0x74a   : > { %v2288_v4 = vmul.f32 %v7065_v1, %v2272_v41 }
 0x74b   : > { %v7067_v22 = vpop.eup %7066 }
 0x74c   : > { %v2296_v23 = vmul.f32 %v6060_v2, %v2288_v4  ;;  %v2289_v5 = vmul.f32 %v7067_v22, %v2273_v43 }
 0x74e   : > { %v2297_v6 = vmul.f32 %v6060_v2, %v2289_v5  ;;  %v7656_v7 = vadd.f32 %v6061_v62, %v2296_v23 }
 0x750   : > { %v7658_v8 = vadd.f32 %v6061_v62, %v2297_v6 }
 0x752   : > { %v2306_v9 = vpack.c.bf16 %v7658_v8, %v7656_v7 }
 0x754   : > { %6681 = vmatmul.mubr.msk.bf16.vlgmr.msra.gmra.mrb[40].mxu1 %vm1075_vm2, %v2306_v9 }
 0x755   : > { %6694 = vmatprep.mubr.msk.bf16.mxu1 %vm7121_vm1, %v7120_v3  ;;  %6693 = vmatpush3.bf16.xpose.msra.mxu1 %v2537_v25 }
 0x756   : > { %6704 = vmatprep.subr.bf16.mxu1 %v7120_v3 }
 0x827   : > { %v2367_v30 = vpop.f32.mrb[40].mxu1 }
 0x828   : > { %v2368_v35 = vadd.f32 %v6062_v34, %v2367_v30  ;;  %v6682_v38 = vpop.f32.mrb[41].mxu1 }
 0x829   : > { %v2370_v40 = vpop.f32.mrb[42].mxu1 }
 0x82a   : > { %v2477_v41 = vpack.c.bf16 %v2368_v35, %v2368_v35  ;;  %v2371_v42 = vadd.f32 %v6062_v34, %v2370_v40  ;;  %v6683_v43 = vpop.f32.mrb[43].mxu1 }
 0x82c   : > { %v2478_v46 = vpack.c.bf16 %v2371_v42, %v2371_v42  ;;  %6695 = vmatmul.mubr.msk.bf16.vlgmr.msra.gmra.mrb[44].mxu1 %vm1156_vm3, %v2477_v41  ;;  %v6868_v47 = vpack.i.bf16 %v2371_v42, %v2368_v35 }
 0x82d   : > { %6705 = vmatpush3.bf16.xpose.msra.mxu1 %v2629_v44  ;;  %6706 = vmatprep.mubr.msk.bf16.mxu1 %vm7121_vm1, %v7120_v3 }
 0x82e   : > { %6869 = vrot.lane.b32.xlu1 %v6868_v47, %s7123_s24  ;;  %6701 = vmatmul.mubr.msk.bf16.vlgmr.msra.gmra.mrb[48].mxu0 %vm1156_vm3, %v2478_v46  ;;  %s8277_s24 = scalar_lea.vmem %s8205_s13, %s7267_s27 }
 0x82f   : > { %6884 = vrot.lane.b32.xlu0 %v6868_v47, %s7125_s6  ;;  %6711 = vmatpush3.bf16.xpose.msra.mxu0 %v2675_v45 }
 0x830   : > { %6712 = vmatprep.mubr.msk.bf16.mxu0 %vm7121_vm1, %v7120_v3  ;;  %6716 = vmatprep.subr.bf16.mxu1 %v7120_v3 }
 0x831   : > { %6722 = vmatprep.subr.bf16.mxu0 %v7120_v3 }
 0x832   : > { %6874 = vrot.lane.b32.xlu1 %v6858_v18, %s7125_s6 }
 0x833   : > { %6889 = vrot.lane.b32.xlu0 %v6858_v18, %s7122_s1 }
 0x836   : > { %6879 = vrot.lane.b32.xlu1 %v6853_v20, %s7122_s1 }
 0x83a   : > { %6894 = vrot.lane.b32.xlu1 %v6868_v47, %s7122_s1 }
 0x83e   : > { %3007 = vrot.lane.b32.xlu1 %v2525_v21, %s7124_s21 }
 0x8a0   : > { %v6870_v51 = vpop.permute.xlu1 %6869 }
 0x8a1   : > { %v6872_v53 = vunpack.i.h.bf16 %v6870_v51  ;;  %v6871_v55 = vunpack.i.l.bf16 %v6870_v51  ;;  %v6885_v56 = vpop.permute.xlu0 %6884 }
 0x8a2   : > { %v6886_v0 = vunpack.i.l.bf16 %v6885_v56  ;;  %v6887_v6 = vunpack.i.h.bf16 %v6885_v56 }
 0x8a3   : > { %v2480_v58 = vpack.c.bf16 %v6872_v53, %v6872_v53  ;;  %v2479_v59 = vpack.c.bf16 %v6871_v55, %v6871_v55 }
 0x8a4   : > { %v6875_v60 = vpop.permute.xlu1 %6874  ;;  %v2481_v9 = vpack.c.bf16 %v6886_v0, %v6886_v0  ;;  %v2482_v31 = vpack.c.bf16 %v6887_v6, %v6887_v6 }
 0x8a5   : > { %v6877_v36 = vunpack.i.h.bf16 %v6875_v60  ;;  %v6876_v61 = vunpack.i.l.bf16 %v6875_v60  ;;  %v6890_v63 = vpop.permute.xlu0 %6889  ;;  %6707 = vmatmul.mubr.msk.bf16.vlgmr.msra.gmra.mrb[48].mxu1 %vm1156_vm3, %v2479_v59  ;;  %6713 = vmatmul.mubr.msk.bf16.vlgmr.msra.gmra.mrb[52].mxu0 %vm1156_vm3, %v2480_v58 }
 0x8a6   : > { %6717 = vmatpush3.bf16.xpose.msra.mxu1 %v2721_v57  ;;  %6718 = vmatprep.mubr.msk.bf16.mxu1 %vm7121_vm1, %v7120_v3  ;;  %v6892_v2 = vunpack.i.h.bf16 %v6890_v63  ;;  %v6891_v22 = vunpack.i.l.bf16 %v6890_v63 }
 0x8a7   : > { %v7716_v1 = vpack.c.bf16 %v6877_v36, %v6876_v61  ;;  %6728 = vmatprep.subr.bf16.mxu1 %v7120_v3  ;;  %6724 = vmatprep.mubr.msk.bf16.mxu0 %vm7121_vm1, %v7120_v3 }
 0x8a8   : > { %v6880_v4 = vpop.permute.xlu1 %6879  ;;  %v7726_v12 = vpack.c.bf16 %v6892_v2, %v6891_v22 }
 0x8a9   : > { %v6882_v23 = vunpack.i.h.bf16 %v6880_v4  ;;  %v6881_v5 = vunpack.i.l.bf16 %v6880_v4  ;;  %v2767_v62 = vsel %vm1156_vm3, %v7716_v1, 0 }
 0x8aa   : > { %6723 = vmatpush3.bf16.xpose.msra.mxu0 %v2767_v62  ;;  %v2859_v15 = vsel %vm1156_vm3, %v7726_v12, 0 }
 0x8ab   : > { %v7723_v10 = vpack.c.bf16 %v6882_v23, %v6881_v5  ;;  %6734 = vmatprep.subr.bf16.mxu0 %v7120_v3 }
 0x8ac   : > { %v6895_v11 = vpop.permute.xlu1 %6894 }
 0x8ad   : > { %6719 = vmatmul.mubr.msk.bf16.vlgmr.msra.gmra.mrb[52].mxu1 %vm1156_vm3, %v2481_v9  ;;  %v2813_v13 = vsel %vm1156_vm3, %v7723_v10, 0  ;;  %v6896_v14 = vunpack.i.l.bf16 %v6895_v11  ;;  %v6897_v16 = vunpack.i.h.bf16 %v6895_v11 }
 0x8ae   : > { %6729 = vmatpush3.bf16.xpose.msra.mxu1 %v2813_v13  ;;  %6730 = vmatprep.mubr.msk.bf16.mxu1 %vm7121_vm1, %v7120_v3 }
 0x8af   : > { %6740 = vmatprep.subr.bf16.mxu1 %v7120_v3  ;;  %v2483_v17 = vpack.c.bf16 %v6896_v14, %v6896_v14  ;;  %v2484_v20 = vpack.c.bf16 %v6897_v16, %v6897_v16 }
 0x8b0   : > { %v3008_v18 = vpop.permute.xlu1 %3007 }
 0x8b1   : > { %6725 = vmatmul.mubr.msk.bf16.vlgmr.msra.gmra.mrb[56].mxu0 %vm1156_vm3, %v2482_v31 }
 0x8b2   : > { %6735 = vmatpush3.bf16.xpose.msra.mxu0 %v2859_v15  ;;  %6736 = vmatprep.mubr.msk.bf16.mxu0 %vm7121_vm1, %v7120_v3 }
 0x8b3   : > { %6746 = vmatprep.subr.bf16.mxu0 %v7120_v3 }
 0x8b5   : > { %6731 = vmatmul.mubr.msk.bf16.vlgmr.msra.gmra.mrb[56].mxu1 %vm1156_vm3, %v2483_v17 }
 0x8b6   : > { %6741 = vmatpush3.bf16.msra.mxu1 %v3008_v18  ;;  %6742 = vmatprep.mubr.msk.bf16.mxu1 %vm7121_vm1, %v7120_v3 }
 0x8b7   : > { %6752 = vmatprep.subr.bf16.mxu1 %v7120_v3 }
 0x8b9   : > { %6737 = vmatmul.mubr.msk.bf16.vlgmr.msra.gmra.mrb[60].mxu0 %vm1156_vm3, %v2484_v20 }
 0x8ba   : > { %6748 = vmatprep.mubr.msk.bf16.mxu0 %vm7121_vm1, %v7120_v3 }
 0x8ff   : > { %v2573_v21 = vpop.f32.mrb[44].mxu1 }
 0x900   : > { %v2901_v24 = vmul.f32 0.35355338, %v2573_v21  ;;  %v6696_v25 = vpop.f32.mrb[45].mxu1 }
 0x901   : > { %v2576_v26 = vpop.f32.mrb[46].mxu1  ;;  %v2619_v27 = vpop.f32.mrb[48].mxu0 }
 0x902   : > { %v2902_v28 = vmul.f32 0.35355338, %v2619_v27  ;;  %v6697_v29 = vpop.f32.mrb[47].mxu1  ;;  %v6702_v32 = vpop.f32.mrb[49].mxu0  ;;  %v2910_v33 = vsel %vm2909_vm6, %v2901_v24, -inf }
 0x903   : > { %v2622_v34 = vpop.f32.mrb[50].mxu0  ;;  %2911 = vmax.xlane.f32.xlu0 %v2910_v33 }
 0x904   : > { %v6703_v30 = vpop.f32.mrb[51].mxu0  ;;  %v2913_v35 = vsel %vm2909_vm6, %v2902_v28, -inf }
 0x905   : > { %2914 = vmax.xlane.f32.xlu1 %v2913_v35 }
 0x978   : > { %v2665_v38 = vpop.f32.mrb[48].mxu1  ;;  %v2711_v40 = vpop.f32.mrb[52].mxu0 }
 0x979   : > { %v2903_v41 = vmul.f32 0.35355338, %v2665_v38  ;;  %v6708_v42 = vpop.f32.mrb[49].mxu1  ;;  %v6714_v43 = vpop.f32.mrb[53].mxu0  ;;  %v2904_v46 = vmul.f32 0.35355338, %v2711_v40 }
 0x97a   : > { %v2668_v44 = vpop.f32.mrb[50].mxu1  ;;  %v2714_v45 = vpop.f32.mrb[54].mxu0 }
 0x97b   : > { %v6709_v47 = vpop.f32.mrb[51].mxu1  ;;  %v6715_v48 = vpop.f32.mrb[55].mxu0  ;;  %v2916_v49 = vsel %vm2909_vm6, %v2903_v41, -inf  ;;  %v2919_v50 = vsel %vm2909_vm6, %v2904_v46, -inf }
 0x97c   : > { %2917 = vmax.xlane.f32.xlu0 %v2916_v49 }
 0x980   : > { %2920 = vmax.xlane.f32.xlu0 %v2919_v50  ;;  %v2757_v51 = vpop.f32.mrb[52].mxu1 }
 0x981   : > { %v7751_v53 = vmul.f32 0.35355338, %v2757_v51  ;;  %v6720_v55 = vpop.f32.mrb[53].mxu1 }
 0x982   : > { %v2760_v56 = vpop.f32.mrb[54].mxu1 }
 0x983   : > { %v6721_v58 = vpop.f32.mrb[55].mxu1  ;;  %v2922_v59 = vsel %vm2909_vm6, %v7751_v53, -inf }
 0x984   : > { %v2803_v60 = vpop.f32.mrb[56].mxu0  ;;  %2923 = vmax.xlane.f32.xlu1 %v2922_v59 }
 0x985   : > { %v7755_v36 = vmul.f32 0.35355338, %v2803_v60  ;;  %v6726_v61 = vpop.f32.mrb[57].mxu0 }
 0x986   : > { %v2806_v63 = vpop.f32.mrb[58].mxu0 }
 0x987   : > { %v6727_v57 = vpop.f32.mrb[59].mxu0  ;;  %v2925_v0 = vsel %vm2909_vm6, %v7755_v36, -inf }
 0x988   : > { %2926 = vmax.xlane.f32.xlu0 %v2925_v0  ;;  %v2849_v2 = vpop.f32.mrb[56].mxu1 }
 0x989   : > { %v2907_v4 = vmul.f32 0.35355338, %v2849_v2  ;;  %v6732_v22 = vpop.f32.mrb[57].mxu1 }
 0x98a   : > { %v2852_v23 = vpop.f32.mrb[58].mxu1 }
 0x98b   : > { %v6733_v5 = vpop.f32.mrb[59].mxu1  ;;  %v2928_v62 = vsel %vm2909_vm6, %v2907_v4, -inf }
 0x98c   : > { %v2895_v6 = vpop.f32.mrb[60].mxu0  ;;  %2929 = vmax.xlane.f32.xlu1 %v2928_v62 }
 0x98d   : > { %v2908_v9 = vmul.f32 0.35355338, %v2895_v6  ;;  %v6738_v11 = vpop.f32.mrb[61].mxu0 }
 0x98e   : > { %v2898_v13 = vpop.f32.mrb[62].mxu0 }
 0x98f   : > { %v6739_v31 = vpop.f32.mrb[63].mxu0  ;;  %v2931_v14 = vsel %vm2909_vm6, %v2908_v9, -inf }
 0x990   : > { %2932 = vmax.xlane.f32.xlu0 %v2931_v14  ;;  %v2912_v15 = vpop.xlane.xlu0 %2911 }
 0x991   : > { %v2934_v17 = vsub.f32 %v2901_v24, %v2912_v15 }
 0x992   : > { %v2915_v16 = vpop.xlane.xlu1 %2914 }
 0x993   : > { %v2935_v18 = vsub.f32 %v2902_v28, %v2915_v16  ;;  %v2942_v20 = vmul.f32 1.442695, %v2934_v17 }
 0x995   : > { %v2944_v21 = vmul.f32 1.442695, %v2935_v18  ;;  %7068 = vpow2.f32 %v2942_v20 }
 0x997   : > { %7070 = vpow2.f32 %v2944_v21 }
 0x99d   : > { %3101 = vrot.lane.b32.xlu1 %v7685_v37, %s7124_s21 }
 0x99f   : > { %v7069_v25 = vpop.eup %7068 }
 0x9a0   : > { %v2958_v37 = vsel %vm2909_vm6, %v7069_v25, 0.0 }
 0x9a1   : > { %3148 = vrot.lane.b32.xlu1 %v7687_v39, %s7124_s21  ;;  %v7071_v26 = vpop.eup %7070 }
 0x9a2   : > { %v2961_v27 = vsel %vm2909_vm6, %v7071_v26, 0.0 }
 0x9a6   : > { %3054 = vrot.lane.b32.xlu0 %v7670_v19, %s7124_s21 }
 0x9c5   : > { %2962 = vadd.xlane.f32.xlu0 %v2961_v27  ;;  %2959 = vadd.xlane.f32.xlu1 %v2958_v37 }
 0xa09   : > { %v2918_v39 = vpop.xlane.xlu0 %2917 }
 0xa0a   : > { %v2936_v29 = vsub.f32 %v2903_v41, %v2918_v39 }
 0xa0c   : > { %v2946_v32 = vmul.f32 1.442695, %v2936_v29 }
 0xa0d   : > { %v2921_v19 = vpop.xlane.xlu0 %2920 }
 0xa0e   : > { %7072 = vpow2.f32 %v2946_v32  ;;  %v2937_v33 = vsub.f32 %v2904_v46, %v2921_v19 }
 0xa10   : > { %v2948_v24 = vmul.f32 1.442695, %v2937_v33 }
 0xa11   : > { %v2924_v42 = vpop.xlane.xlu1 %2923 }
 0xa12   : > { %7074 = vpow2.f32 %v2948_v24  ;;  %v2938_v43 = vsub.f32 %v7751_v53, %v2924_v42  ;;  %v2452_v24 = vld [vmem:[%s7317_s25] sm:$0xf] }
 0xa14   : > { %v2950_v46 = vmul.f32 1.442695, %v2938_v43 }
 0xa15   : > { %v2927_v34 = vpop.xlane.xlu0 %2926 }
 0xa16   : > { %v2939_v45 = vsub.f32 %v7755_v36, %v2927_v34  ;;  %7076 = vpow2.f32 %v2950_v46 }
 0xa18   : > { %v7769_v28 = vpop.eup %7072  ;;  %v2952_v48 = vmul.f32 1.442695, %v2939_v45 }
 0xa19   : > { %v2964_v30 = vsel %vm2909_vm6, %v7769_v28, 0.0  ;;  %v2930_v44 = vpop.xlane.xlu1 %2929 }
 0xa1a   : > { %2965 = vadd.xlane.f32.xlu1 %v2964_v30  ;;  %v2940_v47 = vsub.f32 %v2907_v4, %v2930_v44  ;;  %7078 = vpow2.f32 %v2952_v48 }
 0xa1c   : > { %v7773_v35 = vpop.eup %7074  ;;  %v2954_v49 = vmul.f32 1.442695, %v2940_v47 }
 0xa1d   : > { %v2933_v38 = vpop.xlane.xlu0 %2932  ;;  %v2967_v40 = vsel %vm2909_vm6, %v7773_v35, 0.0  ;;  %v3102_v55 = vpop.permute.xlu1 %3101 }
 0xa1e   : > { %2968 = vadd.xlane.f32.xlu0 %v2967_v40  ;;  %v2941_v50 = vsub.f32 %v2908_v9, %v2933_v38  ;;  %7080 = vpow2.f32 %v2954_v49  ;;  %v2453_v40 = vld [vmem:[%s7317_s25 + $0x4] sm:$0xf] }
 0xa20   : > { %v2956_v51 = vmul.f32 1.442695, %v2941_v50 }
 0xa21   : > { %v3055_v41 = vpop.permute.xlu0 %3054 }
 0xa22   : > { %6747 = vmatpush3.bf16.msra.mxu0 %v3055_v41  ;;  %7082 = vpow2.f32 %v2956_v51  ;;  %v3437_v41 = vsel %vm1665_vm4, %v2453_v40, 0  ;;  %v2454_v51 = vld [vmem:[%s7317_s25 + $0x8] sm:$0xf] }
 0xa23   : > { %6758 = vmatprep.subr.bf16.mxu0 %v7120_v3 }
 0xa2b   : > { %3242 = vrot.lane.b32.xlu1 %v7716_v1, %s7124_s21  ;;  %v7077_v1 = vpop.eup %7076 }
 0xa2c   : > { %v7784_v56 = vpop.eup %7078  ;;  %v2970_v53 = vsel %vm2909_vm6, %v7077_v1, 0.0 }
 0xa2d   : > { %v7787_v58 = vpop.eup %7080  ;;  %v2973_v36 = vsel %vm2909_vm6, %v7784_v56, 0.0 }
 0xa2e   : > { %v2976_v61 = vsel %vm2909_vm6, %v7787_v58, 0.0  ;;  %v7793_v63 = vpop.eup %7082 }
 0xa2f   : > { %v2979_v57 = vsel %vm2909_vm6, %v7793_v63, 0.0 }
 0xa34   : > { %3195 = vrot.lane.b32.xlu0 %v7708_v52, %s7124_s21  ;;  %v3149_v52 = vpop.permute.xlu1 %3148 }
 0xa4f   : > { %2971 = vadd.xlane.f32.xlu1 %v2970_v53  ;;  %v2455_v53 = vld [vmem:[%s7317_s25 + $0xc] sm:$0xf]  ;;  %s8283_s25 = sld [smem:[#allocation22_spill]] (!%p6265_p5) }
 0xa52   : > { %v2963_v59 = vpop.xlane.xlu0 %2962  ;;  %v2960_v60 = vpop.xlane.xlu1 %2959 }
 0xa53   : > { %7084 = vrcp.f32 %v2963_v59  ;;  %2974 = vadd.xlane.f32.xlu0 %v2973_v36  ;;  %2977 = vadd.xlane.f32.xlu1 %v2976_v61  ;;  %v3531_v61 = vsel %vm1665_vm4, %v2455_v53, 0 }
 0xa54   : > { %7086 = vrcp.f32 %v2960_v60 }
 0xa57   : > { %2980 = vadd.xlane.f32.xlu0 %v2979_v57 }
 0xa5d   : > { %v7085_v0 = vpop.eup %7084 }
 0xa5e   : > { %v7087_v2 = vpop.eup %7086  ;;  %v2991_v4 = vmul.f32 %v7085_v0, %v7071_v26 }
 0xa5f   : > { %v2990_v22 = vmul.f32 %v7087_v2, %v7069_v25 }
 0xa60   : > { %v2999_v23 = vpack.c.bf16 %v2991_v4, %v2991_v4 }
 0xa61   : > { %v2998_v5 = vpack.c.bf16 %v2990_v22, %v2990_v22 }
 0xa62   : > { %6749 = vmatmul.mubr.msk.bf16.vlgmr.msra.gmra.mrb[64].mxu0 %vm2909_vm6, %v2999_v23 }
 0xa63   : > { %6743 = vmatmul.mubr.msk.bf16.vlgmr.msra.gmra.mrb[60].mxu1 %vm2909_vm6, %v2998_v5  ;;  %6759 = vmatpush3.bf16.msra.mxu0 %v3149_v52 }
 0xa64   : > { %6753 = vmatpush3.bf16.msra.mxu1 %v3102_v55  ;;  %3336 = vrot.lane.b32.xlu1 %v7726_v12, %s7124_s21  ;;  %v3484_v55 = vsel %vm1665_vm4, %v2454_v51, 0 }
 0xa65   : > { %6754 = vmatprep.mubr.msk.bf16.mxu1 %vm7121_vm1, %v7120_v3  ;;  %6764 = vmatprep.subr.bf16.mxu1 %v7120_v3 }
 0xa66   : > { %6760 = vmatprep.mubr.msk.bf16.mxu0 %vm7121_vm1, %v7120_v3  ;;  %6770 = vmatprep.subr.bf16.mxu0 %v7120_v3 }
 0xa6d   : > { %3289 = vrot.lane.b32.xlu0 %v7723_v10, %s7124_s21  ;;  %s8284_s21 = sld [smem:[#allocation23_spill]] (!%p6265_p5) }
 0xaa7   : > { %v2966_v62 = vpop.xlane.xlu1 %2965 }
 0xaa8   : > { %7088 = vrcp.f32 %v2966_v62 }
 0xaab   : > { %v2969_v6 = vpop.xlane.xlu0 %2968  ;;  %v3243_v10 = vpop.permute.xlu1 %3242 }
 0xaac   : > { %7090 = vrcp.f32 %v2969_v6 }
 0xaaf   : > { %v3196_v14 = vpop.permute.xlu0 %3195 }
 0xab2   : > { %v7089_v9 = vpop.eup %7088 }
 0xab3   : > { %v2992_v12 = vmul.f32 %v7089_v9, %v7769_v28 }
 0xab5   : > { %v3000_v11 = vpack.c.bf16 %v2992_v12, %v2992_v12 }
 0xab6   : > { %v7091_v13 = vpop.eup %7090 }
 0xab7   : > { %v2993_v31 = vmul.f32 %v7091_v13, %v7773_v35  ;;  %6755 = vmatmul.mubr.msk.bf16.vlgmr.msra.gmra.mrb[64].mxu1 %vm2909_vm6, %v3000_v11  ;;  %v3390_v35 = vsel %vm1665_vm4, %v2452_v24, 0 }
 0xab8   : > { %6765 = vmatpush3.bf16.msra.mxu1 %v3196_v14  ;;  %6766 = vmatprep.mubr.msk.bf16.mxu1 %vm7121_vm1, %v7120_v3 }
 0xab9   : > { %v3001_v15 = vpack.c.bf16 %v2993_v31, %v2993_v31  ;;  %6776 = vmatprep.subr.bf16.mxu1 %v7120_v3 }
 0xabb   : > { %6761 = vmatmul.mubr.msk.bf16.vlgmr.msra.gmra.mrb[68].mxu0 %vm2909_vm6, %v3001_v15 }
 0xabc   : > { %6771 = vmatpush3.bf16.msra.mxu0 %v3243_v10  ;;  %6772 = vmatprep.mubr.msk.bf16.mxu0 %vm7121_vm1, %v7120_v3 }
 0xabd   : > { %6782 = vmatprep.subr.bf16.mxu0 %v7120_v3 }
 0xadc   : > { %v2972_v16 = vpop.xlane.xlu1 %2971 }
 0xadd   : > { %7092 = vrcp.f32 %v2972_v16 }
 0xae0   : > { %v2975_v17 = vpop.xlane.xlu0 %2974  ;;  %v2978_v18 = vpop.xlane.xlu1 %2977 }
 0xae1   : > { %7094 = vrcp.f32 %v2975_v17 }
 0xae2   : > { %7096 = vrcp.f32 %v2978_v18 }
 0xae4   : > { %v2981_v20 = vpop.xlane.xlu0 %2980  ;;  %v3337_v28 = vpop.permute.xlu1 %3336 }
 0xae5   : > { %7098 = vrcp.f32 %v2981_v20 }
 0xae7   : > { %v7093_v21 = vpop.eup %7092 }
 0xae8   : > { %v2994_v25 = vmul.f32 %v7093_v21, %v7077_v1  ;;  %v3290_v29 = vpop.permute.xlu0 %3289 }
 0xaea   : > { %v3002_v26 = vpack.c.bf16 %v2994_v25, %v2994_v25 }
 0xaeb   : > { %v7095_v27 = vpop.eup %7094 }
 0xaec   : > { %v7097_v37 = vpop.eup %7096  ;;  %v2995_v39 = vmul.f32 %v7095_v27, %v7784_v56  ;;  %6767 = vmatmul.mubr.msk.bf16.vlgmr.msra.gmra.mrb[68].mxu1 %vm2909_vm6, %v3002_v26 }
 0xaed   : > { %6777 = vmatpush3.bf16.msra.mxu1 %v3290_v29  ;;  %6778 = vmatprep.mubr.msk.bf16.mxu1 %vm7121_vm1, %v7120_v3  ;;  %v2996_v32 = vmul.f32 %v7097_v37, %v7787_v58 }
 0xaee   : > { %v3003_v19 = vpack.c.bf16 %v2995_v39, %v2995_v39  ;;  %6788 = vmatprep.subr.bf16.mxu1 %v7120_v3 }
 0xaef   : > { %v7099_v33 = vpop.eup %7098  ;;  %v3004_v30 = vpack.c.bf16 %v2996_v32, %v2996_v32 }
 0xaf0   : > { %6773 = vmatmul.mubr.msk.bf16.vlgmr.msra.gmra.mrb[72].mxu0 %vm2909_vm6, %v3003_v19  ;;  %v2997_v34 = vmul.f32 %v7099_v33, %v7793_v63 }
 0xaf1   : > { %6783 = vmatpush3.bf16.msra.mxu0 %v3337_v28  ;;  %6784 = vmatprep.mubr.msk.bf16.mxu0 %vm7121_vm1, %v7120_v3 }
 0xaf2   : > { %6794 = vmatprep.subr.bf16.mxu0 %v7120_v3  ;;  %v3005_v38 = vpack.c.bf16 %v2997_v34, %v2997_v34 }
 0xaf4   : > { %6779 = vmatmul.mubr.msk.bf16.vlgmr.msra.gmra.mrb[72].mxu1 %vm2909_vm6, %v3004_v30 }
 0xaf5   : > { %6789 = vmatpush3.bf16.msra.mxu1 %v3390_v35  ;;  %6790 = vmatprep.mubr.msk.bf16.mxu1 %vm7121_vm1, %v7120_v3 }
 0xaf6   : > { %6800 = vmatprep.subr.bf16.mxu1 %v7120_v3 }
 0xaf8   : > { %6785 = vmatmul.mubr.msk.bf16.vlgmr.msra.gmra.mrb[76].mxu0 %vm2909_vm6, %v3005_v38 }
 0xaf9   : > { %6796 = vmatprep.mubr.msk.bf16.mxu0 %vm7121_vm1, %v7120_v3  ;;  %6795 = vmatpush3.bf16.msra.mxu0 %v3437_v41 }
 0xafa   : > { %6806 = vmatprep.subr.bf16.mxu0 %v7120_v3 }
 0xb35   : > { %v3094_v42 = vpop.f32.mrb[64].mxu0 }
 0xb36   : > { %v3047_v43 = vpop.f32.mrb[60].mxu1  ;;  %v6750_v44 = vpop.f32.mrb[65].mxu0 }
 0xb37   : > { %v3382_v45 = vpack.c.bf16 %v3094_v42, %v3047_v43  ;;  %v6744_v46 = vpop.f32.mrb[61].mxu1  ;;  %v3097_v47 = vpop.f32.mrb[66].mxu0  ;;  %v6091_v44 = vld [vmem:[%s8277_s24] ss:$0 sm:$0xff] }
 0xb38   : > { %v3050_v48 = vpop.f32.mrb[62].mxu1  ;;  %v6751_v49 = vpop.f32.mrb[67].mxu0 }
 0xb39   : > { %v6745_v50 = vpop.f32.mrb[63].mxu1  ;;  %6791 = vmatmul.mubr.msk.bf16.vlgmr.msra.gmra.mrb[76].mxu1 %vm1156_vm3, %v3382_v45 }
 0xb3a   : > { %6802 = vmatprep.mubr.msk.bf16.mxu1 %vm7121_vm1, %v7120_v3  ;;  %6801 = vmatpush3.bf16.msra.mxu1 %v3484_v55 }
 0xb8a   : > { %v3141_v1 = vpop.f32.mrb[64].mxu1 }
 0xb8b   : > { %v6756_v56 = vpop.f32.mrb[65].mxu1 }
 0xb8c   : > { %v3144_v52 = vpop.f32.mrb[66].mxu1 }
 0xb8d   : > { %v6757_v58 = vpop.f32.mrb[67].mxu1 }
 0xb8e   : > { %v3188_v59 = vpop.f32.mrb[68].mxu0 }
 0xb8f   : > { %v3383_v60 = vpack.c.bf16 %v3188_v59, %v3141_v1  ;;  %v6762_v36 = vpop.f32.mrb[69].mxu0 }
 0xb90   : > { %v3191_v63 = vpop.f32.mrb[70].mxu0 }
 0xb91   : > { %v6763_v57 = vpop.f32.mrb[71].mxu0  ;;  %6797 = vmatmul.mubr.msk.bf16.vlgmr.msra.gmra.mrb[80].mxu0 %vm1156_vm3, %v3383_v60 }
 0xb92   : > { %6807 = vmatpush3.bf16.msra.mxu0 %v3531_v61  ;;  %6808 = vmatprep.mubr.msk.bf16.mxu0 %vm7121_vm1, %v7120_v3 }
 0xbbf   : > { %v3235_v0 = vpop.f32.mrb[68].mxu1 }
 0xbc0   : > { %v6768_v2 = vpop.f32.mrb[69].mxu1 }
 0xbc1   : > { %v3238_v4 = vpop.f32.mrb[70].mxu1 }
 0xbc2   : > { %v6769_v22 = vpop.f32.mrb[71].mxu1  ;;  %v3643_v4 = vld [vmem:[%s7335_s0] sm:$0xff] }
 0xbc3   : > { %v3282_v23 = vpop.f32.mrb[72].mxu0  ;;  %v3651_v22 = vld [vmem:[%s7335_s0 + $0x40] sm:$0xff] }
 0xbc4   : > { %v3384_v5 = vpack.c.bf16 %v3282_v23, %v3235_v0  ;;  %v6774_v62 = vpop.f32.mrb[73].mxu0  ;;  %v3644_v23 = vld [vmem:[%s7335_s0 + $0x8] sm:$0xff] }
 0xbc5   : > { %v3285_v6 = vpop.f32.mrb[74].mxu0  ;;  %v3652_v62 = vld [vmem:[%s7335_s0 + $0x48] sm:$0xff] }
 0xbc6   : > { %v6775_v9 = vpop.f32.mrb[75].mxu0  ;;  %6803 = vmatmul.mubr.msk.bf16.vlgmr.msra.gmra.mrb[80].mxu1 %vm1156_vm3, %v3384_v5  ;;  %v6095_v5 = vcombine.high %v3643_v4, %v3651_v22  ;;  %v6094_v6 = vcombine.low %v3643_v4, %v3651_v22  ;;  %v3649_v22 = vld [vmem:[%s7335_s0 + $0x30] sm:$0xff] }
 0xbc7   : > { %v3329_v12 = vpop.f32.mrb[72].mxu1  ;;  %v6096_v9 = vcombine.low %v3644_v23, %v3652_v62 }
 0xbc8   : > { %v6780_v11 = vpop.f32.mrb[73].mxu1  ;;  %3922 = vmatprep.subr.bf16.mxu1 %v6095_v5  ;;  %v3650_v5 = vld [vmem:[%s7335_s0 + $0x38] sm:$0xff] }
 0xbc9   : > { %v3332_v13 = vpop.f32.mrb[74].mxu1  ;;  %3923 = vmatpush1.bf16.msra.mxu1 %v6094_v6  ;;  %v3659_v11 = vld [vmem:[%s7335_s0 + $0x80] sm:$0xff] }
 0xbca   : > { %v6781_v31 = vpop.f32.mrb[75].mxu1  ;;  %v3667_v13 = vld [vmem:[%s7335_s0 + $0xc0] sm:$0xff] }
 0xbcb   : > { %v3376_v14 = vpop.f32.mrb[76].mxu0  ;;  %v3660_v31 = vld [vmem:[%s7335_s0 + $0x88] sm:$0xff] }
 0xbcc   : > { %v3385_v15 = vpack.c.bf16 %v3376_v14, %v3329_v12  ;;  %v6786_v10 = vpop.f32.mrb[77].mxu0  ;;  %v6097_v12 = vcombine.high %v3644_v23, %v3652_v62  ;;  %v6111_v14 = vcombine.high %v3659_v11, %v3667_v13  ;;  %v3657_v23 = vld [vmem:[%s7335_s0 + $0x70] sm:$0xff]  ;;  %v3658_v62 = vld [vmem:[%s7335_s0 + $0x78] sm:$0xff] }
 0xbcd   : > { %v3379_v16 = vpop.f32.mrb[78].mxu0  ;;  %v6110_v10 = vcombine.low %v3659_v11, %v3667_v13  ;;  %v6109_v11 = vcombine.high %v3650_v5, %v3658_v62  ;;  %v3665_v13 = vld [vmem:[%s7335_s0 + $0xb0] sm:$0xff] }
 0xbce   : > { %v6787_v3 = vpop.f32.mrb[79].mxu0  ;;  %6809 = vmatmul.mubr.msk.bf16.vlgmr.msra.gmra.mrb[84].mxu0 %vm1156_vm3, %v3385_v15  ;;  %3965 = vmatprep.subr.bf16.mxu0 %v6097_v12  ;;  %v3668_v15 = vld [vmem:[%s7335_s0 + $0xc8] sm:$0xff]  ;;  %v6107_v12 = vcombine.high %v3649_v22, %v3657_v23 }
 0xbcf   : > { %3966 = vmatpush1.bf16.msra.mxu0 %v6096_v9  ;;  %v6112_v16 = vcombine.low %v3660_v31, %v3668_v15  ;;  %v6113_v3 = vcombine.high %v3660_v31, %v3668_v15  ;;  %3924 = vmatprep.subr.bf16.mxu1 %v6111_v14  ;;  %v3673_v31 = vld [vmem:[%s7335_s0 + $0xf0] sm:$0xff]  ;;  %v3666_v14 = vld [vmem:[%s7335_s0 + $0xb8] sm:$0xff] }
 0xbd0   : > { %3925 = vmatpush1.bf16.msra.mxu1 %v6110_v10  ;;  %v3674_v15 = vld [vmem:[%s7335_s0 + $0xf8] sm:$0xff]  ;;  %v6106_v10 = vcombine.low %v3649_v22, %v3657_v23 }
 0xbd1   : > { %3967 = vmatprep.subr.bf16.mxu0 %v6113_v3  ;;  %v6123_v3 = vcombine.high %v3665_v13, %v3673_v31 }
 0xbd3   : > { %3968 = vmatpush1.bf16.msra.mxu0 %v6112_v16  ;;  %v6108_v16 = vcombine.low %v3650_v5, %v3658_v62  ;;  %v3697_v62 = vsub.s32 4, %v7466_v54 }
 0xc0c   : > { %v3426_v17 = vpop.f32.mrb[76].mxu1 }
 0xc0d   : > { %v6792_v18 = vpop.f32.mrb[77].mxu1  ;;  %v3574_v26 = vsel %vm1075_vm2, %v3426_v17, 0.0  ;;  %v3645_v17 = vld [vmem:[%s7335_s0 + $0x10] sm:$0xff] }
 0xc0e   : > { %v3429_v20 = vpop.f32.mrb[78].mxu1  ;;  %v3653_v18 = vld [vmem:[%s7335_s0 + $0x50] sm:$0xff] }
 0xc0f   : > { %v6793_v21 = vpop.f32.mrb[79].mxu1  ;;  %v3581_v32 = vsel %vm1075_vm2, %v3429_v20, 0.0  ;;  %v3646_v20 = vld [vmem:[%s7335_s0 + $0x18] sm:$0xff] }
 0xc10   : > { %v7127_v21 = vmov 0  }
 0xc11   : > { %3954 = vmatprep.mubr.bf16.mxu1 %v7127_v21  ;;  %3997 = vmatprep.mubr.bf16.mxu0 %v7127_v21 }
 0xc64   : > { %v3473_v25 = vpop.f32.mrb[80].mxu0 }
 0xc65   : > { %v3575_v27 = vsel %vm1075_vm2, %v3473_v25, 0.0  ;;  %v6798_v37 = vpop.f32.mrb[81].mxu0  ;;  %v6098_v25 = vcombine.low %v3645_v17, %v3653_v18 }
 0xc66   : > { %v3576_v39 = vadd.f32 %v3575_v27, %v3574_v26  ;;  %v3476_v29 = vpop.f32.mrb[82].mxu0  ;;  %v6099_v26 = vcombine.high %v3645_v17, %v3653_v18  ;;  %v3654_v27 = vld [vmem:[%s7335_s0 + $0x58] sm:$0xff]  ;;  %v6125_v17 = vcombine.high %v3666_v14, %v3674_v15  ;;  %v6122_v18 = vcombine.low %v3665_v13, %v3673_v31 }
 0xc67   : > { %v3582_v19 = vsel %vm1075_vm2, %v3476_v29, 0.0  ;;  %v6799_v33 = vpop.f32.mrb[83].mxu0  ;;  %v6100_v37 = vcombine.low %v3646_v20, %v3654_v27 }
 0xc68   : > { %v3583_v24 = vadd.f32 %v3582_v19, %v3581_v32  ;;  %4008 = vmatprep.subr.bf16.mxu1 %v6099_v26  ;;  %v6905_v26 = vld [vmem:[%s7350_s22 + $0xc0] sm:$0xff]  }
 0xc99   : > { %v3520_v28 = vpop.f32.mrb[80].mxu1 }
 0xc9a   : > { %v3577_v34 = vsel %vm1075_vm2, %v3520_v28, 0.0  ;;  %v6804_v30 = vpop.f32.mrb[81].mxu1 }
 0xc9b   : > { %v3578_v35 = vadd.f32 %v3577_v34, %v3576_v39  ;;  %v3523_v38 = vpop.f32.mrb[82].mxu1  ;;  %v6101_v39 = vcombine.high %v3646_v20, %v3654_v27  ;;  %v6124_v20 = vcombine.low %v3666_v14, %v3674_v15  ;;  %v6906_v27 = vld [vmem:[%s7350_s22] sm:$0xff]  }
 0xc9c   : > { %v3584_v40 = vsel %vm1075_vm2, %v3523_v38, 0.0  ;;  %v6805_v41 = vpop.f32.mrb[83].mxu1 }
 0xc9d   : > { %v3585_v42 = vadd.f32 %v3584_v40, %v3583_v24  ;;  %4051 = vmatprep.subr.bf16.mxu0 %v6101_v39  ;;  %v6908_v39 = vld [vmem:[%s7350_s22 + $0x48] sm:$0xff]  }
 0xca1   : > { %v3567_v43 = vpop.f32.mrb[84].mxu0 }
 0xca2   : > { %v3579_v45 = vsel %vm1075_vm2, %v3567_v43, 0.0  ;;  %v6810_v46 = vpop.f32.mrb[85].mxu0 }
 0xca3   : > { %v3580_v47 = vadd.f32 %v3579_v45, %v3578_v35  ;;  %v3570_v48 = vpop.f32.mrb[86].mxu0  ;;  %v6092_v35 = vld [vmem:[%s8278_s28] ss:$0 sm:$0xff]  ;;  %v3669_v45 = vld [vmem:[%s7335_s0 + $0xd0] sm:$0xff]  ;;  %v3662_v46 = vld [vmem:[%s7335_s0 + $0x98] sm:$0xff] }
 0xca4   : > { %v3586_v49 = vsel %vm1075_vm2, %v3570_v48, 0.0  ;;  %v6811_v50 = vpop.f32.mrb[87].mxu0 }
 0xca5   : > { %v3594_v51 = vadd.f32 %v6091_v44, %v3580_v47  ;;  %v3587_v55 = vadd.f32 %v3586_v49, %v3585_v42  ;;  %v6093_v42 = vld [vmem:[%s8279_s23] ss:$0 sm:$0xff]  ;;  %v3670_v47 = vld [vmem:[%s7335_s0 + $0xd8] sm:$0xff] }
 0xca7   : > { %v3595_v1 = vadd.f32 %v6091_v44, %v3587_v55  ;;  %v3596_v56 = vadd.f32 %v3594_v51, %v7656_v7  ;;  %v3661_v44 = vld [vmem:[%s7335_s0 + $0x90] sm:$0xff]  ;;  %v6117_v55 = vcombine.high %v3662_v46, %v3670_v47 }
 0xca8   : > { %v6115_v51 = vcombine.high %v3661_v44, %v3669_v45 }
 0xca9   : > { %v3600_v52 = vsel %vm1075_vm2, %v3596_v56, 0.0  ;;  %v3597_v53 = vadd.f32 %v3595_v1, %v7658_v8  ;;  %v3647_v1 = vld [vmem:[%s7335_s0 + $0x20] sm:$0xff] }
 0xcaa   : > { %3601 = vadd.xlane.f32.xlu0 %v3600_v52  ;;  %v3648_v52 = vld [vmem:[%s7335_s0 + $0x28] sm:$0xff] }
 0xcab   : > { %v3603_v58 = vsel %vm1075_vm2, %v3597_v53, 0.0 }
 0xcac   : > { %3604 = vadd.xlane.f32.xlu1 %v3603_v58  ;;  %v6114_v58 = vcombine.low %v3661_v44, %v3669_v45  ;;  %v6924_v44 = vld [vmem:[%s7350_s22 + $0x68] sm:$0xff]  }
 0xcad   : > { %v6925_v45 = vld [vmem:[%s7350_s22 + $0xe8] sm:$0xff]  }
 0xd37   : > { %v3602_v59 = vpop.xlane.xlu0 %3601 }
 0xd38   : > { %v3606_v60 = vmul.f32 0.03125, %v3602_v59  ;;  %v6116_v59 = vcombine.low %v3662_v46, %v3670_v47  ;;  %v6926_v46 = vld [vmem:[%s7350_s22 + $0x28] sm:$0xff]  }
 0xd39   : > { %v3605_v36 = vpop.xlane.xlu1 %3604  ;;  %v6927_v47 = vld [vmem:[%s7350_s22 + $0xa8] sm:$0xff]  }
 0xd3a   : > { %v3608_v61 = vsub.f32 %v3596_v56, %v3606_v60  ;;  %v3607_v63 = vmul.f32 0.03125, %v3605_v36  ;;  %v3655_v56 = vld [vmem:[%s7335_s0 + $0x60] sm:$0xff] }
 0xd3b   : > { %v6103_v60 = vcombine.high %v3647_v1, %v3655_v56 }
 0xd3c   : > { %v3609_v57 = vsub.f32 %v3597_v53, %v3607_v63  ;;  %v3610_v0 = vmul.f32 %v3608_v61, %v3608_v61  ;;  %v3656_v53 = vld [vmem:[%s7335_s0 + $0x68] sm:$0xff]  ;;  %v3671_v63 = vld [vmem:[%s7335_s0 + $0xe0] sm:$0xff] }
 0xd3d   : > { %v6105_v36 = vcombine.high %v3648_v52, %v3656_v53 }
 0xd3e   : > { %v3612_v7 = vsel %vm1075_vm2, %v3610_v0, 0.0  ;;  %v3611_v2 = vmul.f32 %v3609_v57, %v3609_v57  ;;  %v3672_v0 = vld [vmem:[%s7335_s0 + $0xe8] sm:$0xff] }
 0xd3f   : > { %3613 = vadd.xlane.f32.xlu0 %v3612_v7  ;;  %v6102_v7 = vcombine.low %v3647_v1, %v3655_v56  ;;  %v6931_v1 = vld [vmem:[%s7350_s22 + $0xb0] sm:$0xff]   ;;  %v6932_v56 = vld [vmem:[%s7350_s22 + $0x78] sm:$0xff]  }
 0xd40   : > { %v3615_v8 = vsel %vm1075_vm2, %v3611_v2, 0.0  ;;  %v6104_v2 = vcombine.low %v3648_v52, %v3656_v53  ;;  %v6933_v52 = vld [vmem:[%s7350_s22 + $0xf8] sm:$0xff]  }
 0xd41   : > { %v6934_v53 = vld [vmem:[%s7350_s22 + $0x38] sm:$0xff]  }
 0xd43   : > { %3616 = vadd.xlane.f32.xlu0 %v3615_v8 }
 0xdcc   : > { %v3614_v29 = vpop.xlane.xlu0 %3613 }
 0xdcd   : > { %v3618_v32 = vmul.f32 0.03125, %v3614_v29  ;;  %v6909_v29 = vld [vmem:[%s7350_s22 + $0xc8] sm:$0xff]  }
 0xdcf   : > { %v3620_v19 = vadd.f32 1e-05, %v3618_v32  ;;  %v6911_v32 = vld [vmem:[%s7350_s22 + $0x88] sm:$0xff]  }
 0xdd0   : > { %v3617_v33 = vpop.xlane.xlu0 %3616 }
 0xdd1   : > { %7100 = vrsqrt.f32 %v3620_v19  ;;  %v3619_v24 = vmul.f32 0.03125, %v3617_v33  ;;  %v6912_v19 = vld [vmem:[%s7350_s22 + $0x50] sm:$0xff]  }
 0xdd2   : > { %v6913_v33 = vld [vmem:[%s7350_s22 + $0xd0] sm:$0xff]  }
 0xdd3   : > { %v3621_v28 = vadd.f32 1e-05, %v3619_v24  ;;  %v6914_v24 = vld [vmem:[%s7350_s22 + $0x10] sm:$0xff]  }
 0xdd5   : > { %7102 = vrsqrt.f32 %v3621_v28  ;;  %v6915_v28 = vld [vmem:[%s7350_s22 + $0x90] sm:$0xff]  }
 0xddb   : > { %v7101_v34 = vpop.eup %7100 }
 0xddc   : > { %v3624_v30 = vmul.f32 %v7101_v34, %v3608_v61  ;;  %v3663_v61 = vld [vmem:[%s7335_s0 + $0xa0] sm:$0xff]  ;;  %v6916_v34 = vld [vmem:[%s7350_s22 + $0x58] sm:$0xff]  }
 0xddd   : > { %v6119_v8 = vcombine.high %v3663_v61, %v3671_v63  ;;  %v6118_v6 = vcombine.low %v3663_v61, %v3671_v63  ;;  %v7983_v61 = vld [vmem:[%s7340_s10 + $0x8] sm:$0xff] }
 0xdde   : > { %v3632_v40 = vmul.f32 %v6092_v35, %v3624_v30  ;;  %v6917_v30 = vld [vmem:[%s7350_s22 + $0xd8] sm:$0xff]  }
 0xddf   : > { %v7103_v38 = vpop.eup %7102 }
 0xde0   : > { %v3625_v41 = vmul.f32 %v7103_v38, %v3609_v57  ;;  %v7901_v48 = vadd.f32 %v6093_v42, %v3632_v40  ;;  %v3664_v57 = vld [vmem:[%s7335_s0 + $0xa8] sm:$0xff]  ;;  %v6919_v38 = vld [vmem:[%s7350_s22 + $0x98] sm:$0xff]   ;;  %v6920_v40 = vld [vmem:[%s7350_s22 + $0x60] sm:$0xff]  }
 0xde1   : > { %v6121_v4 = vcombine.high %v3664_v57, %v3672_v0  ;;  %v6120_v9 = vcombine.low %v3664_v57, %v3672_v0  ;;  %v3681_v57 = vsub.s32 0, %v7466_v54  ;;  %v3689_v0 = vsub.s32 2, %v7466_v54 }
 0xde2   : > { %v3633_v43 = vmul.f32 %v6092_v35, %v3625_v41  ;;  %v6918_v35 = vld [vmem:[%s7350_s22 + $0x18] sm:$0xff]   ;;  %v6921_v41 = vld [vmem:[%s7350_s22 + $0xe0] sm:$0xff]  }
 0xde4   : > { %v7903_v49 = vadd.f32 %v6093_v42, %v3633_v43  ;;  %v6922_v42 = vld [vmem:[%s7350_s22 + $0x20] sm:$0xff]  }
 0xde5   : > { %v6923_v43 = vld [vmem:[%s7350_s22 + $0xa0] sm:$0xff]  }
 0xde6   : > { %v7907_v50 = vpack.c.bf16 %v7903_v49, %v7901_v48 }
 0xde8   : > { %6126 = vmatmul.mubr.msk.bf16.vlgmr.msra.gmra.mrb[84].mxu1 %vm1075_vm2, %v7907_v50  ;;  %6127 = vmatmul.mubr.msk.bf16.vlgmr.msra.gmra.mrb[88].mxu0 %vm1075_vm2, %v7907_v50 }
 0xde9   : > { %4009 = vmatpush1.bf16.msra.mxu1 %v6098_v25  ;;  %4052 = vmatpush1.bf16.msra.mxu0 %v6100_v37  ;;  %v6904_v25 = vld [vmem:[%s7350_s22 + $0x40] sm:$0xff]  }
 0xdea   : > { %4010 = vmatprep.subr.bf16.mxu1 %v6115_v51  ;;  %4053 = vmatprep.subr.bf16.mxu0 %v6117_v55  ;;  %v6907_v37 = vld [vmem:[%s7350_s22 + $0x80] sm:$0xff]   ;;  %v6929_v51 = vld [vmem:[%s7350_s22 + $0xf0] sm:$0xff]  }
 0xdeb   : > { %4040 = vmatprep.mubr.bf16.mxu1 %v7127_v21  ;;  %4083 = vmatprep.mubr.bf16.mxu0 %v7127_v21  ;;  %v6930_v55 = vld [vmem:[%s7350_s22 + $0x30] sm:$0xff]  }
 0xded   : > { %4011 = vmatpush1.bf16.msra.mxu1 %v6114_v58  ;;  %4054 = vmatpush1.bf16.msra.mxu0 %v6116_v59  ;;  %v6935_v58 = vld [vmem:[%s7350_s22 + $0xb8] sm:$0xff]   ;;  %v6936_v59 = vld [vmem:[%s7350_s22 + $0x140] sm:$0xff]  }
 0xdee   : > { %4094 = vmatprep.subr.bf16.mxu1 %v6103_v60  ;;  %4137 = vmatprep.subr.bf16.mxu0 %v6105_v36  ;;  %v6937_v60 = vld [vmem:[%s7350_s22 + $0x1c0] sm:$0xff]   ;;  %v3705_v36 = vsub.s32 6, %v7466_v54 }
 0xdf0   : > { %6128 = vmatmul.mubr.msk.bf16.vlgmr.msra.gmra.mrb[88].mxu1 %vm1075_vm2, %v7907_v50  ;;  %6129 = vmatmul.mubr.msk.bf16.vlgmr.msra.gmra.mrb[92].mxu0 %vm1075_vm2, %v7907_v50  ;;  %v7986_v63 = vrot.slane %v7983_v61, %v3705_v36 }
 0xdf1   : > { %4095 = vmatpush1.bf16.msra.mxu1 %v6102_v7  ;;  %4138 = vmatpush1.bf16.msra.mxu0 %v6104_v2  ;;  %v3675_v7 = vld [vmem:[%s7340_s10] sm:$0xff]  ;;  %v3685_v2 = vsub.s32 1, %v7466_v54 }
 0xdf2   : > { %4096 = vmatprep.subr.bf16.mxu1 %v6119_v8  ;;  %4139 = vmatprep.subr.bf16.mxu0 %v6121_v4  ;;  %v3693_v8 = vsub.s32 3, %v7466_v54  ;;  %v3682_v4 = vrot.slane %v3675_v7, %v3681_v57  ;;  %v3690_v22 = vrot.slane %v3675_v7, %v3689_v0 }
 0xdf3   : > { %4126 = vmatprep.mubr.bf16.mxu1 %v7127_v21  ;;  %4169 = vmatprep.mubr.bf16.mxu0 %v7127_v21  ;;  %v3686_v23 = vrot.slane %v3675_v7, %v3685_v2 }
 0xdf4   : > { %v3694_v5 = vrot.slane %v3675_v7, %v3693_v8 }
 0xdf5   : > { %4097 = vmatpush1.bf16.msra.mxu1 %v6118_v6  ;;  %4140 = vmatpush1.bf16.msra.mxu0 %v6120_v9 }
 0xdf6   : > { %4180 = vmatprep.subr.bf16.mxu1 %v6107_v12  ;;  %4223 = vmatprep.subr.bf16.mxu0 %v6109_v11  ;;  %v3701_v12 = vsub.s32 5, %v7466_v54  ;;  %v3709_v11 = vsub.s32 7, %v7466_v54 }
 0xdf8   : > { %6130 = vmatmul.mubr.msk.bf16.vlgmr.msra.gmra.mrb[92].mxu1 %vm1075_vm2, %v7907_v50  ;;  %6131 = vmatmul.mubr.msk.bf16.vlgmr.msra.gmra.mrb[96].mxu0 %vm1075_vm2, %v7907_v50 }
 0xdf9   : > { %4181 = vmatpush1.bf16.msra.mxu1 %v6106_v10  ;;  %4224 = vmatpush1.bf16.msra.mxu0 %v6108_v16 }
 0xdfa   : > { %4182 = vmatprep.subr.bf16.mxu1 %v6123_v3  ;;  %4225 = vmatprep.subr.bf16.mxu0 %v6125_v17 }
 0xdfb   : > { %4212 = vmatprep.mubr.bf16.mxu1 %v7127_v21  ;;  %4255 = vmatprep.mubr.bf16.mxu0 %v7127_v21  ;;  %v6910_v21 = vld [vmem:[%s7350_s22 + $0x8] sm:$0xff]  }
 0xdfd   : > { %4183 = vmatpush1.bf16.msra.mxu1 %v6122_v18  ;;  %4226 = vmatpush1.bf16.msra.mxu0 %v6124_v20 }
 0xdfe   : > { %6369 = vmatprep.subr.bf16.mxu1 %v6904_v25  ;;  %6391 = vmatprep.subr.bf16.mxu0 %v6905_v26 }
 0xe00   : > { %6132 = vmatmul.mubr.msk.bf16.vlgmr.msra.gmra.mrb[96].mxu1 %vm1075_vm2, %v7907_v50  ;;  %6133 = vmatmul.mubr.msk.bf16.vlgmr.msra.gmra.mrb[100].mxu0 %vm1075_vm2, %v7907_v50  ;;  %v6928_v50 = vld [vmem:[%s7350_s22 + $0x70] sm:$0xff]  }
 0xe01   : > { %6370 = vmatpush3.bf16.msra.mxu1 %v6906_v27  ;;  %6392 = vmatpush3.bf16.msra.mxu0 %v6907_v37  ;;  %v3698_v27 = vrot.slane %v3675_v7, %v3697_v62  ;;  %v3706_v37 = vrot.slane %v3675_v7, %v3705_v36 }
 0xe02   : > { %6371 = vmatprep.subr.bf16.mxu1 %v6908_v39  ;;  %6393 = vmatprep.subr.bf16.mxu0 %v6909_v29 }
 0xe05   : > { %6372 = vmatpush3.bf16.msra.mxu1 %v6910_v21  ;;  %6394 = vmatpush3.bf16.msra.mxu0 %v6911_v32  ;;  %v3702_v21 = vrot.slane %v3675_v7, %v3701_v12  ;;  %v3710_v32 = vrot.slane %v3675_v7, %v3709_v11  ;;  %v3722_v7 = vrot.slane %v7983_v61, %v3689_v0 }
 0xe06   : > { %6373 = vmatprep.subr.bf16.mxu1 %v6912_v19  ;;  %6395 = vmatprep.subr.bf16.mxu0 %v6913_v33  ;;  %v3726_v0 = vrot.slane %v7983_v61, %v3693_v8 }
 0xe09   : > { %6374 = vmatpush3.bf16.msra.mxu1 %v6914_v24  ;;  %6396 = vmatpush3.bf16.msra.mxu0 %v6915_v28 }
 0xe0a   : > { %6375 = vmatprep.subr.bf16.mxu1 %v6916_v34  ;;  %6397 = vmatprep.subr.bf16.mxu0 %v6917_v30 }
 0xe0d   : > { %6376 = vmatpush3.bf16.msra.mxu1 %v6918_v35  ;;  %6398 = vmatpush3.bf16.msra.mxu0 %v6919_v38 }
 0xe0e   : > { %6377 = vmatprep.subr.bf16.mxu1 %v6920_v40  ;;  %6399 = vmatprep.subr.bf16.mxu0 %v6921_v41 }
 0xe11   : > { %6378 = vmatpush3.bf16.msra.mxu1 %v6922_v42  ;;  %6400 = vmatpush3.bf16.msra.mxu0 %v6923_v43 }
 0xe12   : > { %6379 = vmatprep.subr.bf16.mxu1 %v6924_v44  ;;  %6401 = vmatprep.subr.bf16.mxu0 %v6925_v45 }
 0xe15   : > { %6380 = vmatpush3.bf16.msra.mxu1 %v6926_v46  ;;  %6402 = vmatpush3.bf16.msra.mxu0 %v6927_v47  ;;  %v6938_v46 = vld [vmem:[%s7350_s22 + $0x100] sm:$0xff]  }
 0xe16   : > { %6381 = vmatprep.subr.bf16.mxu1 %v6928_v50  ;;  %6403 = vmatprep.subr.bf16.mxu0 %v6929_v51  ;;  %v6939_v47 = vld [vmem:[%s7350_s22 + $0x180] sm:$0xff]  }
 0xe19   : > { %6382 = vmatpush3.bf16.msra.mxu1 %v6930_v55  ;;  %6404 = vmatpush3.bf16.msra.mxu0 %v6931_v1 }
 0xe1a   : > { %6383 = vmatprep.subr.bf16.mxu1 %v6932_v56  ;;  %6405 = vmatprep.subr.bf16.mxu0 %v6933_v52  ;;  %v6940_v56 = vld [vmem:[%s7350_s22 + $0x148] sm:$0xff]  }
 0xe1b   : > { %v6941_v52 = vld [vmem:[%s7350_s22 + $0x1c8] sm:$0xff]  }
 0xe1d   : > { %6384 = vmatpush3.bf16.msra.mxu1 %v6934_v53  ;;  %6406 = vmatpush3.bf16.msra.mxu0 %v6935_v58  ;;  %v3714_v53 = vrot.slane %v7983_v61, %v3681_v57  ;;  %v3718_v57 = vrot.slane %v7983_v61, %v3685_v2  ;;  %v6945_v2 = vld [vmem:[%s7350_s22 + $0x1d0] sm:$0xff]  }
 0xe1e   : > { %6413 = vmatprep.subr.bf16.mxu1 %v6936_v59  ;;  %6435 = vmatprep.subr.bf16.mxu0 %v6937_v60 }
 0xebb   : > { %v3956_v6 = vpop.f32.mrb[84].mxu1  ;;  %v3999_v9 = vpop.f32.mrb[88].mxu0 }
 0xebc   : > { %v3957_v13 = vadd.f32 %v3956_v6, %v3682_v4  ;;  %v4000_v31 = vadd.f32 %v3999_v9, %v3690_v22  ;;  %v3958_v14 = vpop.f32.mrb[85].mxu1  ;;  %v4001_v15 = vpop.f32.mrb[89].mxu0 }
 0xebd   : > { %v3959_v10 = vadd.f32 %v3958_v14, %v3686_v23  ;;  %v4002_v16 = vadd.f32 %v4001_v15, %v3694_v5  ;;  %v3960_v3 = vpop.f32.mrb[86].mxu1  ;;  %v4003_v17 = vpop.f32.mrb[90].mxu0 }
 0xebe   : > { %v3961_v18 = vadd.f32 %v3960_v3, %v3682_v4  ;;  %v4004_v20 = vadd.f32 %v4003_v17, %v3690_v22  ;;  %v3962_v25 = vpop.f32.mrb[87].mxu1  ;;  %v4005_v26 = vpop.f32.mrb[91].mxu0  ;;  %v4266_v19 = vmax.f32 %v3957_v13, 0.0  ;;  %v4268_v33 = vmax.f32 %v4000_v31, 0.0  ;;  %v6942_v13 = vld [vmem:[%s7350_s22 + $0x108] sm:$0xff]   ;;  %v6944_v3 = vld [vmem:[%s7350_s22 + $0x150] sm:$0xff]  }
 0xebf   : > { %v3963_v39 = vadd.f32 %v3962_v25, %v3686_v23  ;;  %v4006_v29 = vadd.f32 %v4005_v26, %v3694_v5  ;;  %v4267_v34 = vmax.f32 %v3959_v10, 0.0  ;;  %v4269_v30 = vmax.f32 %v4002_v16, 0.0  ;;  %v6943_v31 = vld [vmem:[%s7350_s22 + $0x188] sm:$0xff]  }
 0xec0   : > { %v4282_v24 = vmax.f32 %v3961_v18, 0.0  ;;  %v4284_v28 = vmax.f32 %v4004_v20, 0.0 }
 0xec1   : > { %v4283_v35 = vmax.f32 %v3963_v39, 0.0  ;;  %v4285_v38 = vmax.f32 %v4006_v29, 0.0 }
 0xec2   : > { %v4298_v40 = vpack.c.bf16 %v4282_v24, %v4266_v19  ;;  %v4300_v41 = vpack.c.bf16 %v4284_v28, %v4268_v33 }
 0xec3   : > { %v4299_v42 = vpack.c.bf16 %v4283_v35, %v4267_v34  ;;  %v4301_v43 = vpack.c.bf16 %v4285_v38, %v4269_v30  ;;  %v4042_v44 = vpop.f32.mrb[88].mxu1  ;;  %v4085_v45 = vpop.f32.mrb[92].mxu0  ;;  %v6948_v34 = vld [vmem:[%s7350_s22 + $0x158] sm:$0xff]  }
 0xec4   : > { %v4043_v50 = vadd.f32 %v4042_v44, %v3698_v27  ;;  %v4086_v51 = vadd.f32 %v4085_v45, %v3706_v37  ;;  %v4044_v55 = vpop.f32.mrb[89].mxu1  ;;  %v4087_v1 = vpop.f32.mrb[93].mxu0  ;;  %v6949_v30 = vld [vmem:[%s7350_s22 + $0x1d8] sm:$0xff]  }
 0xec5   : > { %v4045_v58 = vadd.f32 %v4044_v55, %v3702_v21  ;;  %v4088_v59 = vadd.f32 %v4087_v1, %v3710_v32  ;;  %v4046_v60 = vpop.f32.mrb[90].mxu1  ;;  %v4089_v36 = vpop.f32.mrb[94].mxu0  ;;  %5377 = vmatprep.mubr.bf16.mxu1 %v4299_v42  ;;  %5418 = vmatprep.mubr.bf16.mxu0 %v4301_v43  ;;  %v6950_v55 = vld [vmem:[%s7350_s22 + $0x118] sm:$0xff]  }
 0xec6   : > { %v4047_v4 = vadd.f32 %v4046_v60, %v3698_v27  ;;  %v4090_v22 = vadd.f32 %v4089_v36, %v3706_v37  ;;  %v4048_v23 = vpop.f32.mrb[91].mxu1  ;;  %v4091_v5 = vpop.f32.mrb[95].mxu0  ;;  %5378 = vmatmul.mubr.bf16.vlgmr.msra.gmra.mrb[100].mxu1 %v4298_v40  ;;  %5419 = vmatmul.mubr.bf16.vlgmr.msra.gmra.mrb[104].mxu0 %v4300_v41  ;;  %v4270_v14 = vmax.f32 %v4043_v50, 0.0  ;;  %v4272_v15 = vmax.f32 %v4086_v51, 0.0  ;;  %v6951_v1 = vld [vmem:[%s7350_s22 + $0x198] sm:$0xff]  }
 0xec7   : > { %v4049_v6 = vadd.f32 %v4048_v23, %v3702_v21  ;;  %v4092_v9 = vadd.f32 %v4091_v5, %v3710_v32  ;;  %6414 = vmatpush3.bf16.msra.mxu1 %v6938_v46  ;;  %6436 = vmatpush3.bf16.msra.mxu0 %v6939_v47  ;;  %v4271_v17 = vmax.f32 %v4045_v58, 0.0  ;;  %v4273_v18 = vmax.f32 %v4088_v59, 0.0  ;;  %v6946_v21 = vld [vmem:[%s7350_s22 + $0x110] sm:$0xff]  }
 0xec8   : > { %v4286_v10 = vmax.f32 %v4047_v4, 0.0  ;;  %v4288_v16 = vmax.f32 %v4090_v22, 0.0  ;;  %6415 = vmatprep.subr.bf16.mxu1 %v6940_v56  ;;  %6437 = vmatprep.subr.bf16.mxu0 %v6941_v52  ;;  %v6947_v32 = vld [vmem:[%s7350_s22 + $0x190] sm:$0xff]   ;;  %v3730_v46 = vrot.slane %v7983_v61, %v3697_v62  ;;  %v3734_v47 = vrot.slane %v7983_v61, %v3701_v12  ;;  %v6952_v62 = vld [vmem:[%s7350_s22 + $0x160] sm:$0xff]  }
 0xec9   : > { %v4287_v20 = vmax.f32 %v4049_v6, 0.0  ;;  %v4289_v25 = vmax.f32 %v4092_v9, 0.0  ;;  %v3742_v56 = vrot.slane %v7983_v61, %v3709_v11  ;;  %v6953_v12 = vld [vmem:[%s7350_s22 + $0x1e0] sm:$0xff]  }
 0xeca   : > { %v8022_v26 = vpack.c.bf16 %v4286_v10, %v4270_v14  ;;  %v8024_v27 = vpack.c.bf16 %v4288_v16, %v4272_v15  ;;  %v6955_v6 = vld [vmem:[%s7350_s22 + $0x1a0] sm:$0xff]   ;;  %v6956_v14 = vld [vmem:[%s7350_s22 + $0x168] sm:$0xff]  }
 0xecb   : > { %v4303_v8 = vpack.c.bf16 %v4287_v20, %v4271_v17  ;;  %v4305_v37 = vpack.c.bf16 %v4289_v25, %v4273_v18  ;;  %6416 = vmatpush3.bf16.msra.mxu1 %v6942_v13  ;;  %6438 = vmatpush3.bf16.msra.mxu0 %v6943_v31  ;;  %v4128_v39 = vpop.f32.mrb[92].mxu1  ;;  %v4171_v29 = vpop.f32.mrb[96].mxu0  ;;  %v6957_v15 = vld [vmem:[%s7350_s22 + $0x1e8] sm:$0xff]  }
 0xecc   : > { %v4129_v19 = vadd.f32 %v4128_v39, %v3714_v53  ;;  %v4172_v33 = vadd.f32 %v4171_v29, %v3722_v7  ;;  %v4130_v24 = vpop.f32.mrb[93].mxu1  ;;  %v4173_v28 = vpop.f32.mrb[97].mxu0  ;;  %6417 = vmatprep.subr.bf16.mxu1 %v6944_v3  ;;  %6439 = vmatprep.subr.bf16.mxu0 %v6945_v2  ;;  %v6958_v39 = vld [vmem:[%s7350_s22 + $0x128] sm:$0xff]  }
 0xecd   : > { %v4131_v35 = vadd.f32 %v4130_v24, %v3718_v57  ;;  %v4174_v38 = vadd.f32 %v4173_v28, %v3726_v0  ;;  %v4132_v40 = vpop.f32.mrb[94].mxu1  ;;  %v4175_v41 = vpop.f32.mrb[98].mxu0  ;;  %5459 = vmatprep.mubr.bf16.mxu1 %v4303_v8  ;;  %5500 = vmatprep.mubr.bf16.mxu0 %v4305_v37  ;;  %v6959_v29 = vld [vmem:[%s7350_s22 + $0x1a8] sm:$0xff]   ;;  %v6960_v24 = vld [vmem:[%s7350_s22 + $0x170] sm:$0xff]  }
 0xece   : > { %v4133_v42 = vadd.f32 %v4132_v40, %v3714_v53  ;;  %v4176_v43 = vadd.f32 %v4175_v41, %v3722_v7  ;;  %v4134_v44 = vpop.f32.mrb[95].mxu1  ;;  %v4177_v45 = vpop.f32.mrb[99].mxu0  ;;  %v4274_v52 = vmax.f32 %v4129_v19, 0.0  ;;  %v4276_v53 = vmax.f32 %v4172_v33, 0.0 }
 0xecf   : > { %v4135_v50 = vadd.f32 %v4134_v44, %v3718_v57  ;;  %v4178_v51 = vadd.f32 %v4177_v45, %v3726_v0  ;;  %6418 = vmatpush3.bf16.msra.mxu1 %v6946_v21  ;;  %6440 = vmatpush3.bf16.msra.mxu0 %v6947_v32  ;;  %v4275_v60 = vmax.f32 %v4131_v35, 0.0  ;;  %v4277_v36 = vmax.f32 %v4174_v38, 0.0  ;;  %v6954_v57 = vld [vmem:[%s7350_s22 + $0x120] sm:$0xff]   ;;  %v6963_v44 = vld [vmem:[%s7350_s22 + $0x1b0] sm:$0xff]   ;;  %v6964_v45 = vld [vmem:[%s7350_s22 + $0x178] sm:$0xff]  }
 0xed0   : > { %v4290_v58 = vmax.f32 %v4133_v42, 0.0  ;;  %v4292_v59 = vmax.f32 %v4176_v43, 0.0  ;;  %6419 = vmatprep.subr.bf16.mxu1 %v6948_v34  ;;  %6441 = vmatprep.subr.bf16.mxu0 %v6949_v30  ;;  %v6962_v43 = vld [vmem:[%s7350_s22 + $0x130] sm:$0xff]  }
 0xed1   : > { %v4291_v7 = vmax.f32 %v4135_v50, 0.0  ;;  %v4293_v4 = vmax.f32 %v4178_v51, 0.0  ;;  %v6967_v50 = vld [vmem:[%s7350_s22 + $0x1b8] sm:$0xff]   ;;  %v6968_v51 = vld [vmem:[%s7350_s22 + $0x240] sm:$0xff]  }
 0xed2   : > { %v8043_v22 = vpack.c.bf16 %v4290_v58, %v4274_v52  ;;  %v8045_v54 = vpack.c.bf16 %v4292_v59, %v4276_v53  ;;  %v6972_v52 = vld [vmem:[%s7350_s22 + $0x248] sm:$0xff]  }
 0xed3   : > { %v8047_v61 = vpack.c.bf16 %v4291_v7, %v4275_v60  ;;  %v8049_v11 = vpack.c.bf16 %v4293_v4, %v4277_v36  ;;  %6420 = vmatpush3.bf16.msra.mxu1 %v6950_v55  ;;  %6442 = vmatpush3.bf16.msra.mxu0 %v6951_v1  ;;  %v4214_v23 = vpop.f32.mrb[96].mxu1  ;;  %v4257_v5 = vpop.f32.mrb[100].mxu0  ;;  %v6969_v55 = vld [vmem:[%s7350_s22 + $0x2c0] sm:$0xff]   ;;  %v6973_v53 = vld [vmem:[%s7350_s22 + $0x2c8] sm:$0xff]   ;;  %v6980_v60 = vld [vmem:[%s7350_s22 + $0x258] sm:$0xff]  }
 0xed4   : > { %v4215_v9 = vadd.f32 %v4214_v23, %v3730_v46  ;;  %v4258_v13 = vadd.f32 %v4257_v5, %v7986_v63  ;;  %v4216_v31 = vpop.f32.mrb[97].mxu1  ;;  %v4259_v0 = vpop.f32.mrb[101].mxu0  ;;  %6421 = vmatprep.subr.bf16.mxu1 %v6952_v62  ;;  %6443 = vmatprep.subr.bf16.mxu0 %v6953_v12  ;;  %v6970_v1 = vld [vmem:[%s7350_s22 + $0x200] sm:$0xff]   ;;  %v6974_v58 = vld [vmem:[%s7350_s22 + $0x208] sm:$0xff]   ;;  %v6976_v62 = vld [vmem:[%s7350_s22 + $0x250] sm:$0xff]  }
 0xed5   : > { %v4217_v10 = vadd.f32 %v4216_v31, %v3734_v47  ;;  %v4260_v16 = vadd.f32 %v4259_v0, %v3742_v56  ;;  %v4218_v3 = vpop.f32.mrb[98].mxu1  ;;  %v4261_v2 = vpop.f32.mrb[102].mxu0  ;;  %v6975_v59 = vld [vmem:[%s7350_s22 + $0x288] sm:$0xff]   ;;  %v6979_v12 = vld [vmem:[%s7350_s22 + $0x290] sm:$0xff]   ;;  %v6981_v36 = vld [vmem:[%s7350_s22 + $0x2d8] sm:$0xff]  }
 0xed6   : > { %v4219_v17 = vadd.f32 %v4218_v3, %v3730_v46  ;;  %v4262_v18 = vadd.f32 %v4261_v2, %v7986_v63  ;;  %v4220_v20 = vpop.f32.mrb[99].mxu1  ;;  %v4263_v25 = vpop.f32.mrb[103].mxu0  ;;  %v4278_v21 = vmax.f32 %v4215_v9, 0.0  ;;  %v4280_v32 = vmax.f32 %v4258_v13, 0.0  ;;  %v6961_v63 = vld [vmem:[%s7350_s22 + $0x1f0] sm:$0xff]   ;;  %v6965_v46 = vld [vmem:[%s7350_s22 + $0x1f8] sm:$0xff]  }
 0xed7   : > { %v4221_v8 = vadd.f32 %v4220_v20, %v3734_v47  ;;  %v4264_v37 = vadd.f32 %v4263_v25, %v3742_v56  ;;  %6422 = vmatpush3.bf16.msra.mxu1 %v6954_v57  ;;  %6444 = vmatpush3.bf16.msra.mxu0 %v6955_v6  ;;  %v4279_v28 = vmax.f32 %v4217_v10, 0.0  ;;  %v4281_v34 = vmax.f32 %v4260_v16, 0.0  ;;  %v6966_v47 = vld [vmem:[%s7350_s22 + $0x138] sm:$0xff]   ;;  %v6971_v56 = vld [vmem:[%s7350_s22 + $0x280] sm:$0xff]   ;;  %v6988_v57 = vld [vmem:[%s7350_s22 + $0x268] sm:$0xff]  }
 0xed8   : > { %v4294_v19 = vmax.f32 %v4219_v17, 0.0  ;;  %v4296_v33 = vmax.f32 %v4262_v18, 0.0  ;;  %6423 = vmatprep.subr.bf16.mxu1 %v6956_v14  ;;  %6445 = vmatprep.subr.bf16.mxu0 %v6957_v15  ;;  %v6982_v7 = vld [vmem:[%s7350_s22 + $0x218] sm:$0xff]   ;;  %v6986_v23 = vld [vmem:[%s7350_s22 + $0x220] sm:$0xff]   ;;  %v6989_v6 = vld [vmem:[%s7350_s22 + $0x2e8] sm:$0xff]  }
 0xed9   : > { %v4295_v30 = vmax.f32 %v4221_v8, 0.0  ;;  %v4297_v35 = vmax.f32 %v4264_v37, 0.0  ;;  %v6983_v4 = vld [vmem:[%s7350_s22 + $0x298] sm:$0xff]   ;;  %v6987_v5 = vld [vmem:[%s7350_s22 + $0x2a0] sm:$0xff]   ;;  %v6990_v9 = vld [vmem:[%s7350_s22 + $0x228] sm:$0xff]  }
 0xeda   : > { %v8061_v38 = vpack.c.bf16 %v4294_v19, %v4278_v21  ;;  %v8063_v40 = vpack.c.bf16 %v4296_v33, %v4280_v32  ;;  %v6991_v13 = vld [vmem:[%s7350_s22 + $0x2a8] sm:$0xff]   ;;  %v6992_v31 = vld [vmem:[%s7350_s22 + $0x270] sm:$0xff]   ;;  %v6996_v10 = vld [vmem:[%s7350_s22 + $0x278] sm:$0xff]  }
 0xedb   : > { %v8065_v41 = vpack.c.bf16 %v4295_v30, %v4279_v28  ;;  %v8067_v42 = vpack.c.bf16 %v4297_v35, %v4281_v34  ;;  %6424 = vmatpush3.bf16.msra.mxu1 %v6958_v39  ;;  %6446 = vmatpush3.bf16.msra.mxu0 %v6959_v29  ;;  %v6993_v0 = vld [vmem:[%s7350_s22 + $0x2f0] sm:$0xff]   ;;  %v6997_v16 = vld [vmem:[%s7350_s22 + $0x2f8] sm:$0xff]   ;;  %v7000_v17 = vld [vmem:[%s7350_s22 + $0x340] sm:$0xff]  }
 0xedc   : > { %6425 = vmatprep.subr.bf16.mxu1 %v6960_v24  ;;  %6447 = vmatprep.subr.bf16.mxu0 %v6961_v63  ;;  %v6994_v14 = vld [vmem:[%s7350_s22 + $0x230] sm:$0xff]   ;;  %v6998_v3 = vld [vmem:[%s7350_s22 + $0x238] sm:$0xff]   ;;  %v7001_v18 = vld [vmem:[%s7350_s22 + $0x3c0] sm:$0xff]  }
 0xedd   : > { %v6995_v15 = vld [vmem:[%s7350_s22 + $0x2b0] sm:$0xff]   ;;  %v6999_v2 = vld [vmem:[%s7350_s22 + $0x2b8] sm:$0xff]   ;;  %v7002_v20 = vld [vmem:[%s7350_s22 + $0x300] sm:$0xff]  }
 0xede   : > { %v7003_v25 = vld [vmem:[%s7350_s22 + $0x380] sm:$0xff]   ;;  %v7004_v8 = vld [vmem:[%s7350_s22 + $0x348] sm:$0xff]   ;;  %v7008_v21 = vld [vmem:[%s7350_s22 + $0x350] sm:$0xff]  }
 0xedf   : > { %6426 = vmatpush3.bf16.msra.mxu1 %v6962_v43  ;;  %6448 = vmatpush3.bf16.msra.mxu0 %v6963_v44  ;;  %v7005_v37 = vld [vmem:[%s7350_s22 + $0x3c8] sm:$0xff]   ;;  %v7011_v32 = vld [vmem:[%s7350_s22 + $0x390] sm:$0xff]   ;;  %v7012_v19 = vld [vmem:[%s7350_s22 + $0x358] sm:$0xff]  }
 0xee0   : > { %6427 = vmatprep.subr.bf16.mxu1 %v6964_v45  ;;  %6449 = vmatprep.subr.bf16.mxu0 %v6965_v46  ;;  %v7006_v39 = vld [vmem:[%s7350_s22 + $0x308] sm:$0xff]   ;;  %v7013_v33 = vld [vmem:[%s7350_s22 + $0x3d8] sm:$0xff]   ;;  %v7016_v28 = vld [vmem:[%s7350_s22 + $0x360] sm:$0xff]  }
 0xee1   : > { %v7007_v29 = vld [vmem:[%s7350_s22 + $0x388] sm:$0xff]   ;;  %v7014_v24 = vld [vmem:[%s7350_s22 + $0x318] sm:$0xff]   ;;  %v7017_v34 = vld [vmem:[%s7350_s22 + $0x3e0] sm:$0xff]  }
 0xee2   : > { %v7015_v63 = vld [vmem:[%s7350_s22 + $0x398] sm:$0xff]   ;;  %v7018_v30 = vld [vmem:[%s7350_s22 + $0x320] sm:$0xff]   ;;  %v7022_v43 = vld [vmem:[%s7350_s22 + $0x328] sm:$0xff]  }
 0xee3   : > { %6428 = vmatpush3.bf16.msra.mxu1 %v6966_v47  ;;  %6450 = vmatpush3.bf16.msra.mxu0 %v6967_v50  ;;  %v7019_v35 = vld [vmem:[%s7350_s22 + $0x3a0] sm:$0xff]   ;;  %v7023_v44 = vld [vmem:[%s7350_s22 + $0x3a8] sm:$0xff]   ;;  %v7024_v45 = vld [vmem:[%s7350_s22 + $0x370] sm:$0xff]  }
 0xee4   : > { %6457 = vmatprep.subr.bf16.mxu1 %v6968_v51  ;;  %6479 = vmatprep.subr.bf16.mxu0 %v6969_v55  ;;  %v7025_v46 = vld [vmem:[%s7350_s22 + $0x3f0] sm:$0xff]   ;;  %v7028_v51 = vld [vmem:[%s7350_s22 + $0x378] sm:$0xff]  }
 0xee5   : > { %v7026_v47 = vld [vmem:[%s7350_s22 + $0x330] sm:$0xff]   ;;  %v7029_v55 = vld [vmem:[%s7350_s22 + $0x3f8] sm:$0xff]  }
 0xee6   : > { %5460 = vmatmul.mubr.bf16.vlgmr.msra.gmra.mrb[104].mxu1 %v8022_v26  ;;  %5501 = vmatmul.mubr.bf16.vlgmr.msra.gmra.mrb[108].mxu0 %v8024_v27  ;;  %v6977_v26 = vld [vmem:[%s7350_s22 + $0x2d0] sm:$0xff]  }
 0xee7   : > { %6458 = vmatpush3.bf16.msra.mxu1 %v6970_v1  ;;  %5541 = vmatprep.mubr.bf16.mxu1 %v8047_v61  ;;  %v6978_v27 = vld [vmem:[%s7350_s22 + $0x210] sm:$0xff]   ;;  %v6984_v61 = vld [vmem:[%s7350_s22 + $0x260] sm:$0xff]   ;;  %v7030_v1 = vld [vmem:[%s7350_s22 + $0x338] sm:$0xff]  }
 0xee8   : > { %6480 = vmatpush3.bf16.msra.mxu0 %v6971_v56  ;;  %5582 = vmatprep.mubr.bf16.mxu0 %v8049_v11  ;;  %v6985_v11 = vld [vmem:[%s7350_s22 + $0x2e0] sm:$0xff]   ;;  %v7027_v50 = vld [vmem:[%s7350_s22 + $0x3b0] sm:$0xff]   ;;  %v7031_v56 = vld [vmem:[%s7350_s22 + $0x3b8] sm:$0xff]  }
 0xee9   : > { %6459 = vmatprep.subr.bf16.mxu1 %v6972_v52  ;;  %6481 = vmatprep.subr.bf16.mxu0 %v6973_v53 }
 0xeeb   : > { %6460 = vmatpush3.bf16.msra.mxu1 %v6974_v58  ;;  %v6134_v58 = vld [vmem:[%s1021_s5] ss:$0 sm:$0xff] }
 0xeec   : > { %6482 = vmatpush3.bf16.msra.mxu0 %v6975_v59  ;;  %6461 = vmatprep.subr.bf16.mxu1 %v6976_v62 }
 0xeed   : > { %6483 = vmatprep.subr.bf16.mxu0 %v6977_v26 }
 0xeef   : > { %6462 = vmatpush3.bf16.msra.mxu1 %v6978_v27 }
 0xef0   : > { %6484 = vmatpush3.bf16.msra.mxu0 %v6979_v12  ;;  %6463 = vmatprep.subr.bf16.mxu1 %v6980_v60 }
 0xef1   : > { %6485 = vmatprep.subr.bf16.mxu0 %v6981_v36 }
 0xef3   : > { %6464 = vmatpush3.bf16.msra.mxu1 %v6982_v7 }
 0xef4   : > { %6486 = vmatpush3.bf16.msra.mxu0 %v6983_v4  ;;  %6465 = vmatprep.subr.bf16.mxu1 %v6984_v61 }
 0xef5   : > { %6487 = vmatprep.subr.bf16.mxu0 %v6985_v11 }
 0xef7   : > { %6466 = vmatpush3.bf16.msra.mxu1 %v6986_v23 }
 0xef8   : > { %6488 = vmatpush3.bf16.msra.mxu0 %v6987_v5  ;;  %6467 = vmatprep.subr.bf16.mxu1 %v6988_v57 }
 0xef9   : > { %6489 = vmatprep.subr.bf16.mxu0 %v6989_v6 }
 0xefb   : > { %6468 = vmatpush3.bf16.msra.mxu1 %v6990_v9 }
 0xefc   : > { %6490 = vmatpush3.bf16.msra.mxu0 %v6991_v13  ;;  %6469 = vmatprep.subr.bf16.mxu1 %v6992_v31 }
 0xefd   : > { %6491 = vmatprep.subr.bf16.mxu0 %v6993_v0 }
 0xeff   : > { %6470 = vmatpush3.bf16.msra.mxu1 %v6994_v14 }
 0xf00   : > { %6492 = vmatpush3.bf16.msra.mxu0 %v6995_v15  ;;  %6471 = vmatprep.subr.bf16.mxu1 %v6996_v10 }
 0xf01   : > { %6493 = vmatprep.subr.bf16.mxu0 %v6997_v16 }
 0xf03   : > { %6472 = vmatpush3.bf16.msra.mxu1 %v6998_v3 }
 0xf04   : > { %6494 = vmatpush3.bf16.msra.mxu0 %v6999_v2  ;;  %6501 = vmatprep.subr.bf16.mxu1 %v7000_v17 }
 0xf05   : > { %6523 = vmatprep.subr.bf16.mxu0 %v7001_v18 }
 0xf06   : > { %5542 = vmatmul.mubr.bf16.vlgmr.msra.gmra.mrb[108].mxu1 %v8043_v22  ;;  %v7009_v22 = vld [vmem:[%s7350_s22 + $0x3d0] sm:$0xff]  }
 0xf07   : > { %5583 = vmatmul.mubr.bf16.vlgmr.msra.gmra.mrb[112].mxu0 %v8045_v54  ;;  %6502 = vmatpush3.bf16.msra.mxu1 %v7002_v20  ;;  %v7010_v54 = vld [vmem:[%s7350_s22 + $0x310] sm:$0xff]  }
 0xf08   : > { %5623 = vmatprep.mubr.bf16.mxu1 %v8065_v41  ;;  %6524 = vmatpush3.bf16.msra.mxu0 %v7003_v25  ;;  %v7020_v41 = vld [vmem:[%s7350_s22 + $0x368] sm:$0xff]  }
 0xf09   : > { %5664 = vmatprep.mubr.bf16.mxu0 %v8067_v42  ;;  %6503 = vmatprep.subr.bf16.mxu1 %v7004_v8  ;;  %v7021_v42 = vld [vmem:[%s7350_s22 + $0x3e8] sm:$0xff]  }
 0xf0a   : > { %6525 = vmatprep.subr.bf16.mxu0 %v7005_v37 }
 0xf0b   : > { %6504 = vmatpush3.bf16.msra.mxu1 %v7006_v39 }
 0xf0c   : > { %6526 = vmatpush3.bf16.msra.mxu0 %v7007_v29  ;;  %6505 = vmatprep.subr.bf16.mxu1 %v7008_v21 }
 0xf0d   : > { %6527 = vmatprep.subr.bf16.mxu0 %v7009_v22 }
 0xf0f   : > { %6506 = vmatpush3.bf16.msra.mxu1 %v7010_v54 }
 0xf10   : > { %6528 = vmatpush3.bf16.msra.mxu0 %v7011_v32  ;;  %6507 = vmatprep.subr.bf16.mxu1 %v7012_v19 }
 0xf11   : > { %6529 = vmatprep.subr.bf16.mxu0 %v7013_v33 }
 0xf13   : > { %6508 = vmatpush3.bf16.msra.mxu1 %v7014_v24 }
 0xf14   : > { %6530 = vmatpush3.bf16.msra.mxu0 %v7015_v63  ;;  %6509 = vmatprep.subr.bf16.mxu1 %v7016_v28 }
 0xf15   : > { %6531 = vmatprep.subr.bf16.mxu0 %v7017_v34 }
 0xf17   : > { %6510 = vmatpush3.bf16.msra.mxu1 %v7018_v30 }
 0xf18   : > { %6532 = vmatpush3.bf16.msra.mxu0 %v7019_v35  ;;  %6511 = vmatprep.subr.bf16.mxu1 %v7020_v41 }
 0xf19   : > { %6533 = vmatprep.subr.bf16.mxu0 %v7021_v42 }
 0xf1b   : > { %6512 = vmatpush3.bf16.msra.mxu1 %v7022_v43 }
 0xf1c   : > { %6534 = vmatpush3.bf16.msra.mxu0 %v7023_v44  ;;  %6513 = vmatprep.subr.bf16.mxu1 %v7024_v45 }
 0xf1d   : > { %6535 = vmatprep.subr.bf16.mxu0 %v7025_v46 }
 0xf1f   : > { %6514 = vmatpush3.bf16.msra.mxu1 %v7026_v47 }
 0xf20   : > { %6536 = vmatpush3.bf16.msra.mxu0 %v7027_v50  ;;  %6515 = vmatprep.subr.bf16.mxu1 %v7028_v51 }
 0xf21   : > { %6537 = vmatprep.subr.bf16.mxu0 %v7029_v55 }
 0xf23   : > { %6516 = vmatpush3.bf16.msra.mxu1 %v7030_v1 }
 0xf24   : > { %6538 = vmatpush3.bf16.msra.mxu0 %v7031_v56 }
 0xf26   : > { %5624 = vmatmul.mubr.bf16.vlgmr.msra.gmra.mrb[112].mxu1 %v8061_v38 }
 0xf27   : > { %5665 = vmatmul.mubr.bf16.vlgmr.msra.gmra.mrb[116].mxu0 %v8063_v40 }
 0xf99   : > { %v6385_v52 = vpop.f32.mrb[100].mxu1  ;;  %v6407_v53 = vpop.f32.mrb[104].mxu0 }
 0xf9a   : > { %v6386_v59 = vpop.f32.mrb[101].mxu1  ;;  %v6408_v62 = vpop.f32.mrb[105].mxu0 }
 0xf9b   : > { %v6387_v26 = vadd.f32 %v6386_v59, %v6385_v52  ;;  %v6409_v27 = vadd.f32 %v6408_v62, %v6407_v53  ;;  %v6388_v12 = vpop.f32.mrb[102].mxu1  ;;  %v6410_v60 = vpop.f32.mrb[106].mxu0 }
 0xf9c   : > { %v6389_v36 = vpop.f32.mrb[103].mxu1  ;;  %v6411_v7 = vpop.f32.mrb[107].mxu0 }
 0xf9d   : > { %v5380_v4 = vadd.f32 %v6387_v26, %v6134_v58  ;;  %v6390_v61 = vadd.f32 %v6389_v36, %v6388_v12  ;;  %v6412_v38 = vadd.f32 %v6411_v7, %v6410_v60 }
 0xf9f   : > { %v5421_v11 = vadd.f32 %v6409_v27, %v5380_v4  ;;  %v5383_v40 = vadd.f32 %v6390_v61, %v6134_v58 }
 0xfa1   : > { %v5424_v23 = vadd.f32 %v6412_v38, %v5383_v40 }
 0xfb9   : > { %v6429_v5 = vpop.f32.mrb[104].mxu1  ;;  %v6451_v57 = vpop.f32.mrb[108].mxu0 }
 0xfba   : > { %v6430_v6 = vpop.f32.mrb[105].mxu1  ;;  %v6452_v9 = vpop.f32.mrb[109].mxu0 }
 0xfbb   : > { %v6431_v13 = vadd.f32 %v6430_v6, %v6429_v5  ;;  %v6453_v31 = vadd.f32 %v6452_v9, %v6451_v57  ;;  %v6432_v0 = vpop.f32.mrb[106].mxu1  ;;  %v6454_v14 = vpop.f32.mrb[110].mxu0 }
 0xfbc   : > { %v6433_v15 = vpop.f32.mrb[107].mxu1  ;;  %v6455_v10 = vpop.f32.mrb[111].mxu0 }
 0xfbd   : > { %v5462_v16 = vadd.f32 %v6431_v13, %v5421_v11  ;;  %v6434_v3 = vadd.f32 %v6433_v15, %v6432_v0  ;;  %v6456_v2 = vadd.f32 %v6455_v10, %v6454_v14  ;;  %v6264_v15 = vld [vmem:[%s1027_s29] ss:$0 sm:$0xff] }
 0xfbf   : > { %v5503_v17 = vadd.f32 %v6453_v31, %v5462_v16  ;;  %v5465_v18 = vadd.f32 %v6434_v3, %v5424_v23  ;;  %v6263_v31 = vld [vmem:[%s1024_s26] ss:$0 sm:$0xff] }
 0xfc1   : > { %v5506_v20 = vadd.f32 %v6456_v2, %v5465_v18  ;;  %v7110_v18 = vld [vmem:[%s8283_s25] sm:$0xff] (!%p6265_p5)  }
 0xfd9   : > { %v6473_v25 = vpop.f32.mrb[108].mxu1 }
 0xfda   : > { %v6495_v8 = vpop.f32.mrb[112].mxu0  ;;  %v6474_v37 = vpop.f32.mrb[109].mxu1 }
 0xfdb   : > { %v6475_v39 = vadd.f32 %v6474_v37, %v6473_v25  ;;  %v6496_v29 = vpop.f32.mrb[113].mxu0  ;;  %v6476_v21 = vpop.f32.mrb[110].mxu1  ;;  %v7111_v25 = vld [vmem:[%s8283_s25 + $0x8] sm:$0xff] (!%p6265_p5)   ;;  %v6266_v37 = vld [vmem:[%s8284_s21] ss:$0 sm:$0xff] (!%p6265_p5) }
 0xfdc   : > { %v6497_v22 = vadd.f32 %v6496_v29, %v6495_v8  ;;  %v6498_v54 = vpop.f32.mrb[114].mxu0  ;;  %v6477_v32 = vpop.f32.mrb[111].mxu1 }
 0xfdd   : > { %v5544_v19 = vadd.f32 %v6475_v39, %v5503_v17  ;;  %v6478_v33 = vadd.f32 %v6477_v32, %v6476_v21  ;;  %v6499_v24 = vpop.f32.mrb[115].mxu0 }
 0xfde   : > { %v6500_v63 = vadd.f32 %v6499_v24, %v6498_v54 }
 0xfdf   : > { %v5585_v28 = vadd.f32 %v6497_v22, %v5544_v19  ;;  %v5547_v34 = vadd.f32 %v6478_v33, %v5506_v20  ;;  %v7128_v20 = vmov (!%p6265_p5), 0.0  }
 0xfe0   : > { %6812 = vmatprep.subr.bf16.mxu0 (!%p6265_p5), %v7128_v20  ;;  %6816 = vmatprep.mubr.msk.bf16.mxu0 (!%p6265_p5), %vm7129_vm7, %v7128_v20 }
 0xfe1   : > { %v5588_v30 = vadd.f32 %v6500_v63, %v5547_v34  ;;  %6813 = vmatpush3.bf16.msra.mxu0 (!%p6265_p5), %v7110_v18 }
 0xfe2   : > { %6814 = vmatprep.subr.bf16.mxu0 (!%p6265_p5), %v7128_v20 }
 0xfe5   : > { %6815 = vmatpush3.bf16.msra.mxu0 (!%p6265_p5), %v7111_v25 }
 0xff9   : > { %v6517_v35 = vpop.f32.mrb[112].mxu1 }
 0xffa   : > { %v6539_v41 = vpop.f32.mrb[116].mxu0  ;;  %v6518_v42 = vpop.f32.mrb[113].mxu1 }
 0xffb   : > { %v6519_v43 = vadd.f32 %v6518_v42, %v6517_v35  ;;  %v6540_v44 = vpop.f32.mrb[117].mxu0  ;;  %v6520_v45 = vpop.f32.mrb[114].mxu1 }
 0xffc   : > { %v6541_v46 = vadd.f32 %v6540_v44, %v6539_v41  ;;  %v6542_v47 = vpop.f32.mrb[118].mxu0  ;;  %v6521_v50 = vpop.f32.mrb[115].mxu1 }
 0xffd   : > { %v5626_v51 = vadd.f32 %v6519_v43, %v5585_v28  ;;  %v6522_v55 = vadd.f32 %v6521_v50, %v6520_v45  ;;  %v6543_v1 = vpop.f32.mrb[119].mxu0 }
 0xffe   : > { %v6544_v56 = vadd.f32 %v6543_v1, %v6542_v47 }
 0xfff   : > { %v5667_v52 = vadd.f32 %v6541_v46, %v5626_v51  ;;  %v5629_v53 = vadd.f32 %v6522_v55, %v5588_v30 }
0x1001   : > { %v5670_v58 = vadd.f32 %v6544_v56, %v5629_v53  ;;  %v5673_v59 = vadd.f32 %v5667_v52, %v7901_v48 }
0x1003   : > { %v5677_v62 = vsel %vm1075_vm2, %v5673_v59, 0.0  ;;  %v5674_v26 = vadd.f32 %v5670_v58, %v7903_v49 }
0x1004   : > { %5678 = vadd.xlane.f32.xlu1 %v5677_v62 }
0x1005   : > { %v5680_v27 = vsel %vm1075_vm2, %v5674_v26, 0.0 }
0x1006   : > { %5681 = vadd.xlane.f32.xlu0 %v5680_v27 }
0x1091   : > { %v5679_v12 = vpop.xlane.xlu1 %5678 }
0x1092   : > { %v5683_v60 = vmul.f32 0.03125, %v5679_v12 }
0x1093   : > { %v5682_v36 = vpop.xlane.xlu0 %5681 }
0x1094   : > { %v5685_v7 = vsub.f32 %v5673_v59, %v5683_v60  ;;  %v5684_v4 = vmul.f32 0.03125, %v5682_v36 }
0x1096   : > { %v5686_v61 = vsub.f32 %v5674_v26, %v5684_v4  ;;  %v5687_v38 = vmul.f32 %v5685_v7, %v5685_v7 }
0x1098   : > { %v5689_v11 = vsel %vm1075_vm2, %v5687_v38, 0.0  ;;  %v5688_v40 = vmul.f32 %v5686_v61, %v5686_v61 }
0x1099   : > { %5690 = vadd.xlane.f32.xlu1 %v5689_v11 }
0x109a   : > { %v5692_v48 = vsel %vm1075_vm2, %v5688_v40, 0.0 }
0x109b   : > { %5693 = vadd.xlane.f32.xlu0 %v5692_v48 }
0x1126   : > { %v5691_v49 = vpop.xlane.xlu1 %5690 }
0x1127   : > { %v5695_v23 = vmul.f32 0.03125, %v5691_v49 }
0x1128   : > { %v5694_v5 = vpop.xlane.xlu0 %5693 }
0x1129   : > { %v5697_v57 = vadd.f32 1e-05, %v5695_v23  ;;  %v5696_v6 = vmul.f32 0.03125, %v5694_v5 }
0x112b   : > { %7104 = vrsqrt.f32 %v5697_v57  ;;  %v5698_v9 = vadd.f32 1e-05, %v5696_v6 }
0x112d   : > { %7106 = vrsqrt.f32 %v5698_v9 }
0x1135   : > { %v7105_v13 = vpop.eup %7104 }
0x1136   : > { %v5701_v0 = vmul.f32 %v7105_v13, %v5685_v7 }
0x1137   : > { %v7107_v14 = vpop.eup %7106 }
0x1138   : > { %v5709_v10 = vmul.f32 %v6263_v31, %v5701_v0  ;;  %v5702_v16 = vmul.f32 %v7107_v14, %v5686_v61  ;;  %5724 = sbr.rel (%p6265_p5) target bundleno = 4633 (0x1219), region = 124 }
0x113a   : > { %v5717_v3 = vadd.f32 %v6264_v15, %v5709_v10  ;;  %v5710_v2 = vmul.f32 %v6263_v31, %v5702_v16 }
0x113c   : > { %5719 = vst.msk [vmem:[#allocation2] sm:$0xff] %vm1075_vm2, %v5717_v3  ;;  %v5718_v17 = vadd.f32 %v6264_v15, %v5710_v2 }
0x113e   : > { %5720 = vst.msk [vmem:[#allocation2 + $0x8] sm:$0xff] %vm1075_vm2, %v5718_v17  ;;  %v5725_v8 = vpack.c.bf16 (!%p6265_p5), %v5718_v17, %v5717_v3 }
0x1140   : > { %6817 = vmatmul.mubr.msk.bf16.vlgmr.msra.gmra.mrb[0].mxu0 %vm1075_vm2, %v5725_v8 }
0x1213   : > { %v5786_v39 = vpop.f32.mrb[0].mxu0 }
0x1214   : > { %v5787_v29 = vadd.f32 %v6266_v37, %v5786_v39  ;;  %v6818_v21 = vpop.f32.mrb[1].mxu0 }
0x1215   : > { %v5789_v22 = vpop.f32.mrb[2].mxu0 }
0x1216   : > { %5793 = vst [vmem:[%s8285_s7] sm:$0xff] %v5787_v29  ;;  %v5790_v54 = vadd.f32 %v6266_v37, %v5789_v22  ;;  %v6819_v32 = vpop.f32.mrb[3].mxu0 }
0x1218   : > { %5794 = vst [vmem:[%s8285_s7 + $0x8] sm:$0xff] %v5790_v54 }
0x1219 PF: > { %s8286_s10 = sld [smem:[#allocation3_spill]] }
0x121f   : > { %s34_s5 = sadd.s32 1, %s8286_s10  }
0x1220   : > { %p31_p6 = scmp.ge.s32.totalorder %s34_s5, 4  }
0x1222   :  { %33 = sbr.rel (!%p31_p6) target bundleno = 19 (0x13), region = 207 }

</bundles_post_ra>
